<compile_context>
chip_gen: v7x
topology: tpu7x:2x2x1
jax: 0.10.0
libtpu: 0.0.40
codegen_flags: <defaults>
</compile_context>

<pallas_src>
import functools

import jax
import jax.numpy as jnp
import numpy as np
from jax.experimental import pallas as pl
from jax.experimental.pallas import tpu as pltpu


def geodesic_loss_kernel(*refs, num_steps, num_reps, dt):
    if num_reps > 1:
        x0_ref, x1_ref, g_ref, s_ref, out_ref = refs
    else:
        x0_ref, x1_ref, g_ref, out_ref = refs
        s_ref = None

    x0 = x0_ref[...]          # (D, tb)   f32, batch on lanes
    x1 = x1_ref[...]          # (D, tb)   f32
    g_neg = g_ref[...]        # (I*D, D)  f32, already scaled by -dt

    def step(_, carry):
        traj, vel = carry
        # t[i*D+j, b] = -dt * sum_k gamma[i,j,k] * vel[k, b]        (MXU, N = tb)
        t = jnp.dot(g_neg, vel, preferred_element_type=jnp.float32)     # (I*D, tb)
        if num_reps == 1:
            # dvel[0, b] = -dt * sum_{j,k} gamma[0,j,k] vel[j,b] vel[k,b]   (XLU reduce)
            dvel = jnp.sum(t * vel, axis=0, keepdims=True)                 # (1, tb)
        else:
            vt = jnp.tile(vel, (num_reps, 1))                              # (I*D, tb)
            # segment-sum over j per i                                  (MXU, N = tb)
            dvel = jnp.dot(s_ref[...], t * vt,
                           preferred_element_type=jnp.float32)             # (I, tb)
        vel = vel + dvel          # broadcasts over sublanes when I == 1
        traj = traj + vel * dt
        return traj, vel

    traj, _ = jax.lax.fori_loop(0, num_steps, step,
                                (x0, jnp.zeros_like(x0)), unroll=True)

    diff = traj - x1
    dist = jnp.sqrt(jnp.sum(diff * diff, axis=0, keepdims=True))   # (1, tb)
    partial = jnp.sum(dist)                                        # this tile's sum

    # Accumulate partial sums across the inner ("arbitrary") grid axis into a single
    # (8, 128) block per core; only element [0, 0] is non-zero.
    @pl.when(pl.program_id(1) == 0)
    def _():
        out_ref[...] = jnp.zeros_like(out_ref)

    row = jax.lax.broadcasted_iota(jnp.int32, (8, 128), 0)
    col = jax.lax.broadcasted_iota(jnp.int32, (8, 128), 1)
    out_ref[...] += jnp.where((row == 0) & (col == 0), partial, 0.0)


def geodesic_loss(outputs, targets, christoffel_symbols, num_steps=10, block_b=2048):
    """Pallas equivalent of GeodesicLoss.forward (returns mean geodesic distance)."""
    gamma = jnp.asarray(christoffel_symbols, dtype=jnp.float32)
    if gamma.ndim == 2:
        gamma = gamma[None, :, :]          # mirrors gamma.unsqueeze(0)
    I, Dj, Dk = gamma.shape
    B, D = outputs.shape
    assert Dj == D and Dk == D, "christoffel_symbols must be (I, D, D)"
    assert I in (1, D), "acceleration (B, I) must broadcast against velocity (B, D)"

    dt = 1.0 / num_steps
    # Constants built in glue (plain JAX): gamma flattened to (I*D, D) with -dt folded
    # in, and (for I > 1) a constant segment-sum matrix (I, I*D).
    g_neg = (-dt) * gamma.reshape(I * D, D)
    use_matmul = I > 1
    s_t = jnp.repeat(jnp.eye(I, dtype=jnp.float32), D, axis=1) if use_matmul else None

    # ---- batch tiling: batch sits on the lane axis, so tiles are multiples of 128.
    lane = 128
    # Cap tb so the (I*D, tb) per-step intermediate stays <= ~128 KiB (no spills inside
    # the unrolled loop); large tiles when I*D is small (amortizes per-grid-step cost).
    cap = max(lane, ((128 * 1024) // max(1, I * D * 4)) // lane * lane)
    tb = max(lane, (min(int(block_b), cap) // lane) * lane)
    tb = min(tb, int(pl.cdiv(B, lane)) * lane)          # don't pad far past B

    num_tiles = int(pl.cdiv(B, tb))
    num_cores = 2 if num_tiles >= 2 else 1              # v7x megacore split
    tpc = int(pl.cdiv(num_tiles, num_cores))            # tiles per core
    b_pad = num_cores * tpc * tb

    # Transpose once in the wrapper; padded columns have x0 = x1 = 0 -> distance 0.
    x0 = outputs.astype(jnp.float32).T                  # (D, B)
    x1 = targets.astype(jnp.float32).T
    if b_pad != B:
        x0 = jnp.pad(x0, ((0, 0), (0, b_pad - B)))
        x1 = jnp.pad(x1, ((0, 0), (0, b_pad - B)))

    # ---- VMEM budget (explicit limit, capped per generation).
    try:
        vmem_cap = int(pltpu.get_tpu_info().vmem_capacity_bytes)
    except Exception:  # pragma: no cover - conservative fallback
        vmem_cap = 64 << 20
    need = 4 * (2 * 2 * D * tb                 # x0/x1 tiles, double-buffered
                + 2 * (I * D * D + I * I * D)  # constant matrices
                + 2 * 8 * 128                  # output accumulator
                + 6 * I * D * tb               # per-step intermediates (t, vt, t*vt)
                + 4 * D * tb)                  # vel / traj / diff
    vmem_limit = int(min(vmem_cap * 3 // 4, max(32 << 20, 2 * need)))

    flops = int(num_steps * B * (2 * I * D * D + 2 * I * D * I + 2 * I * D + 4 * D)
                + 4 * B * D)
    cost = pl.CostEstimate(
        flops=flops,
        transcendentals=int(B),
        bytes_accessed=int(4 * (2 * B * D + I * D * D + I * I * D
                                + num_cores * 8 * 128)))

    kernel = functools.partial(geodesic_loss_kernel, num_steps=num_steps,
                               num_reps=I, dt=dt)

    data_spec = pl.BlockSpec((D, tb), lambda c, i: (0, c * tpc + i))
    in_specs = [
        data_spec,                                            # outputs (transposed)
        pl.BlockSpec((D, tb), lambda c, i: (0, c * tpc + i)), # targets (transposed)
        pl.BlockSpec((I * D, D), lambda c, i: (0, 0)),        # g_neg (resident)
    ]
    inputs = [x0, x1, g_neg]
    if use_matmul:
        in_specs.append(pl.BlockSpec((I, I * D), lambda c, i: (0, 0)))  # S^T (resident)
        inputs.append(s_t)

    out = pl.pallas_call(
        kernel,
        out_shape=jax.ShapeDtypeStruct((num_cores * 8, 128), jnp.float32),
        grid_spec=pltpu.PrefetchScalarGridSpec(
            num_scalar_prefetch=0,
            grid=(num_cores, tpc),
            in_specs=in_specs,
            out_specs=pl.BlockSpec((8, 128), lambda c, i: (c, 0)),
        ),
        compiler_params=pltpu.CompilerParams(
            dimension_semantics=("parallel", "arbitrary"),
            vmem_limit_bytes=vmem_limit),
        cost_estimate=cost,
    )(*inputs)

    # 1/B applied once to the final scalar (padded columns contribute exactly 0).
    return jnp.sum(out) / B


def _reference(outputs, targets, gamma, num_steps):
    g = gamma if gamma.ndim == 3 else gamma[None, :, :]
    traj = outputs
    vel = jnp.zeros_like(outputs)
    dt = 1.0 / num_steps
    for _ in range(num_steps):
        acc = -jnp.einsum("ijk,bj,bk->bi", g, vel, vel)
        vel = vel + acc * dt
        traj = traj + vel * dt
    return jnp.mean(jnp.sqrt(jnp.sum((traj - targets) ** 2, axis=1)))


if __name__ == "__main__":
    key = jax.random.PRNGKey(0)
    k1, k2, k3 = jax.random.split(key, 3)
    B, D, num_steps = 8, 16, 10

    outputs = jax.random.normal(k1, (B, D), dtype=jnp.float32)
    targets = jax.random.normal(k2, (B, D), dtype=jnp.float32)

    # 3-D christoffel symbols (I == D): exercises the MXU segment-sum path.
    gamma3 = 0.1 * jax.random.normal(k3, (D, D, D), dtype=jnp.float32)
    loss3 = jax.block_until_ready(geodesic_loss(outputs, targets, gamma3, num_steps))
    ref3 = _reference(outputs, targets, gamma3, num_steps)
    assert np.allclose(np.asarray(loss3), np.asarray(ref3), rtol=1e-5, atol=1e-5)

    # 2-D christoffel symbols (I == 1 after unsqueeze): exercises the XLU-reduce path.
    gamma2 = 0.1 * jax.random.normal(k3, (D, D), dtype=jnp.float32)
    loss2 = jax.block_until_ready(geodesic_loss(outputs, targets, gamma2, num_steps))
    ref2 = _reference(outputs, targets, gamma2, num_steps)
    assert np.allclose(np.asarray(loss2), np.asarray(ref2), rtol=1e-5, atol=1e-5)

    print("KERNEL_OK")
</pallas_src>

<mosaic_0001>
module attributes {stable_mosaic.version = 11 : i64} {
  func.func @geodesic_loss_kernel(%arg0: i32, %arg1: i32, %arg2: memref<16x128xf32, #tpu.memory_space<vmem>>, %arg3: memref<16x128xf32, #tpu.memory_space<vmem>>, %arg4: memref<256x16xf32, #tpu.memory_space<vmem>>, %arg5: memref<16x256xf32, #tpu.memory_space<vmem>>, %arg6: memref<8x128xf32, #tpu.memory_space<vmem>>) attributes {dimension_semantics = [#tpu.dimension_semantics<parallel>, #tpu.dimension_semantics<arbitrary>], iteration_bounds = array<i64: 1, 1>, scalar_prefetch = 0 : i64, scratch_operands = 0 : i64, tpu.core_type = #tpu.core_type<tc>, window_params = [{transform_indices = @transform_0, window_bounds = array<i64: 16, 128>}, {transform_indices = @transform_1, window_bounds = array<i64: 16, 128>}, {pipeline_mode = #tpu.pipeline_mode<synchronous>, transform_indices = @transform_2, window_bounds = array<i64: 256, 16>}, {pipeline_mode = #tpu.pipeline_mode<synchronous>, transform_indices = @transform_3, window_bounds = array<i64: 16, 256>}, {transform_indices = @transform_4, window_bounds = array<i64: 8, 128>}]} {
    %c0 = arith.constant 0 : index
    %c0_0 = arith.constant 0 : index
    %0 = vector.load %arg2[%c0, %c0_0] : memref<16x128xf32, #tpu.memory_space<vmem>>, vector<16x128xf32>
    %c0_1 = arith.constant 0 : index
    %c0_2 = arith.constant 0 : index
    %1 = vector.load %arg3[%c0_1, %c0_2] : memref<16x128xf32, #tpu.memory_space<vmem>>, vector<16x128xf32>
    %c0_3 = arith.constant 0 : index
    %c0_4 = arith.constant 0 : index
    %2 = vector.load %arg4[%c0_3, %c0_4] : memref<256x16xf32, #tpu.memory_space<vmem>>, vector<256x16xf32>
    %cst = arith.constant 0.000000e+00 : f32
    %3 = vector.broadcast %cst : f32 to vector<16x128xf32>
    %c0_i32 = arith.constant 0 : i32
    %cst_5 = arith.constant dense<0.000000e+00> : vector<256x128xf32>
    %4 = tpu.matmul %2, %3, %cst_5 {dimension_numbers = #tpu.dot_dimension_numbers<[1], [0], [0], [1], [0, 0, 1, 1], [], []>} : vector<256x16xf32>, vector<16x128xf32>, vector<256x128xf32> -> vector<256x128xf32>
    %5 = tpu.concatenate %3, %3, %3, %3, %3, %3, %3, %3, %3, %3, %3, %3, %3, %3, %3, %3 in 0 : vector<16x128xf32>, vector<16x128xf32>, vector<16x128xf32>, vector<16x128xf32>, vector<16x128xf32>, vector<16x128xf32>, vector<16x128xf32>, vector<16x128xf32>, vector<16x128xf32>, vector<16x128xf32>, vector<16x128xf32>, vector<16x128xf32>, vector<16x128xf32>, vector<16x128xf32>, vector<16x128xf32>, vector<16x128xf32> -> vector<256x128xf32>
    %c0_6 = arith.constant 0 : index
    %c0_7 = arith.constant 0 : index
    %6 = vector.load %arg5[%c0_6, %c0_7] : memref<16x256xf32, #tpu.memory_space<vmem>>, vector<16x256xf32>
    %7 = arith.mulf %4, %5 : vector<256x128xf32>
    %cst_8 = arith.constant dense<0.000000e+00> : vector<16x128xf32>
    %8 = tpu.matmul %6, %7, %cst_8 {dimension_numbers = #tpu.dot_dimension_numbers<[1], [0], [0], [1], [0, 0, 1, 1], [], []>} : vector<16x256xf32>, vector<256x128xf32>, vector<16x128xf32> -> vector<16x128xf32>
    %9 = arith.addf %3, %8 : vector<16x128xf32>
    %cst_9 = arith.constant 1.000000e-01 : f32
    %10 = vector.broadcast %cst_9 : f32 to vector<16x128xf32>
    %11 = arith.mulf %9, %10 : vector<16x128xf32>
    %12 = arith.addf %0, %11 : vector<16x128xf32>
    %c1_i32 = arith.constant 1 : i32
    %cst_10 = arith.constant dense<0.000000e+00> : vector<256x128xf32>
    %13 = tpu.matmul %2, %9, %cst_10 {dimension_numbers = #tpu.dot_dimension_numbers<[1], [0], [0], [1], [0, 0, 1, 1], [], []>} : vector<256x16xf32>, vector<16x128xf32>, vector<256x128xf32> -> vector<256x128xf32>
    %14 = tpu.concatenate %9, %9, %9, %9, %9, %9, %9, %9, %9, %9, %9, %9, %9, %9, %9, %9 in 0 : vector<16x128xf32>, vector<16x128xf32>, vector<16x128xf32>, vector<16x128xf32>, vector<16x128xf32>, vector<16x128xf32>, vector<16x128xf32>, vector<16x128xf32>, vector<16x128xf32>, vector<16x128xf32>, vector<16x128xf32>, vector<16x128xf32>, vector<16x128xf32>, vector<16x128xf32>, vector<16x128xf32>, vector<16x128xf32> -> vector<256x128xf32>
    %c0_11 = arith.constant 0 : index
    %c0_12 = arith.constant 0 : index
    %15 = vector.load %arg5[%c0_11, %c0_12] : memref<16x256xf32, #tpu.memory_space<vmem>>, vector<16x256xf32>
    %16 = arith.mulf %13, %14 : vector<256x128xf32>
    %cst_13 = arith.constant dense<0.000000e+00> : vector<16x128xf32>
    %17 = tpu.matmul %15, %16, %cst_13 {dimension_numbers = #tpu.dot_dimension_numbers<[1], [0], [0], [1], [0, 0, 1, 1], [], []>} : vector<16x256xf32>, vector<256x128xf32>, vector<16x128xf32> -> vector<16x128xf32>
    %18 = arith.addf %9, %17 : vector<16x128xf32>
    %cst_14 = arith.constant 1.000000e-01 : f32
    %19 = vector.broadcast %cst_14 : f32 to vector<16x128xf32>
    %20 = arith.mulf %18, %19 : vector<16x128xf32>
    %21 = arith.addf %12, %20 : vector<16x128xf32>
    %c2_i32 = arith.constant 2 : i32
    %cst_15 = arith.constant dense<0.000000e+00> : vector<256x128xf32>
    %22 = tpu.matmul %2, %18, %cst_15 {dimension_numbers = #tpu.dot_dimension_numbers<[1], [0], [0], [1], [0, 0, 1, 1], [], []>} : vector<256x16xf32>, vector<16x128xf32>, vector<256x128xf32> -> vector<256x128xf32>
    %23 = tpu.concatenate %18, %18, %18, %18, %18, %18, %18, %18, %18, %18, %18, %18, %18, %18, %18, %18 in 0 : vector<16x128xf32>, vector<16x128xf32>, vector<16x128xf32>, vector<16x128xf32>, vector<16x128xf32>, vector<16x128xf32>, vector<16x128xf32>, vector<16x128xf32>, vector<16x128xf32>, vector<16x128xf32>, vector<16x128xf32>, vector<16x128xf32>, vector<16x128xf32>, vector<16x128xf32>, vector<16x128xf32>, vector<16x128xf32> -> vector<256x128xf32>
    %c0_16 = arith.constant 0 : index
    %c0_17 = arith.constant 0 : index
    %24 = vector.load %arg5[%c0_16, %c0_17] : memref<16x256xf32, #tpu.memory_space<vmem>>, vector<16x256xf32>
    %25 = arith.mulf %22, %23 : vector<256x128xf32>
    %cst_18 = arith.constant dense<0.000000e+00> : vector<16x128xf32>
    %26 = tpu.matmul %24, %25, %cst_18 {dimension_numbers = #tpu.dot_dimension_numbers<[1], [0], [0], [1], [0, 0, 1, 1], [], []>} : vector<16x256xf32>, vector<256x128xf32>, vector<16x128xf32> -> vector<16x128xf32>
    %27 = arith.addf %18, %26 : vector<16x128xf32>
    %cst_19 = arith.constant 1.000000e-01 : f32
    %28 = vector.broadcast %cst_19 : f32 to vector<16x128xf32>
    %29 = arith.mulf %27, %28 : vector<16x128xf32>
    %30 = arith.addf %21, %29 : vector<16x128xf32>
    %c3_i32 = arith.constant 3 : i32
    %cst_20 = arith.constant dense<0.000000e+00> : vector<256x128xf32>
    %31 = tpu.matmul %2, %27, %cst_20 {dimension_numbers = #tpu.dot_dimension_numbers<[1], [0], [0], [1], [0, 0, 1, 1], [], []>} : vector<256x16xf32>, vector<16x128xf32>, vector<256x128xf32> -> vector<256x128xf32>
    %32 = tpu.concatenate %27, %27, %27, %27, %27, %27, %27, %27, %27, %27, %27, %27, %27, %27, %27, %27 in 0 : vector<16x128xf32>, vector<16x128xf32>, vector<16x128xf32>, vector<16x128xf32>, vector<16x128xf32>, vector<16x128xf32>, vector<16x128xf32>, vector<16x128xf32>, vector<16x128xf32>, vector<16x128xf32>, vector<16x128xf32>, vector<16x128xf32>, vector<16x128xf32>, vector<16x128xf32>, vector<16x128xf32>, vector<16x128xf32> -> vector<256x128xf32>
    %c0_21 = arith.constant 0 : index
    %c0_22 = arith.constant 0 : index
    %33 = vector.load %arg5[%c0_21, %c0_22] : memref<16x256xf32, #tpu.memory_space<vmem>>, vector<16x256xf32>
    %34 = arith.mulf %31, %32 : vector<256x128xf32>
    %cst_23 = arith.constant dense<0.000000e+00> : vector<16x128xf32>
    %35 = tpu.matmul %33, %34, %cst_23 {dimension_numbers = #tpu.dot_dimension_numbers<[1], [0], [0], [1], [0, 0, 1, 1], [], []>} : vector<16x256xf32>, vector<256x128xf32>, vector<16x128xf32> -> vector<16x128xf32>
    %36 = arith.addf %27, %35 : vector<16x128xf32>
    %cst_24 = arith.constant 1.000000e-01 : f32
    %37 = vector.broadcast %cst_24 : f32 to vector<16x128xf32>
    %38 = arith.mulf %36, %37 : vector<16x128xf32>
    %39 = arith.addf %30, %38 : vector<16x128xf32>
    %c4_i32 = arith.constant 4 : i32
    %cst_25 = arith.constant dense<0.000000e+00> : vector<256x128xf32>
    %40 = tpu.matmul %2, %36, %cst_25 {dimension_numbers = #tpu.dot_dimension_numbers<[1], [0], [0], [1], [0, 0, 1, 1], [], []>} : vector<256x16xf32>, vector<16x128xf32>, vector<256x128xf32> -> vector<256x128xf32>
    %41 = tpu.concatenate %36, %36, %36, %36, %36, %36, %36, %36, %36, %36, %36, %36, %36, %36, %36, %36 in 0 : vector<16x128xf32>, vector<16x128xf32>, vector<16x128xf32>, vector<16x128xf32>, vector<16x128xf32>, vector<16x128xf32>, vector<16x128xf32>, vector<16x128xf32>, vector<16x128xf32>, vector<16x128xf32>, vector<16x128xf32>, vector<16x128xf32>, vector<16x128xf32>, vector<16x128xf32>, vector<16x128xf32>, vector<16x128xf32> -> vector<256x128xf32>
    %c0_26 = arith.constant 0 : index
    %c0_27 = arith.constant 0 : index
    %42 = vector.load %arg5[%c0_26, %c0_27] : memref<16x256xf32, #tpu.memory_space<vmem>>, vector<16x256xf32>
    %43 = arith.mulf %40, %41 : vector<256x128xf32>
    %cst_28 = arith.constant dense<0.000000e+00> : vector<16x128xf32>
    %44 = tpu.matmul %42, %43, %cst_28 {dimension_numbers = #tpu.dot_dimension_numbers<[1], [0], [0], [1], [0, 0, 1, 1], [], []>} : vector<16x256xf32>, vector<256x128xf32>, vector<16x128xf32> -> vector<16x128xf32>
    %45 = arith.addf %36, %44 : vector<16x128xf32>
    %cst_29 = arith.constant 1.000000e-01 : f32
    %46 = vector.broadcast %cst_29 : f32 to vector<16x128xf32>
    %47 = arith.mulf %45, %46 : vector<16x128xf32>
    %48 = arith.addf %39, %47 : vector<16x128xf32>
    %c5_i32 = arith.constant 5 : i32
    %cst_30 = arith.constant dense<0.000000e+00> : vector<256x128xf32>
    %49 = tpu.matmul %2, %45, %cst_30 {dimension_numbers = #tpu.dot_dimension_numbers<[1], [0], [0], [1], [0, 0, 1, 1], [], []>} : vector<256x16xf32>, vector<16x128xf32>, vector<256x128xf32> -> vector<256x128xf32>
    %50 = tpu.concatenate %45, %45, %45, %45, %45, %45, %45, %45, %45, %45, %45, %45, %45, %45, %45, %45 in 0 : vector<16x128xf32>, vector<16x128xf32>, vector<16x128xf32>, vector<16x128xf32>, vector<16x128xf32>, vector<16x128xf32>, vector<16x128xf32>, vector<16x128xf32>, vector<16x128xf32>, vector<16x128xf32>, vector<16x128xf32>, vector<16x128xf32>, vector<16x128xf32>, vector<16x128xf32>, vector<16x128xf32>, vector<16x128xf32> -> vector<256x128xf32>
    %c0_31 = arith.constant 0 : index
    %c0_32 = arith.constant 0 : index
    %51 = vector.load %arg5[%c0_31, %c0_32] : memref<16x256xf32, #tpu.memory_space<vmem>>, vector<16x256xf32>
    %52 = arith.mulf %49, %50 : vector<256x128xf32>
    %cst_33 = arith.constant dense<0.000000e+00> : vector<16x128xf32>
    %53 = tpu.matmul %51, %52, %cst_33 {dimension_numbers = #tpu.dot_dimension_numbers<[1], [0], [0], [1], [0, 0, 1, 1], [], []>} : vector<16x256xf32>, vector<256x128xf32>, vector<16x128xf32> -> vector<16x128xf32>
    %54 = arith.addf %45, %53 : vector<16x128xf32>
    %cst_34 = arith.constant 1.000000e-01 : f32
    %55 = vector.broadcast %cst_34 : f32 to vector<16x128xf32>
    %56 = arith.mulf %54, %55 : vector<16x128xf32>
    %57 = arith.addf %48, %56 : vector<16x128xf32>
    %c6_i32 = arith.constant 6 : i32
    %cst_35 = arith.constant dense<0.000000e+00> : vector<256x128xf32>
    %58 = tpu.matmul %2, %54, %cst_35 {dimension_numbers = #tpu.dot_dimension_numbers<[1], [0], [0], [1], [0, 0, 1, 1], [], []>} : vector<256x16xf32>, vector<16x128xf32>, vector<256x128xf32> -> vector<256x128xf32>
    %59 = tpu.concatenate %54, %54, %54, %54, %54, %54, %54, %54, %54, %54, %54, %54, %54, %54, %54, %54 in 0 : vector<16x128xf32>, vector<16x128xf32>, vector<16x128xf32>, vector<16x128xf32>, vector<16x128xf32>, vector<16x128xf32>, vector<16x128xf32>, vector<16x128xf32>, vector<16x128xf32>, vector<16x128xf32>, vector<16x128xf32>, vector<16x128xf32>, vector<16x128xf32>, vector<16x128xf32>, vector<16x128xf32>, vector<16x128xf32> -> vector<256x128xf32>
    %c0_36 = arith.constant 0 : index
    %c0_37 = arith.constant 0 : index
    %60 = vector.load %arg5[%c0_36, %c0_37] : memref<16x256xf32, #tpu.memory_space<vmem>>, vector<16x256xf32>
    %61 = arith.mulf %58, %59 : vector<256x128xf32>
    %cst_38 = arith.constant dense<0.000000e+00> : vector<16x128xf32>
    %62 = tpu.matmul %60, %61, %cst_38 {dimension_numbers = #tpu.dot_dimension_numbers<[1], [0], [0], [1], [0, 0, 1, 1], [], []>} : vector<16x256xf32>, vector<256x128xf32>, vector<16x128xf32> -> vector<16x128xf32>
    %63 = arith.addf %54, %62 : vector<16x128xf32>
    %cst_39 = arith.constant 1.000000e-01 : f32
    %64 = vector.broadcast %cst_39 : f32 to vector<16x128xf32>
    %65 = arith.mulf %63, %64 : vector<16x128xf32>
    %66 = arith.addf %57, %65 : vector<16x128xf32>
    %c7_i32 = arith.constant 7 : i32
    %cst_40 = arith.constant dense<0.000000e+00> : vector<256x128xf32>
    %67 = tpu.matmul %2, %63, %cst_40 {dimension_numbers = #tpu.dot_dimension_numbers<[1], [0], [0], [1], [0, 0, 1, 1], [], []>} : vector<256x16xf32>, vector<16x128xf32>, vector<256x128xf32> -> vector<256x128xf32>
    %68 = tpu.concatenate %63, %63, %63, %63, %63, %63, %63, %63, %63, %63, %63, %63, %63, %63, %63, %63 in 0 : vector<16x128xf32>, vector<16x128xf32>, vector<16x128xf32>, vector<16x128xf32>, vector<16x128xf32>, vector<16x128xf32>, vector<16x128xf32>, vector<16x128xf32>, vector<16x128xf32>, vector<16x128xf32>, vector<16x128xf32>, vector<16x128xf32>, vector<16x128xf32>, vector<16x128xf32>, vector<16x128xf32>, vector<16x128xf32> -> vector<256x128xf32>
    %c0_41 = arith.constant 0 : index
    %c0_42 = arith.constant 0 : index
    %69 = vector.load %arg5[%c0_41, %c0_42] : memref<16x256xf32, #tpu.memory_space<vmem>>, vector<16x256xf32>
    %70 = arith.mulf %67, %68 : vector<256x128xf32>
    %cst_43 = arith.constant dense<0.000000e+00> : vector<16x128xf32>
    %71 = tpu.matmul %69, %70, %cst_43 {dimension_numbers = #tpu.dot_dimension_numbers<[1], [0], [0], [1], [0, 0, 1, 1], [], []>} : vector<16x256xf32>, vector<256x128xf32>, vector<16x128xf32> -> vector<16x128xf32>
    %72 = arith.addf %63, %71 : vector<16x128xf32>
    %cst_44 = arith.constant 1.000000e-01 : f32
    %73 = vector.broadcast %cst_44 : f32 to vector<16x128xf32>
    %74 = arith.mulf %72, %73 : vector<16x128xf32>
    %75 = arith.addf %66, %74 : vector<16x128xf32>
    %c8_i32 = arith.constant 8 : i32
    %cst_45 = arith.constant dense<0.000000e+00> : vector<256x128xf32>
    %76 = tpu.matmul %2, %72, %cst_45 {dimension_numbers = #tpu.dot_dimension_numbers<[1], [0], [0], [1], [0, 0, 1, 1], [], []>} : vector<256x16xf32>, vector<16x128xf32>, vector<256x128xf32> -> vector<256x128xf32>
    %77 = tpu.concatenate %72, %72, %72, %72, %72, %72, %72, %72, %72, %72, %72, %72, %72, %72, %72, %72 in 0 : vector<16x128xf32>, vector<16x128xf32>, vector<16x128xf32>, vector<16x128xf32>, vector<16x128xf32>, vector<16x128xf32>, vector<16x128xf32>, vector<16x128xf32>, vector<16x128xf32>, vector<16x128xf32>, vector<16x128xf32>, vector<16x128xf32>, vector<16x128xf32>, vector<16x128xf32>, vector<16x128xf32>, vector<16x128xf32> -> vector<256x128xf32>
    %c0_46 = arith.constant 0 : index
    %c0_47 = arith.constant 0 : index
    %78 = vector.load %arg5[%c0_46, %c0_47] : memref<16x256xf32, #tpu.memory_space<vmem>>, vector<16x256xf32>
    %79 = arith.mulf %76, %77 : vector<256x128xf32>
    %cst_48 = arith.constant dense<0.000000e+00> : vector<16x128xf32>
    %80 = tpu.matmul %78, %79, %cst_48 {dimension_numbers = #tpu.dot_dimension_numbers<[1], [0], [0], [1], [0, 0, 1, 1], [], []>} : vector<16x256xf32>, vector<256x128xf32>, vector<16x128xf32> -> vector<16x128xf32>
    %81 = arith.addf %72, %80 : vector<16x128xf32>
    %cst_49 = arith.constant 1.000000e-01 : f32
    %82 = vector.broadcast %cst_49 : f32 to vector<16x128xf32>
    %83 = arith.mulf %81, %82 : vector<16x128xf32>
    %84 = arith.addf %75, %83 : vector<16x128xf32>
    %c9_i32 = arith.constant 9 : i32
    %cst_50 = arith.constant dense<0.000000e+00> : vector<256x128xf32>
    %85 = tpu.matmul %2, %81, %cst_50 {dimension_numbers = #tpu.dot_dimension_numbers<[1], [0], [0], [1], [0, 0, 1, 1], [], []>} : vector<256x16xf32>, vector<16x128xf32>, vector<256x128xf32> -> vector<256x128xf32>
    %86 = tpu.concatenate %81, %81, %81, %81, %81, %81, %81, %81, %81, %81, %81, %81, %81, %81, %81, %81 in 0 : vector<16x128xf32>, vector<16x128xf32>, vector<16x128xf32>, vector<16x128xf32>, vector<16x128xf32>, vector<16x128xf32>, vector<16x128xf32>, vector<16x128xf32>, vector<16x128xf32>, vector<16x128xf32>, vector<16x128xf32>, vector<16x128xf32>, vector<16x128xf32>, vector<16x128xf32>, vector<16x128xf32>, vector<16x128xf32> -> vector<256x128xf32>
    %c0_51 = arith.constant 0 : index
    %c0_52 = arith.constant 0 : index
    %87 = vector.load %arg5[%c0_51, %c0_52] : memref<16x256xf32, #tpu.memory_space<vmem>>, vector<16x256xf32>
    %88 = arith.mulf %85, %86 : vector<256x128xf32>
    %cst_53 = arith.constant dense<0.000000e+00> : vector<16x128xf32>
    %89 = tpu.matmul %87, %88, %cst_53 {dimension_numbers = #tpu.dot_dimension_numbers<[1], [0], [0], [1], [0, 0, 1, 1], [], []>} : vector<16x256xf32>, vector<256x128xf32>, vector<16x128xf32> -> vector<16x128xf32>
    %90 = arith.addf %81, %89 : vector<16x128xf32>
    %cst_54 = arith.constant 1.000000e-01 : f32
    %91 = vector.broadcast %cst_54 : f32 to vector<16x128xf32>
    %92 = arith.mulf %90, %91 : vector<16x128xf32>
    %93 = arith.addf %84, %92 : vector<16x128xf32>
    %94 = arith.subf %93, %1 : vector<16x128xf32>
    %95 = arith.mulf %94, %94 : vector<16x128xf32>
    %cst_55 = arith.constant dense<0.000000e+00> : vector<128xf32>
    %96 = vector.multi_reduction <add>, %95, %cst_55 [0] : vector<16x128xf32> to vector<128xf32>
    %97 = vector.shape_cast %96 : vector<128xf32> to vector<1x128xf32>
    %98 = math.sqrt %97 : vector<1x128xf32>
    %99 = vector.shape_cast %98 : vector<1x128xf32> to vector<1x1x128xf32>
    %cst_56 = arith.constant dense<0.000000e+00> : vector<1xf32>
    %100 = vector.multi_reduction <add>, %99, %cst_56 [1, 2] : vector<1x1x128xf32> to vector<1xf32>
    %101 = vector.shape_cast %100 : vector<1xf32> to vector<1x1x1xf32>
    %102 = vector.extract %101[0, 0, 0] : f32 from vector<1x1x1xf32>
    %c0_i32_57 = arith.constant 0 : i32
    %103 = arith.cmpi eq, %arg1, %c0_i32_57 : i32
    %104 = arith.extui %103 : i1 to i32
    %c0_i32_58 = arith.constant 0 : i32
    %105 = arith.cmpi ne, %104, %c0_i32_58 : i32
    scf.if %105 {
      %cst_66 = arith.constant 0.000000e+00 : f32
      %119 = vector.broadcast %cst_66 : f32 to vector<8x128xf32>
      %c0_67 = arith.constant 0 : index
      %c0_68 = arith.constant 0 : index
      %120 = vector.load %arg6[%c0_67, %c0_68] : memref<8x128xf32, #tpu.memory_space<vmem>>, vector<8x128xf32>
      tpu.vector_store %arg6[%c0_67, %c0_68], %119 {strides = array<i32>} : memref<8x128xf32, #tpu.memory_space<vmem>>, vector<8x128xf32>,
    } else {
    }
    %106 = tpu.iota {dimensions = array<i32: 0>} : vector<8x128xi32>
    %107 = tpu.iota {dimensions = array<i32: 1>} : vector<8x128xi32>
    %c0_59 = arith.constant 0 : index
    %c0_60 = arith.constant 0 : index
    %108 = vector.load %arg6[%c0_59, %c0_60] : memref<8x128xf32, #tpu.memory_space<vmem>>, vector<8x128xf32>
    %c0_i32_61 = arith.constant 0 : i32
    %109 = vector.broadcast %c0_i32_61 : i32 to vector<8x128xi32>
    %110 = arith.cmpi eq, %106, %109 : vector<8x128xi32>
    %c0_i32_62 = arith.constant 0 : i32
    %111 = vector.broadcast %c0_i32_62 : i32 to vector<8x128xi32>
    %112 = arith.cmpi eq, %107, %111 : vector<8x128xi32>
    %113 = arith.andi %110, %112 : vector<8x128xi1>
    %cst_63 = arith.constant 0.000000e+00 : f32
    %114 = vector.broadcast %102 : f32 to vector<8x128xf32>
    %115 = vector.broadcast %cst_63 : f32 to vector<8x128xf32>
    %116 = arith.select %113, %114, %115 : vector<8x128xi1>, vector<8x128xf32>
    %117 = arith.addf %108, %116 : vector<8x128xf32>
    %c0_64 = arith.constant 0 : index
    %c0_65 = arith.constant 0 : index
    %118 = vector.load %arg6[%c0_64, %c0_65] : memref<8x128xf32, #tpu.memory_space<vmem>>, vector<8x128xf32>
    tpu.vector_store %arg6[%c0_64, %c0_65], %117 {strides = array<i32>} : memref<8x128xf32, #tpu.memory_space<vmem>>, vector<8x128xf32>,
    return
  }
  func.func @transform_0(%arg0: i32, %arg1: i32) -> (i32, i32) {
    %c1_i32 = arith.constant 1 : i32
    %0 = arith.muli %arg0, %c1_i32 : i32
    %1 = arith.addi %0, %arg1 : i32
    %c0_i32 = arith.constant 0 : i32
    %c0_i32_0 = arith.constant 0 : i32
    return %c0_i32, %1 : i32, i32
  }
  func.func @transform_1(%arg0: i32, %arg1: i32) -> (i32, i32) {
    %c1_i32 = arith.constant 1 : i32
    %0 = arith.muli %arg0, %c1_i32 : i32
    %1 = arith.addi %0, %arg1 : i32
    %c0_i32 = arith.constant 0 : i32
    %c0_i32_0 = arith.constant 0 : i32
    return %c0_i32, %1 : i32, i32
  }
  func.func @transform_2(%arg0: i32, %arg1: i32) -> (i32, i32) {
    %c0_i32 = arith.constant 0 : i32
    %c0_i32_0 = arith.constant 0 : i32
    %c0_i32_1 = arith.constant 0 : i32
    return %c0_i32, %c0_i32_0 : i32, i32
  }
  func.func @transform_3(%arg0: i32, %arg1: i32) -> (i32, i32) {
    %c0_i32 = arith.constant 0 : i32
    %c0_i32_0 = arith.constant 0 : i32
    %c0_i32_1 = arith.constant 0 : i32
    return %c0_i32, %c0_i32_0 : i32, i32
  }
  func.func @transform_4(%arg0: i32, %arg1: i32) -> (i32, i32) {
    %c0_i32 = arith.constant 0 : i32
    %c0_i32_0 = arith.constant 0 : i32
    return %arg0, %c0_i32 : i32, i32
  }
}

</mosaic_0001>

<bundles_post_ra>
// kernel: tpu_custom_call.1
= control target key start
LH: loop header
LB: loop body
LE: loop exit
PB: predicated region body
PF: predicated region fallthrough
CT: control target
= control target key end

     0   :  { %vm88_vm0 = vcmask 130048   ;;  %v5654_v2 = vmov 0.0   ;;  %s7300_s0 = inlined_call_operand.vmem [shape: f32[16,128], index: 0, kind: input, shape index: {}]   ;;  %s7301_s1 = inlined_call_operand.vmem [shape: f32[16,128], index: 1, kind: input, shape index: {}]   ;;  %s7302_s2 = inlined_call_operand.vmem [shape: f32[256,16], index: 2, kind: input, shape index: {}]   ;;  %s7303_s3 = inlined_call_operand.vmem [shape: f32[16,256], index: 3, kind: input, shape index: {}]   ;;  %s7304_s4 = inlined_call_operand.hbm [shape: f32[8,128], index: 4, kind: output, shape index: {}]  }
   0x1   :  { %v5684_v0 = vld [vmem:[%s7302_s2] sm:$0xff]  ;;  %v5689_v1 = vld [vmem:[%s7302_s2 + $0x8] sm:$0xff]  ;;  %4678 = vmatprep.subr.mxu0 %v5654_v2  ;;  %v5696_v3 = vld [vmem:[%s7302_s2 + $0x10] sm:$0xff] }
   0x2   :  { %4680 = vmatprep.mubr.msk.f32.mxu0 %vm88_vm0, %v5684_v0  ;;  %4679 = vmatpush3.msra.mxu0 %v5654_v2  ;;  %v5705_v4 = vld [vmem:[%s7302_s2 + $0x18] sm:$0xff]  ;;  %v5710_v5 = vld [vmem:[%s7302_s2 + $0x20] sm:$0xff]  ;;  %v5719_v6 = vld [vmem:[%s7302_s2 + $0x28] sm:$0xff] }
   0x3   :  { %4681 = vmatmul.mubr.msk.f32.vlgmr.msra.gmra.mrb[0].mxu0 %vm88_vm0, %v5689_v1  ;;  %v5724_v7 = vld [vmem:[%s7302_s2 + $0x30] sm:$0xff] }
   0x4   :  { %4683 = vmatprep.mubr.msk.f32.mxu0 %vm88_vm0, %v5696_v3 }
   0x7   :  { %4684 = vmatmul.mubr.msk.f32.gmra.mrb[2].mxu0 %vm88_vm0, %v5705_v4 }
   0x8   :  { %4686 = vmatprep.mubr.msk.f32.mxu0 %vm88_vm0, %v5710_v5 }
   0x9   :  { %9 = vsyncpa [#allocation3], 0  ;;  %v5733_v8 = vld [vmem:[%s7302_s2 + $0x38] sm:$0xff]  ;;  %v5738_v9 = vld [vmem:[%s7302_s2 + $0x40] sm:$0xff]  ;;  %vm3585_vm2 = vcmask 1040384   ;;  %s5655_s28 = smov [#allocation2]  }
   0xa   :  { %v5747_v10 = vld [vmem:[%s7302_s2 + $0x48] sm:$0xff]  ;;  %v5752_v11 = vld [vmem:[%s7302_s2 + $0x50] sm:$0xff]  ;;  %v5761_v12 = vld [vmem:[%s7302_s2 + $0x58] sm:$0xff]  ;;  %s3619_s29 = sshll.u32 %s5655_s28, 4  ;;  %s3620_s29 = int_to_ptr.vmem [resolvable:$true] %s3619_s29 }
   0xb   :  { %4687 = vmatmul.mubr.msk.f32.gmra.mrb[4].mxu0 %vm88_vm0, %v5719_v6  ;;  %v5766_v13 = vld [vmem:[%s7302_s2 + $0x60] sm:$0xff]  ;;  %v5775_v14 = vld [vmem:[%s7302_s2 + $0x68] sm:$0xff]  ;;  %v5780_v15 = vld [vmem:[%s7302_s2 + $0x70] sm:$0xff]  ;;  %s5630_s30 = scalar_lea.vmem %s3620_s29, 128  ;;  %p5635_p1 = scmp.lt.s32.totalorder %s3620_s29, %s3620_s29 }
   0xc   :  { %4689 = vmatprep.mubr.msk.f32.mxu0 %vm88_vm0, %v5724_v7  ;;  %v5789_v16 = vld [vmem:[%s7302_s2 + $0x78] sm:$0xff]  ;;  %v5794_v17 = vld [vmem:[%s7302_s2 + $0x80] sm:$0xff]  ;;  %v5803_v18 = vld [vmem:[%s7302_s2 + $0x88] sm:$0xff]  ;;  %p5631_p0 = scmp.ne.s32.totalorder %s3620_s29, %s5630_s30  ;;  %p5636_p2 = scmp.lt.s32.totalorder %s5630_s30, %s5630_s30 }
   0xd   :  { %v5808_v19 = vld [vmem:[%s7302_s2 + $0x90] sm:$0xff]  ;;  %v5817_v20 = vld [vmem:[%s7302_s2 + $0x98] sm:$0xff]  ;;  %v5822_v21 = vld [vmem:[%s7302_s2 + $0xa0] sm:$0xff] }
   0xe   :  { %v5831_v22 = vld [vmem:[%s7302_s2 + $0xa8] sm:$0xff]  ;;  %v5836_v23 = vld [vmem:[%s7302_s2 + $0xb0] sm:$0xff]  ;;  %v5845_v24 = vld [vmem:[%s7302_s2 + $0xb8] sm:$0xff]  ;;  %p5637_p3 = por %p5636_p2, %p5635_p1 }
   0xf   :  { %4690 = vmatmul.mubr.msk.f32.gmra.mrb[6].mxu0 %vm88_vm0, %v5733_v8  ;;  %v5850_v25 = vld [vmem:[%s7302_s2 + $0xc0] sm:$0xff]  ;;  %v5859_v26 = vld [vmem:[%s7302_s2 + $0xc8] sm:$0xff]  ;;  %v5864_v27 = vld [vmem:[%s7302_s2 + $0xd0] sm:$0xff] }
  0x10   :  { %4692 = vmatprep.mubr.msk.f32.mxu0 %vm88_vm0, %v5738_v9  ;;  %v5873_v28 = vld [vmem:[%s7302_s2 + $0xd8] sm:$0xff]  ;;  %v5878_v29 = vld [vmem:[%s7302_s2 + $0xe0] sm:$0xff]  ;;  %v5887_v30 = vld [vmem:[%s7302_s2 + $0xe8] sm:$0xff]  ;;  %p5638_p4 = pnand %p5637_p3, %p5631_p0 }
  0x11   :  { %v5892_v31 = vld [vmem:[%s7302_s2 + $0xf0] sm:$0xff]  ;;  %v5901_v32 = vld [vmem:[%s7302_s2 + $0xf8] sm:$0xff]  ;;  %v5908_v33 = vld [vmem:[%s7303_s3 + $0x8] sm:$0xff] }
  0x12   :  { %510 = vmatprep.mubr.f32.mxu1 %v5908_v33 }
  0x13   :  { %4693 = vmatmul.mubr.msk.f32.gmra.mrb[8].mxu0 %vm88_vm0, %v5747_v10 }
  0x14   :  { %4695 = vmatprep.mubr.msk.f32.mxu0 %vm88_vm0, %v5752_v11 }
  0x17   :  { %4696 = vmatmul.mubr.msk.f32.gmra.mrb[10].mxu0 %vm88_vm0, %v5761_v12 }
  0x18   :  { %4698 = vmatprep.mubr.msk.f32.mxu0 %vm88_vm0, %v5766_v13 }
  0x1b   :  { %4699 = vmatmul.mubr.msk.f32.gmra.mrb[12].mxu0 %vm88_vm0, %v5775_v14 }
  0x1c   :  { %4701 = vmatprep.mubr.msk.f32.mxu0 %vm88_vm0, %v5780_v15 }
  0x1f   :  { %4702 = vmatmul.mubr.msk.f32.gmra.mrb[14].mxu0 %vm88_vm0, %v5789_v16 }
  0x20   :  { %4704 = vmatprep.mubr.msk.f32.mxu0 %vm88_vm0, %v5794_v17 }
  0x23   :  { %4705 = vmatmul.mubr.msk.f32.gmra.mrb[16].mxu0 %vm88_vm0, %v5803_v18 }
  0x24   :  { %4707 = vmatprep.mubr.msk.f32.mxu0 %vm88_vm0, %v5808_v19 }
  0x27   :  { %4708 = vmatmul.mubr.msk.f32.gmra.mrb[18].mxu0 %vm88_vm0, %v5817_v20 }
  0x28   :  { %4710 = vmatprep.mubr.msk.f32.mxu0 %vm88_vm0, %v5822_v21 }
  0x2b   :  { %4711 = vmatmul.mubr.msk.f32.gmra.mrb[20].mxu0 %vm88_vm0, %v5831_v22 }
  0x2c   :  { %4713 = vmatprep.mubr.msk.f32.mxu0 %vm88_vm0, %v5836_v23 }
  0x2f   :  { %4714 = vmatmul.mubr.msk.f32.gmra.mrb[22].mxu0 %vm88_vm0, %v5845_v24 }
  0x30   :  { %4716 = vmatprep.mubr.msk.f32.mxu0 %vm88_vm0, %v5850_v25 }
  0x33   :  { %4717 = vmatmul.mubr.msk.f32.gmra.mrb[24].mxu0 %vm88_vm0, %v5859_v26 }
  0x34   :  { %4719 = vmatprep.mubr.msk.f32.mxu0 %vm88_vm0, %v5864_v27 }
  0x37   :  { %4720 = vmatmul.mubr.msk.f32.gmra.mrb[26].mxu0 %vm88_vm0, %v5873_v28 }
  0x38   :  { %4722 = vmatprep.mubr.msk.f32.mxu0 %vm88_vm0, %v5878_v29 }
  0x3b   :  { %4723 = vmatmul.mubr.msk.f32.gmra.mrb[28].mxu0 %vm88_vm0, %v5887_v30 }
  0x3c   :  { %4725 = vmatprep.mubr.msk.f32.mxu0 %vm88_vm0, %v5892_v31 }
  0x3f   :  { %4726 = vmatmul.mubr.msk.f32.gmra.mrb[30].mxu0 %vm88_vm0, %v5901_v32 }
  0x40   :  { %846 = vmatprep.mubr.f32.mxu0 %v5908_v33 }
  0xd6   :  { %v4682_v34 = vpop.f32.mrb[0].mxu0 }
  0xd7   :  { %v415_v35 = vmul.f32 0.0, %v4682_v34  ;;  %v251_v36 = vpop.f32.mrb[1].mxu0 }
  0xd8   :  { %v414_v37 = vmul.f32 0.0, %v251_v36 }
  0xda   :  { %v4685_v38 = vpop.f32.mrb[2].mxu0  ;;  %v5198_v39 = vpack.c.bf16 %v415_v35, %v414_v37 }
  0xdb   :  { %v417_v40 = vmul.f32 0.0, %v4685_v38  ;;  %v261_v41 = vpop.f32.mrb[3].mxu0 }
  0xdc   :  { %v416_v42 = vmul.f32 0.0, %v261_v41 }
  0xde   :  { %v5202_v43 = vpack.c.bf16 %v417_v40, %v416_v42  ;;  %v4688_v44 = vpop.f32.mrb[4].mxu0 }
  0xdf   :  { %v419_v45 = vmul.f32 0.0, %v4688_v44  ;;  %v271_v46 = vpop.f32.mrb[5].mxu0 }
  0xe0   :  { %v418_v47 = vmul.f32 0.0, %v271_v46 }
  0xe2   :  { %v5206_v48 = vpack.c.bf16 %v419_v45, %v418_v47  ;;  %v4691_v49 = vpop.f32.mrb[6].mxu0 }
  0xe3   :  { %v421_v50 = vmul.f32 0.0, %v4691_v49  ;;  %v281_v51 = vpop.f32.mrb[7].mxu0 }
  0xe4   :  { %v420_v52 = vmul.f32 0.0, %v281_v51 }
  0xe6   :  { %v5210_v53 = vpack.c.bf16 %v421_v50, %v420_v52  ;;  %v4694_v54 = vpop.f32.mrb[8].mxu0 }
  0xe7   :  { %v423_v55 = vmul.f32 0.0, %v4694_v54  ;;  %v291_v56 = vpop.f32.mrb[9].mxu0 }
  0xe8   :  { %v422_v57 = vmul.f32 0.0, %v291_v56 }
  0xea   :  { %v5214_v58 = vpack.c.bf16 %v423_v55, %v422_v57  ;;  %v4697_v59 = vpop.f32.mrb[10].mxu0 }
  0xeb   :  { %v425_v60 = vmul.f32 0.0, %v4697_v59  ;;  %v301_v61 = vpop.f32.mrb[11].mxu0 }
  0xec   :  { %v424_v62 = vmul.f32 0.0, %v301_v61 }
  0xee   :  { %v5218_v63 = vpack.c.bf16 %v425_v60, %v424_v62  ;;  %v4700_v2 = vpop.f32.mrb[12].mxu0 }
  0xef   :  { %v427_v34 = vmul.f32 0.0, %v4700_v2  ;;  %v311_v35 = vpop.f32.mrb[13].mxu0 }
  0xf0   :  { %v426_v36 = vmul.f32 0.0, %v311_v35 }
  0xf2   :  { %v5222_v37 = vpack.c.bf16 %v427_v34, %v426_v36  ;;  %v4703_v38 = vpop.f32.mrb[14].mxu0 }
  0xf3   :  { %v429_v40 = vmul.f32 0.0, %v4703_v38  ;;  %v321_v41 = vpop.f32.mrb[15].mxu0 }
  0xf4   :  { %v428_v42 = vmul.f32 0.0, %v321_v41 }
  0xf6   :  { %v5226_v44 = vpack.c.bf16 %v429_v40, %v428_v42  ;;  %v4706_v45 = vpop.f32.mrb[16].mxu0 }
  0xf7   :  { %v431_v46 = vmul.f32 0.0, %v4706_v45  ;;  %v331_v47 = vpop.f32.mrb[17].mxu0 }
  0xf8   :  { %v430_v49 = vmul.f32 0.0, %v331_v47 }
  0xfa   :  { %v4709_v50 = vpop.f32.mrb[18].mxu0  ;;  %v5196_v51 = vpack.c.bf16 %v431_v46, %v430_v49 }
  0xfb   :  { %v433_v52 = vmul.f32 0.0, %v4709_v50  ;;  %v341_v54 = vpop.f32.mrb[19].mxu0 }
  0xfc   :  { %v432_v55 = vmul.f32 0.0, %v341_v54  ;;  %5197 = vmatprep.subr.bf16.mxu1 %v5196_v51 }
  0xfd   :  { %5199 = vmatpush3.bf16.msra.mxu1 %v5198_v39 }
  0xfe   :  { %v5200_v56 = vpack.c.bf16 %v433_v52, %v432_v55  ;;  %v4712_v57 = vpop.f32.mrb[20].mxu0 }
  0xff   :  { %v435_v59 = vmul.f32 0.0, %v4712_v57  ;;  %v351_v60 = vpop.f32.mrb[21].mxu0 }
 0x100   :  { %v434_v61 = vmul.f32 0.0, %v351_v60  ;;  %5201 = vmatprep.subr.bf16.mxu1 %v5200_v56 }
 0x101   :  { %5203 = vmatpush3.bf16.msra.mxu1 %v5202_v43 }
 0x102   :  { %v5204_v62 = vpack.c.bf16 %v435_v59, %v434_v61  ;;  %v4715_v2 = vpop.f32.mrb[22].mxu0  ;;  %v5920_v61 = vld [vmem:[%s7303_s3 + $0x18] sm:$0xff] }
 0x103   :  { %v437_v34 = vmul.f32 0.0, %v4715_v2  ;;  %v361_v35 = vpop.f32.mrb[23].mxu0 }
 0x104   :  { %v436_v36 = vmul.f32 0.0, %v361_v35  ;;  %5205 = vmatprep.subr.bf16.mxu1 %v5204_v62 }
 0x105   :  { %5207 = vmatpush3.bf16.msra.mxu1 %v5206_v48 }
 0x106   :  { %v5208_v38 = vpack.c.bf16 %v437_v34, %v436_v36  ;;  %v4718_v40 = vpop.f32.mrb[24].mxu0 }
 0x107   :  { %v439_v41 = vmul.f32 0.0, %v4718_v40  ;;  %v371_v42 = vpop.f32.mrb[25].mxu0 }
 0x108   :  { %v438_v45 = vmul.f32 0.0, %v371_v42  ;;  %5209 = vmatprep.subr.bf16.mxu1 %v5208_v38 }
 0x109   :  { %5211 = vmatpush3.bf16.msra.mxu1 %v5210_v53 }
 0x10a   :  { %v5212_v39 = vpack.c.bf16 %v439_v41, %v438_v45  ;;  %v4721_v46 = vpop.f32.mrb[26].mxu0 }
 0x10b   :  { %v441_v47 = vmul.f32 0.0, %v4721_v46  ;;  %v381_v49 = vpop.f32.mrb[27].mxu0 }
 0x10c   :  { %v440_v50 = vmul.f32 0.0, %v381_v49  ;;  %5213 = vmatprep.subr.bf16.mxu1 %v5212_v39 }
 0x10d   :  { %5215 = vmatpush3.bf16.msra.mxu1 %v5214_v58  ;;  %v5915_v58 = vld [vmem:[%s7303_s3] sm:$0xff] }
 0x10e   :  { %v5216_v43 = vpack.c.bf16 %v441_v47, %v440_v50  ;;  %v4724_v51 = vpop.f32.mrb[28].mxu0 }
 0x10f   :  { %v443_v52 = vmul.f32 0.0, %v4724_v51  ;;  %v391_v54 = vpop.f32.mrb[29].mxu0 }
 0x110   :  { %v442_v55 = vmul.f32 0.0, %v391_v54  ;;  %5217 = vmatprep.subr.bf16.mxu1 %v5216_v43 }
 0x111   :  { %5219 = vmatpush3.bf16.msra.mxu1 %v5218_v63  ;;  %v5927_v63 = vld [vmem:[%s7303_s3 + $0x10] sm:$0xff] }
 0x112   :  { %v5220_v48 = vpack.c.bf16 %v443_v52, %v442_v55  ;;  %v4727_v56 = vpop.f32.mrb[30].mxu0 }
 0x113   :  { %v445_v57 = vmul.f32 0.0, %v4727_v56  ;;  %v401_v59 = vpop.f32.mrb[31].mxu0 }
 0x114   :  { %v444_v60 = vmul.f32 0.0, %v401_v59  ;;  %5221 = vmatprep.subr.bf16.mxu1 %v5220_v48 }
 0x115   :  { %5223 = vmatpush3.bf16.msra.mxu1 %v5222_v37 }
 0x116   :  { %v5224_v53 = vpack.c.bf16 %v445_v57, %v444_v60 }
 0x118   :  { %5225 = vmatprep.subr.bf16.mxu1 %v5224_v53 }
 0x119   :  { %5227 = vmatpush3.bf16.msra.mxu1 %v5226_v44 }
 0x11c   :  { %511 = vmatmul.mubr.f32.vlgmr.msra.gmra.mrb[0].mxu1 %v5915_v58 }
 0x11d   :  { %515 = vmatprep.mubr.f32.mxu1 %v5920_v61 }
 0x120   :  { %516 = vmatmul.mubr.f32.gmra.mrb[2].mxu1 %v5927_v63 }
 0x121   :  { %4732 = vmatprep.mubr.msk.f32.mxu1 %vm88_vm0, %v5684_v0 }
 0x1ef   :  { %v4024_v37 = vpop.f32.mrb[0].mxu1 }
 0x1f0   :  { %v4025_v44 = vpop.f32.mrb[1].mxu1 }
 0x1f1   :  { %v5932_v62 = vadd.f32 %v4025_v44, %v4024_v37 }
 0x1f3   :  { %v4027_v2 = vpop.f32.mrb[2].mxu1 }
 0x1f4   :  { %v4028_v34 = vpop.f32.mrb[3].mxu1 }
 0x1f5   :  { %v5934_v35 = vadd.f32 %v4028_v34, %v4027_v2 }
 0x1f7   :  { %v5228_v36 = vpack.c.bf16 %v5934_v35, %v5932_v62 }
 0x1f9   :  { %5229 = vmatprep.subr.bf16.mxu1 %v5228_v36 }
 0x1fa   :  { %5231 = vmatpush3.bf16.msra.mxu1 %v5228_v36 }
 0x1fd   :  { %4733 = vmatmul.mubr.msk.f32.vlgmr.msra.gmra.mrb[4].mxu1 %vm88_vm0, %v5689_v1 }
 0x1fe   :  { %4735 = vmatprep.mubr.msk.f32.mxu1 %vm88_vm0, %v5696_v3 }
 0x201   :  { %4736 = vmatmul.mubr.msk.f32.gmra.mrb[6].mxu1 %vm88_vm0, %v5705_v4 }
 0x202   :  { %4738 = vmatprep.mubr.msk.f32.mxu1 %vm88_vm0, %v5710_v5 }
 0x205   :  { %4739 = vmatmul.mubr.msk.f32.gmra.mrb[8].mxu1 %vm88_vm0, %v5719_v6 }
 0x206   :  { %4741 = vmatprep.mubr.msk.f32.mxu1 %vm88_vm0, %v5724_v7 }
 0x209   :  { %4742 = vmatmul.mubr.msk.f32.gmra.mrb[10].mxu1 %vm88_vm0, %v5733_v8 }
 0x20a   :  { %4744 = vmatprep.mubr.msk.f32.mxu1 %vm88_vm0, %v5738_v9 }
 0x20d   :  { %4745 = vmatmul.mubr.msk.f32.gmra.mrb[12].mxu1 %vm88_vm0, %v5747_v10 }
 0x20e   :  { %4747 = vmatprep.mubr.msk.f32.mxu1 %vm88_vm0, %v5752_v11 }
 0x211   :  { %4748 = vmatmul.mubr.msk.f32.gmra.mrb[14].mxu1 %vm88_vm0, %v5761_v12 }
 0x212   :  { %4750 = vmatprep.mubr.msk.f32.mxu1 %vm88_vm0, %v5766_v13 }
 0x215   :  { %4751 = vmatmul.mubr.msk.f32.gmra.mrb[16].mxu1 %vm88_vm0, %v5775_v14 }
 0x216   :  { %4753 = vmatprep.mubr.msk.f32.mxu1 %vm88_vm0, %v5780_v15 }
 0x219   :  { %4754 = vmatmul.mubr.msk.f32.gmra.mrb[18].mxu1 %vm88_vm0, %v5789_v16 }
 0x21a   :  { %4756 = vmatprep.mubr.msk.f32.mxu1 %vm88_vm0, %v5794_v17 }
 0x21d   :  { %4757 = vmatmul.mubr.msk.f32.gmra.mrb[20].mxu1 %vm88_vm0, %v5803_v18 }
 0x21e   :  { %4759 = vmatprep.mubr.msk.f32.mxu1 %vm88_vm0, %v5808_v19 }
 0x221   :  { %4760 = vmatmul.mubr.msk.f32.gmra.mrb[22].mxu1 %vm88_vm0, %v5817_v20 }
 0x222   :  { %4762 = vmatprep.mubr.msk.f32.mxu1 %vm88_vm0, %v5822_v21 }
 0x225   :  { %4763 = vmatmul.mubr.msk.f32.gmra.mrb[24].mxu1 %vm88_vm0, %v5831_v22 }
 0x226   :  { %4765 = vmatprep.mubr.msk.f32.mxu1 %vm88_vm0, %v5836_v23 }
 0x229   :  { %4766 = vmatmul.mubr.msk.f32.gmra.mrb[26].mxu1 %vm88_vm0, %v5845_v24 }
 0x22a   :  { %4768 = vmatprep.mubr.msk.f32.mxu1 %vm88_vm0, %v5850_v25 }
 0x22d   :  { %4769 = vmatmul.mubr.msk.f32.gmra.mrb[28].mxu1 %vm88_vm0, %v5859_v26 }
 0x22e   :  { %4771 = vmatprep.mubr.msk.f32.mxu1 %vm88_vm0, %v5864_v27 }
 0x231   :  { %4772 = vmatmul.mubr.msk.f32.gmra.mrb[30].mxu1 %vm88_vm0, %v5873_v28 }
 0x232   :  { %4774 = vmatprep.mubr.msk.f32.mxu1 %vm88_vm0, %v5878_v29 }
 0x235   :  { %4775 = vmatmul.mubr.msk.f32.gmra.mrb[32].mxu1 %vm88_vm0, %v5887_v30 }
 0x236   :  { %4777 = vmatprep.mubr.msk.f32.mxu1 %vm88_vm0, %v5892_v31 }
 0x239   :  { %4778 = vmatmul.mubr.msk.f32.gmra.mrb[34].mxu1 %vm88_vm0, %v5901_v32 }
 0x23a   :  { %1184 = vmatprep.mubr.f32.mxu1 %v5908_v33 }
 0x2d0   :  { %v4734_v38 = vpop.f32.mrb[4].mxu1 }
 0x2d1   :  { %v751_v40 = vmul.f32 %v4734_v38, %v5934_v35  ;;  %v591_v41 = vpop.f32.mrb[5].mxu1 }
 0x2d2   :  { %v750_v42 = vmul.f32 %v5932_v62, %v591_v41 }
 0x2d4   :  { %v5234_v45 = vpack.c.bf16 %v751_v40, %v750_v42  ;;  %v4737_v39 = vpop.f32.mrb[6].mxu1 }
 0x2d5   :  { %v753_v46 = vmul.f32 %v4737_v39, %v5934_v35  ;;  %v601_v47 = vpop.f32.mrb[7].mxu1 }
 0x2d6   :  { %v752_v49 = vmul.f32 %v5932_v62, %v601_v47 }
 0x2d8   :  { %v5238_v50 = vpack.c.bf16 %v753_v46, %v752_v49  ;;  %v4740_v43 = vpop.f32.mrb[8].mxu1 }
 0x2d9   :  { %v755_v51 = vmul.f32 %v4740_v43, %v5934_v35  ;;  %v611_v52 = vpop.f32.mrb[9].mxu1 }
 0x2da   :  { %v754_v54 = vmul.f32 %v5932_v62, %v611_v52 }
 0x2dc   :  { %v5242_v55 = vpack.c.bf16 %v755_v51, %v754_v54  ;;  %v4743_v48 = vpop.f32.mrb[10].mxu1 }
 0x2dd   :  { %v757_v56 = vmul.f32 %v4743_v48, %v5934_v35  ;;  %v621_v57 = vpop.f32.mrb[11].mxu1 }
 0x2de   :  { %v756_v59 = vmul.f32 %v5932_v62, %v621_v57 }
 0x2e0   :  { %v5246_v60 = vpack.c.bf16 %v757_v56, %v756_v59  ;;  %v4746_v53 = vpop.f32.mrb[12].mxu1 }
 0x2e1   :  { %v759_v37 = vmul.f32 %v4746_v53, %v5934_v35  ;;  %v631_v44 = vpop.f32.mrb[13].mxu1 }
 0x2e2   :  { %v758_v2 = vmul.f32 %v5932_v62, %v631_v44 }
 0x2e4   :  { %v5250_v34 = vpack.c.bf16 %v759_v37, %v758_v2  ;;  %v4749_v36 = vpop.f32.mrb[14].mxu1 }
 0x2e5   :  { %v761_v38 = vmul.f32 %v4749_v36, %v5934_v35  ;;  %v641_v40 = vpop.f32.mrb[15].mxu1 }
 0x2e6   :  { %v760_v41 = vmul.f32 %v5932_v62, %v641_v40 }
 0x2e8   :  { %v5254_v42 = vpack.c.bf16 %v761_v38, %v760_v41  ;;  %v4752_v39 = vpop.f32.mrb[16].mxu1 }
 0x2e9   :  { %v763_v46 = vmul.f32 %v4752_v39, %v5934_v35  ;;  %v651_v47 = vpop.f32.mrb[17].mxu1 }
 0x2ea   :  { %v762_v49 = vmul.f32 %v5932_v62, %v651_v47 }
 0x2ec   :  { %v5258_v43 = vpack.c.bf16 %v763_v46, %v762_v49  ;;  %v4755_v51 = vpop.f32.mrb[18].mxu1 }
 0x2ed   :  { %v765_v52 = vmul.f32 %v4755_v51, %v5934_v35  ;;  %v661_v54 = vpop.f32.mrb[19].mxu1 }
 0x2ee   :  { %v764_v48 = vmul.f32 %v5932_v62, %v661_v54 }
 0x2f0   :  { %v5262_v56 = vpack.c.bf16 %v765_v52, %v764_v48  ;;  %v4758_v57 = vpop.f32.mrb[20].mxu1 }
 0x2f1   :  { %v767_v59 = vmul.f32 %v4758_v57, %v5934_v35  ;;  %v671_v53 = vpop.f32.mrb[21].mxu1 }
 0x2f2   :  { %v766_v37 = vmul.f32 %v5932_v62, %v671_v53 }
 0x2f4   :  { %v5232_v44 = vpack.c.bf16 %v767_v59, %v766_v37  ;;  %v4761_v2 = vpop.f32.mrb[22].mxu1 }
 0x2f5   :  { %v769_v36 = vmul.f32 %v4761_v2, %v5934_v35  ;;  %v681_v38 = vpop.f32.mrb[23].mxu1 }
 0x2f6   :  { %v768_v40 = vmul.f32 %v5932_v62, %v681_v38  ;;  %5233 = vmatprep.subr.bf16.mxu0 %v5232_v44 }
 0x2f7   :  { %5235 = vmatpush3.bf16.msra.mxu0 %v5234_v45 }
 0x2f8   :  { %v5236_v41 = vpack.c.bf16 %v769_v36, %v768_v40  ;;  %v4764_v39 = vpop.f32.mrb[24].mxu1 }
 0x2f9   :  { %v771_v46 = vmul.f32 %v4764_v39, %v5934_v35  ;;  %v691_v47 = vpop.f32.mrb[25].mxu1 }
 0x2fa   :  { %v770_v49 = vmul.f32 %v5932_v62, %v691_v47  ;;  %5237 = vmatprep.subr.bf16.mxu0 %v5236_v41 }
 0x2fb   :  { %5239 = vmatpush3.bf16.msra.mxu0 %v5238_v50 }
 0x2fc   :  { %v5240_v51 = vpack.c.bf16 %v771_v46, %v770_v49  ;;  %v4767_v52 = vpop.f32.mrb[26].mxu1 }
 0x2fd   :  { %v773_v54 = vmul.f32 %v4767_v52, %v5934_v35  ;;  %v701_v48 = vpop.f32.mrb[27].mxu1 }
 0x2fe   :  { %v772_v57 = vmul.f32 %v5932_v62, %v701_v48  ;;  %5241 = vmatprep.subr.bf16.mxu0 %v5240_v51 }
 0x2ff   :  { %5243 = vmatpush3.bf16.msra.mxu0 %v5242_v55 }
 0x300   :  { %v5244_v59 = vpack.c.bf16 %v773_v54, %v772_v57  ;;  %v4770_v45 = vpop.f32.mrb[28].mxu1 }
 0x301   :  { %v775_v53 = vmul.f32 %v4770_v45, %v5934_v35  ;;  %v711_v37 = vpop.f32.mrb[29].mxu1 }
 0x302   :  { %v774_v44 = vmul.f32 %v5932_v62, %v711_v37  ;;  %5245 = vmatprep.subr.bf16.mxu0 %v5244_v59 }
 0x303   :  { %5247 = vmatpush3.bf16.msra.mxu0 %v5246_v60 }
 0x304   :  { %v5248_v2 = vpack.c.bf16 %v775_v53, %v774_v44  ;;  %v4773_v50 = vpop.f32.mrb[30].mxu1 }
 0x305   :  { %v777_v36 = vmul.f32 %v4773_v50, %v5934_v35  ;;  %v721_v38 = vpop.f32.mrb[31].mxu1 }
 0x306   :  { %v776_v40 = vmul.f32 %v5932_v62, %v721_v38  ;;  %5249 = vmatprep.subr.bf16.mxu0 %v5248_v2 }
 0x307   :  { %5251 = vmatpush3.bf16.msra.mxu0 %v5250_v34 }
 0x308   :  { %v5252_v41 = vpack.c.bf16 %v777_v36, %v776_v40  ;;  %v4776_v55 = vpop.f32.mrb[32].mxu1 }
 0x309   :  { %v779_v39 = vmul.f32 %v4776_v55, %v5934_v35  ;;  %v731_v46 = vpop.f32.mrb[33].mxu1 }
 0x30a   :  { %v778_v47 = vmul.f32 %v5932_v62, %v731_v46  ;;  %5253 = vmatprep.subr.bf16.mxu0 %v5252_v41 }
 0x30b   :  { %5255 = vmatpush3.bf16.msra.mxu0 %v5254_v42 }
 0x30c   :  { %v5256_v49 = vpack.c.bf16 %v779_v39, %v778_v47  ;;  %v4779_v60 = vpop.f32.mrb[34].mxu1 }
 0x30d   :  { %v781_v51 = vmul.f32 %v4779_v60, %v5934_v35  ;;  %v741_v52 = vpop.f32.mrb[35].mxu1 }
 0x30e   :  { %v780_v54 = vmul.f32 %v5932_v62, %v741_v52  ;;  %5257 = vmatprep.subr.bf16.mxu0 %v5256_v49 }
 0x30f   :  { %5259 = vmatpush3.bf16.msra.mxu0 %v5258_v43 }
 0x310   :  { %v5260_v48 = vpack.c.bf16 %v781_v51, %v780_v54 }
 0x312   :  { %5261 = vmatprep.subr.bf16.mxu0 %v5260_v48 }
 0x313   :  { %5263 = vmatpush3.bf16.msra.mxu0 %v5262_v56 }
 0x316   :  { %847 = vmatmul.mubr.f32.vlgmr.msra.gmra.mrb[32].mxu0 %v5915_v58 }
 0x317   :  { %851 = vmatprep.mubr.f32.mxu0 %v5920_v61 }
 0x31a   :  { %852 = vmatmul.mubr.f32.gmra.mrb[34].mxu0 %v5927_v63 }
 0x31b   :  { %4784 = vmatprep.mubr.msk.f32.mxu0 %vm88_vm0, %v5684_v0 }
 0x3e9   :  { %v4096_v34 = vpop.f32.mrb[32].mxu0 }
 0x3ea   :  { %v4097_v42 = vpop.f32.mrb[33].mxu0 }
 0x3eb   :  { %v4098_v57 = vadd.f32 %v4097_v42, %v4096_v34 }
 0x3ed   :  { %v4099_v59 = vpop.f32.mrb[34].mxu0  ;;  %v6039_v43 = vadd.f32 %v4098_v57, %v5932_v62 }
 0x3ee   :  { %v4100_v45 = vpop.f32.mrb[35].mxu0 }
 0x3ef   :  { %v4101_v53 = vadd.f32 %v4100_v45, %v4099_v59 }
 0x3f1   :  { %v6042_v56 = vadd.f32 %v4101_v53, %v5934_v35 }
 0x3f3   :  { %7312 = vst [vmem:[#allocation5_spill] sm:$0xff] %v6042_v56  ;;  %v5264_v37 = vpack.c.bf16 %v6042_v56, %v6039_v43 }
 0x3f5   :  { %5265 = vmatprep.subr.bf16.mxu0 %v5264_v37 }
 0x3f6   :  { %5267 = vmatpush3.bf16.msra.mxu0 %v5264_v37 }
 0x3f9   :  { %4785 = vmatmul.mubr.msk.f32.vlgmr.msra.gmra.mrb[36].mxu0 %vm88_vm0, %v5689_v1 }
 0x3fa   :  { %4787 = vmatprep.mubr.msk.f32.mxu0 %vm88_vm0, %v5696_v3 }
 0x3fd   :  { %4788 = vmatmul.mubr.msk.f32.gmra.mrb[38].mxu0 %vm88_vm0, %v5705_v4 }
 0x3fe   :  { %4790 = vmatprep.mubr.msk.f32.mxu0 %vm88_vm0, %v5710_v5 }
 0x401   :  { %4791 = vmatmul.mubr.msk.f32.gmra.mrb[40].mxu0 %vm88_vm0, %v5719_v6 }
 0x402   :  { %4793 = vmatprep.mubr.msk.f32.mxu0 %vm88_vm0, %v5724_v7 }
 0x405   :  { %4794 = vmatmul.mubr.msk.f32.gmra.mrb[42].mxu0 %vm88_vm0, %v5733_v8 }
 0x406   :  { %4796 = vmatprep.mubr.msk.f32.mxu0 %vm88_vm0, %v5738_v9 }
 0x409   :  { %4797 = vmatmul.mubr.msk.f32.gmra.mrb[44].mxu0 %vm88_vm0, %v5747_v10 }
 0x40a   :  { %4799 = vmatprep.mubr.msk.f32.mxu0 %vm88_vm0, %v5752_v11 }
 0x40d   :  { %4800 = vmatmul.mubr.msk.f32.gmra.mrb[46].mxu0 %vm88_vm0, %v5761_v12 }
 0x40e   :  { %4802 = vmatprep.mubr.msk.f32.mxu0 %vm88_vm0, %v5766_v13 }
 0x411   :  { %4803 = vmatmul.mubr.msk.f32.gmra.mrb[48].mxu0 %vm88_vm0, %v5775_v14 }
 0x412   :  { %4805 = vmatprep.mubr.msk.f32.mxu0 %vm88_vm0, %v5780_v15 }
 0x415   :  { %4806 = vmatmul.mubr.msk.f32.gmra.mrb[50].mxu0 %vm88_vm0, %v5789_v16 }
 0x416   :  { %4808 = vmatprep.mubr.msk.f32.mxu0 %vm88_vm0, %v5794_v17 }
 0x419   :  { %4809 = vmatmul.mubr.msk.f32.gmra.mrb[52].mxu0 %vm88_vm0, %v5803_v18 }
 0x41a   :  { %4811 = vmatprep.mubr.msk.f32.mxu0 %vm88_vm0, %v5808_v19 }
 0x41d   :  { %4812 = vmatmul.mubr.msk.f32.gmra.mrb[54].mxu0 %vm88_vm0, %v5817_v20 }
 0x41e   :  { %4814 = vmatprep.mubr.msk.f32.mxu0 %vm88_vm0, %v5822_v21 }
 0x421   :  { %4815 = vmatmul.mubr.msk.f32.gmra.mrb[56].mxu0 %vm88_vm0, %v5831_v22 }
 0x422   :  { %4817 = vmatprep.mubr.msk.f32.mxu0 %vm88_vm0, %v5836_v23 }
 0x425   :  { %4818 = vmatmul.mubr.msk.f32.gmra.mrb[58].mxu0 %vm88_vm0, %v5845_v24 }
 0x426   :  { %4820 = vmatprep.mubr.msk.f32.mxu0 %vm88_vm0, %v5850_v25 }
 0x429   :  { %4821 = vmatmul.mubr.msk.f32.gmra.mrb[60].mxu0 %vm88_vm0, %v5859_v26 }
 0x42a   :  { %4823 = vmatprep.mubr.msk.f32.mxu0 %vm88_vm0, %v5864_v27 }
 0x42d   :  { %4824 = vmatmul.mubr.msk.f32.gmra.mrb[62].mxu0 %vm88_vm0, %v5873_v28 }
 0x42e   :  { %4826 = vmatprep.mubr.msk.f32.mxu0 %vm88_vm0, %v5878_v29 }
 0x431   :  { %4827 = vmatmul.mubr.msk.f32.gmra.mrb[64].mxu0 %vm88_vm0, %v5887_v30 }
 0x432   :  { %4829 = vmatprep.mubr.msk.f32.mxu0 %vm88_vm0, %v5892_v31 }
 0x435   :  { %4830 = vmatmul.mubr.msk.f32.gmra.mrb[66].mxu0 %vm88_vm0, %v5901_v32 }
 0x436   :  { %1522 = vmatprep.mubr.f32.mxu0 %v5908_v33 }
 0x4cc   :  { %v4786_v44 = vpop.f32.mrb[36].mxu0 }
 0x4cd   :  { %v1089_v2 = vmul.f32 %v4786_v44, %v6042_v56  ;;  %v929_v50 = vpop.f32.mrb[37].mxu0 }
 0x4ce   :  { %v1088_v36 = vmul.f32 %v929_v50, %v6039_v43 }
 0x4d0   :  { %v5270_v38 = vpack.c.bf16 %v1089_v2, %v1088_v36  ;;  %v4789_v40 = vpop.f32.mrb[38].mxu0 }
 0x4d1   :  { %v1091_v41 = vmul.f32 %v4789_v40, %v6042_v56  ;;  %v939_v55 = vpop.f32.mrb[39].mxu0 }
 0x4d2   :  { %v1090_v39 = vmul.f32 %v939_v55, %v6039_v43 }
 0x4d4   :  { %v5274_v46 = vpack.c.bf16 %v1091_v41, %v1090_v39  ;;  %v4792_v47 = vpop.f32.mrb[40].mxu0 }
 0x4d5   :  { %v1093_v49 = vmul.f32 %v4792_v47, %v6042_v56  ;;  %v949_v60 = vpop.f32.mrb[41].mxu0 }
 0x4d6   :  { %v1092_v51 = vmul.f32 %v949_v60, %v6039_v43 }
 0x4d8   :  { %v5278_v52 = vpack.c.bf16 %v1093_v49, %v1092_v51  ;;  %v4795_v54 = vpop.f32.mrb[42].mxu0 }
 0x4d9   :  { %v1095_v48 = vmul.f32 %v4795_v54, %v6042_v56  ;;  %v959_v34 = vpop.f32.mrb[43].mxu0 }
 0x4da   :  { %v1094_v42 = vmul.f32 %v959_v34, %v6039_v43 }
 0x4dc   :  { %v5282_v57 = vpack.c.bf16 %v1095_v48, %v1094_v42  ;;  %v4798_v59 = vpop.f32.mrb[44].mxu0 }
 0x4dd   :  { %v1097_v45 = vmul.f32 %v4798_v59, %v6042_v56  ;;  %v969_v53 = vpop.f32.mrb[45].mxu0 }
 0x4de   :  { %v1096_v37 = vmul.f32 %v969_v53, %v6039_v43 }
 0x4e0   :  { %v5286_v44 = vpack.c.bf16 %v1097_v45, %v1096_v37  ;;  %v4801_v2 = vpop.f32.mrb[46].mxu0 }
 0x4e1   :  { %v1099_v50 = vmul.f32 %v4801_v2, %v6042_v56  ;;  %v979_v36 = vpop.f32.mrb[47].mxu0 }
 0x4e2   :  { %v1098_v40 = vmul.f32 %v979_v36, %v6039_v43 }
 0x4e4   :  { %v5290_v41 = vpack.c.bf16 %v1099_v50, %v1098_v40  ;;  %v4804_v55 = vpop.f32.mrb[48].mxu0 }
 0x4e5   :  { %v1101_v39 = vmul.f32 %v4804_v55, %v6042_v56  ;;  %v989_v47 = vpop.f32.mrb[49].mxu0 }
 0x4e6   :  { %v1100_v49 = vmul.f32 %v989_v47, %v6039_v43 }
 0x4e8   :  { %v5294_v60 = vpack.c.bf16 %v1101_v39, %v1100_v49  ;;  %v4807_v51 = vpop.f32.mrb[50].mxu0 }
 0x4e9   :  { %v1103_v54 = vmul.f32 %v4807_v51, %v6042_v56  ;;  %v999_v48 = vpop.f32.mrb[51].mxu0 }
 0x4ea   :  { %v1102_v34 = vmul.f32 %v999_v48, %v6039_v43 }
 0x4ec   :  { %v5298_v42 = vpack.c.bf16 %v1103_v54, %v1102_v34  ;;  %v4810_v59 = vpop.f32.mrb[52].mxu0 }
 0x4ed   :  { %v1105_v45 = vmul.f32 %v4810_v59, %v6042_v56  ;;  %v1009_v53 = vpop.f32.mrb[53].mxu0 }
 0x4ee   :  { %v1104_v37 = vmul.f32 %v1009_v53, %v6039_v43 }
 0x4f0   :  { %v5268_v2 = vpack.c.bf16 %v1105_v45, %v1104_v37  ;;  %v4813_v50 = vpop.f32.mrb[54].mxu0 }
 0x4f1   :  { %v1107_v36 = vmul.f32 %v4813_v50, %v6042_v56  ;;  %v1019_v40 = vpop.f32.mrb[55].mxu0 }
 0x4f2   :  { %v1106_v55 = vmul.f32 %v1019_v40, %v6039_v43  ;;  %5269 = vmatprep.subr.bf16.mxu1 %v5268_v2 }
 0x4f3   :  { %5271 = vmatpush3.bf16.msra.mxu1 %v5270_v38 }
 0x4f4   :  { %v5272_v39 = vpack.c.bf16 %v1107_v36, %v1106_v55  ;;  %v4816_v47 = vpop.f32.mrb[56].mxu0 }
 0x4f5   :  { %v1109_v49 = vmul.f32 %v4816_v47, %v6042_v56  ;;  %v1029_v51 = vpop.f32.mrb[57].mxu0 }
 0x4f6   :  { %v1108_v54 = vmul.f32 %v1029_v51, %v6039_v43  ;;  %5273 = vmatprep.subr.bf16.mxu1 %v5272_v39 }
 0x4f7   :  { %5275 = vmatpush3.bf16.msra.mxu1 %v5274_v46 }
 0x4f8   :  { %v5276_v48 = vpack.c.bf16 %v1109_v49, %v1108_v54  ;;  %v4819_v34 = vpop.f32.mrb[58].mxu0 }
 0x4f9   :  { %v1111_v59 = vmul.f32 %v4819_v34, %v6042_v56  ;;  %v1039_v45 = vpop.f32.mrb[59].mxu0 }
 0x4fa   :  { %v1110_v53 = vmul.f32 %v1039_v45, %v6039_v43  ;;  %5277 = vmatprep.subr.bf16.mxu1 %v5276_v48 }
 0x4fb   :  { %5279 = vmatpush3.bf16.msra.mxu1 %v5278_v52 }
 0x4fc   :  { %v5280_v37 = vpack.c.bf16 %v1111_v59, %v1110_v53  ;;  %v4822_v38 = vpop.f32.mrb[60].mxu0 }
 0x4fd   :  { %v1113_v2 = vmul.f32 %v4822_v38, %v6042_v56  ;;  %v1049_v50 = vpop.f32.mrb[61].mxu0 }
 0x4fe   :  { %v1112_v36 = vmul.f32 %v1049_v50, %v6039_v43  ;;  %5281 = vmatprep.subr.bf16.mxu1 %v5280_v37 }
 0x4ff   :  { %5283 = vmatpush3.bf16.msra.mxu1 %v5282_v57 }
 0x500   :  { %v5284_v40 = vpack.c.bf16 %v1113_v2, %v1112_v36  ;;  %v4825_v46 = vpop.f32.mrb[62].mxu0 }
 0x501   :  { %v1115_v55 = vmul.f32 %v4825_v46, %v6042_v56  ;;  %v1059_v39 = vpop.f32.mrb[63].mxu0 }
 0x502   :  { %v1114_v47 = vmul.f32 %v1059_v39, %v6039_v43  ;;  %5285 = vmatprep.subr.bf16.mxu1 %v5284_v40 }
 0x503   :  { %5287 = vmatpush3.bf16.msra.mxu1 %v5286_v44 }
 0x504   :  { %v5288_v49 = vpack.c.bf16 %v1115_v55, %v1114_v47  ;;  %v4828_v52 = vpop.f32.mrb[64].mxu0 }
 0x505   :  { %v1117_v51 = vmul.f32 %v4828_v52, %v6042_v56  ;;  %v1069_v54 = vpop.f32.mrb[65].mxu0 }
 0x506   :  { %v1116_v48 = vmul.f32 %v1069_v54, %v6039_v43  ;;  %5289 = vmatprep.subr.bf16.mxu1 %v5288_v49 }
 0x507   :  { %5291 = vmatpush3.bf16.msra.mxu1 %v5290_v41 }
 0x508   :  { %v5292_v34 = vpack.c.bf16 %v1117_v51, %v1116_v48  ;;  %v4831_v57 = vpop.f32.mrb[66].mxu0 }
 0x509   :  { %v1119_v59 = vmul.f32 %v4831_v57, %v6042_v56  ;;  %v1079_v45 = vpop.f32.mrb[67].mxu0 }
 0x50a   :  { %v1118_v53 = vmul.f32 %v1079_v45, %v6039_v43  ;;  %5293 = vmatprep.subr.bf16.mxu1 %v5292_v34 }
 0x50b   :  { %5295 = vmatpush3.bf16.msra.mxu1 %v5294_v60 }
 0x50c   :  { %v5296_v37 = vpack.c.bf16 %v1119_v59, %v1118_v53 }
 0x50e   :  { %5297 = vmatprep.subr.bf16.mxu1 %v5296_v37 }
 0x50f   :  { %5299 = vmatpush3.bf16.msra.mxu1 %v5298_v42 }
 0x512   :  { %1185 = vmatmul.mubr.f32.vlgmr.msra.gmra.mrb[36].mxu1 %v5915_v58 }
 0x513   :  { %1189 = vmatprep.mubr.f32.mxu1 %v5920_v61 }
 0x516   :  { %1190 = vmatmul.mubr.f32.gmra.mrb[38].mxu1 %v5927_v63 }
 0x517   :  { %4836 = vmatprep.mubr.msk.f32.mxu1 %vm88_vm0, %v5684_v0 }
 0x5e5   :  { %v4168_v44 = vpop.f32.mrb[36].mxu1 }
 0x5e6   :  { %v4169_v41 = vpop.f32.mrb[37].mxu1 }
 0x5e7   :  { %v4170_v38 = vadd.f32 %v4169_v41, %v4168_v44 }
 0x5e9   :  { %v4171_v2 = vpop.f32.mrb[38].mxu1  ;;  %v6147_v60 = vadd.f32 %v4170_v38, %v6039_v43 }
 0x5ea   :  { %v4172_v50 = vpop.f32.mrb[39].mxu1 }
 0x5eb   :  { %v4173_v36 = vadd.f32 %v4172_v50, %v4171_v2  ;;  %7313 = vst [vmem:[#allocation6_spill] sm:$0xff] %v6147_v60 }
 0x5ed   :  { %v6150_v42 = vadd.f32 %v4173_v36, %v6042_v56 }
 0x5ef   :  { %7314 = vst [vmem:[#allocation7_spill] sm:$0xff] %v6150_v42  ;;  %v5300_v40 = vpack.c.bf16 %v6150_v42, %v6147_v60 }
 0x5f1   :  { %5301 = vmatprep.subr.bf16.mxu1 %v5300_v40 }
 0x5f2   :  { %5303 = vmatpush3.bf16.msra.mxu1 %v5300_v40 }
 0x5f5   :  { %4837 = vmatmul.mubr.msk.f32.vlgmr.msra.gmra.mrb[40].mxu1 %vm88_vm0, %v5689_v1 }
 0x5f6   :  { %4839 = vmatprep.mubr.msk.f32.mxu1 %vm88_vm0, %v5696_v3 }
 0x5f9   :  { %4840 = vmatmul.mubr.msk.f32.gmra.mrb[42].mxu1 %vm88_vm0, %v5705_v4 }
 0x5fa   :  { %4842 = vmatprep.mubr.msk.f32.mxu1 %vm88_vm0, %v5710_v5 }
 0x5fd   :  { %4843 = vmatmul.mubr.msk.f32.gmra.mrb[44].mxu1 %vm88_vm0, %v5719_v6 }
 0x5fe   :  { %4845 = vmatprep.mubr.msk.f32.mxu1 %vm88_vm0, %v5724_v7 }
 0x601   :  { %4846 = vmatmul.mubr.msk.f32.gmra.mrb[46].mxu1 %vm88_vm0, %v5733_v8 }
 0x602   :  { %4848 = vmatprep.mubr.msk.f32.mxu1 %vm88_vm0, %v5738_v9 }
 0x605   :  { %4849 = vmatmul.mubr.msk.f32.gmra.mrb[48].mxu1 %vm88_vm0, %v5747_v10 }
 0x606   :  { %4851 = vmatprep.mubr.msk.f32.mxu1 %vm88_vm0, %v5752_v11 }
 0x609   :  { %4852 = vmatmul.mubr.msk.f32.gmra.mrb[50].mxu1 %vm88_vm0, %v5761_v12 }
 0x60a   :  { %4854 = vmatprep.mubr.msk.f32.mxu1 %vm88_vm0, %v5766_v13 }
 0x60d   :  { %4855 = vmatmul.mubr.msk.f32.gmra.mrb[52].mxu1 %vm88_vm0, %v5775_v14 }
 0x60e   :  { %4857 = vmatprep.mubr.msk.f32.mxu1 %vm88_vm0, %v5780_v15 }
 0x611   :  { %4858 = vmatmul.mubr.msk.f32.gmra.mrb[54].mxu1 %vm88_vm0, %v5789_v16 }
 0x612   :  { %4860 = vmatprep.mubr.msk.f32.mxu1 %vm88_vm0, %v5794_v17 }
 0x615   :  { %4861 = vmatmul.mubr.msk.f32.gmra.mrb[56].mxu1 %vm88_vm0, %v5803_v18 }
 0x616   :  { %4863 = vmatprep.mubr.msk.f32.mxu1 %vm88_vm0, %v5808_v19 }
 0x619   :  { %4864 = vmatmul.mubr.msk.f32.gmra.mrb[58].mxu1 %vm88_vm0, %v5817_v20 }
 0x61a   :  { %4866 = vmatprep.mubr.msk.f32.mxu1 %vm88_vm0, %v5822_v21 }
 0x61d   :  { %4867 = vmatmul.mubr.msk.f32.gmra.mrb[60].mxu1 %vm88_vm0, %v5831_v22 }
 0x61e   :  { %4869 = vmatprep.mubr.msk.f32.mxu1 %vm88_vm0, %v5836_v23 }
 0x621   :  { %4870 = vmatmul.mubr.msk.f32.gmra.mrb[62].mxu1 %vm88_vm0, %v5845_v24 }
 0x622   :  { %4872 = vmatprep.mubr.msk.f32.mxu1 %vm88_vm0, %v5850_v25 }
 0x625   :  { %4873 = vmatmul.mubr.msk.f32.gmra.mrb[64].mxu1 %vm88_vm0, %v5859_v26 }
 0x626   :  { %4875 = vmatprep.mubr.msk.f32.mxu1 %vm88_vm0, %v5864_v27 }
 0x629   :  { %4876 = vmatmul.mubr.msk.f32.gmra.mrb[66].mxu1 %vm88_vm0, %v5873_v28 }
 0x62a   :  { %4878 = vmatprep.mubr.msk.f32.mxu1 %vm88_vm0, %v5878_v29 }
 0x62d   :  { %4879 = vmatmul.mubr.msk.f32.gmra.mrb[68].mxu1 %vm88_vm0, %v5887_v30 }
 0x62e   :  { %4881 = vmatprep.mubr.msk.f32.mxu1 %vm88_vm0, %v5892_v31 }
 0x631   :  { %4882 = vmatmul.mubr.msk.f32.gmra.mrb[70].mxu1 %vm88_vm0, %v5901_v32 }
 0x632   :  { %1860 = vmatprep.mubr.f32.mxu1 %v5908_v33 }
 0x6c8   :  { %v4838_v0 = vpop.f32.mrb[40].mxu1 }
 0x6c9   :  { %v1427_v1 = vmul.f32 %v4838_v0, %v6150_v42  ;;  %v1267_v3 = vpop.f32.mrb[41].mxu1 }
 0x6ca   :  { %v1426_v4 = vmul.f32 %v1267_v3, %v6147_v60 }
 0x6cc   :  { %v5306_v5 = vpack.c.bf16 %v1427_v1, %v1426_v4  ;;  %v4841_v6 = vpop.f32.mrb[42].mxu1 }
 0x6cd   :  { %v1429_v7 = vmul.f32 %v4841_v6, %v6150_v42  ;;  %v1277_v8 = vpop.f32.mrb[43].mxu1 }
 0x6ce   :  { %v1428_v9 = vmul.f32 %v1277_v8, %v6147_v60 }
 0x6d0   :  { %v5310_v10 = vpack.c.bf16 %v1429_v7, %v1428_v9  ;;  %v4844_v11 = vpop.f32.mrb[44].mxu1 }
 0x6d1   :  { %v1431_v12 = vmul.f32 %v4844_v11, %v6150_v42  ;;  %v1287_v13 = vpop.f32.mrb[45].mxu1 }
 0x6d2   :  { %v1430_v14 = vmul.f32 %v1287_v13, %v6147_v60 }
 0x6d4   :  { %v5314_v15 = vpack.c.bf16 %v1431_v12, %v1430_v14  ;;  %v4847_v16 = vpop.f32.mrb[46].mxu1 }
 0x6d5   :  { %v1433_v17 = vmul.f32 %v4847_v16, %v6150_v42  ;;  %v1297_v18 = vpop.f32.mrb[47].mxu1 }
 0x6d6   :  { %v1432_v19 = vmul.f32 %v1297_v18, %v6147_v60 }
 0x6d8   :  { %v5318_v20 = vpack.c.bf16 %v1433_v17, %v1432_v19  ;;  %v4850_v21 = vpop.f32.mrb[48].mxu1 }
 0x6d9   :  { %v1435_v22 = vmul.f32 %v4850_v21, %v6150_v42  ;;  %v1307_v23 = vpop.f32.mrb[49].mxu1 }
 0x6da   :  { %v1434_v24 = vmul.f32 %v1307_v23, %v6147_v60 }
 0x6dc   :  { %v5322_v25 = vpack.c.bf16 %v1435_v22, %v1434_v24  ;;  %v4853_v26 = vpop.f32.mrb[50].mxu1 }
 0x6dd   :  { %v1437_v27 = vmul.f32 %v4853_v26, %v6150_v42  ;;  %v1317_v28 = vpop.f32.mrb[51].mxu1 }
 0x6de   :  { %v1436_v29 = vmul.f32 %v1317_v28, %v6147_v60 }
 0x6e0   :  { %v5326_v30 = vpack.c.bf16 %v1437_v27, %v1436_v29  ;;  %v4856_v31 = vpop.f32.mrb[52].mxu1 }
 0x6e1   :  { %v1439_v32 = vmul.f32 %v4856_v31, %v6150_v42  ;;  %v1327_v33 = vpop.f32.mrb[53].mxu1 }
 0x6e2   :  { %v1438_v46 = vmul.f32 %v1327_v33, %v6147_v60  ;;  %v6270_v33 = vld [vmem:[%s7302_s2 + $0x8] sm:$0xff] }
 0x6e4   :  { %v5330_v55 = vpack.c.bf16 %v1439_v32, %v1438_v46  ;;  %v4859_v39 = vpop.f32.mrb[54].mxu1  ;;  %v6277_v46 = vld [vmem:[%s7302_s2 + $0x10] sm:$0xff] }
 0x6e5   :  { %v1441_v47 = vmul.f32 %v4859_v39, %v6150_v42  ;;  %v1337_v49 = vpop.f32.mrb[55].mxu1  ;;  %v6291_v39 = vld [vmem:[%s7302_s2 + $0x20] sm:$0xff] }
 0x6e6   :  { %v1440_v52 = vmul.f32 %v1337_v49, %v6147_v60  ;;  %v6305_v49 = vld [vmem:[%s7302_s2 + $0x30] sm:$0xff] }
 0x6e8   :  { %v5334_v51 = vpack.c.bf16 %v1441_v47, %v1440_v52  ;;  %v4862_v54 = vpop.f32.mrb[56].mxu1  ;;  %v6298_v47 = vld [vmem:[%s7302_s2 + $0x28] sm:$0xff]  ;;  %v6312_v52 = vld [vmem:[%s7302_s2 + $0x38] sm:$0xff] }
 0x6e9   :  { %v1443_v48 = vmul.f32 %v4862_v54, %v6150_v42  ;;  %v1347_v34 = vpop.f32.mrb[57].mxu1  ;;  %v6326_v54 = vld [vmem:[%s7302_s2 + $0x48] sm:$0xff] }
 0x6ea   :  { %v1442_v57 = vmul.f32 %v1347_v34, %v6147_v60  ;;  %v6340_v34 = vld [vmem:[%s7302_s2 + $0x58] sm:$0xff] }
 0x6ec   :  { %v5304_v59 = vpack.c.bf16 %v1443_v48, %v1442_v57  ;;  %v4865_v45 = vpop.f32.mrb[58].mxu1  ;;  %v6333_v48 = vld [vmem:[%s7302_s2 + $0x50] sm:$0xff]  ;;  %v6347_v57 = vld [vmem:[%s7302_s2 + $0x60] sm:$0xff] }
 0x6ed   :  { %v1445_v53 = vmul.f32 %v4865_v45, %v6150_v42  ;;  %v1357_v37 = vpop.f32.mrb[59].mxu1  ;;  %v6361_v45 = vld [vmem:[%s7302_s2 + $0x70] sm:$0xff] }
 0x6ee   :  { %v1444_v44 = vmul.f32 %v1357_v37, %v6147_v60  ;;  %5305 = vmatprep.subr.bf16.mxu0 %v5304_v59  ;;  %v6354_v59 = vld [vmem:[%s7302_s2 + $0x68] sm:$0xff]  ;;  %v6375_v37 = vld [vmem:[%s7302_s2 + $0x80] sm:$0xff] }
 0x6ef   :  { %5307 = vmatpush3.bf16.msra.mxu0 %v5306_v5 }
 0x6f0   :  { %v5308_v41 = vpack.c.bf16 %v1445_v53, %v1444_v44  ;;  %v4868_v38 = vpop.f32.mrb[60].mxu1  ;;  %v6368_v53 = vld [vmem:[%s7302_s2 + $0x78] sm:$0xff]  ;;  %v6382_v44 = vld [vmem:[%s7302_s2 + $0x88] sm:$0xff] }
 0x6f1   :  { %v1447_v2 = vmul.f32 %v4868_v38, %v6150_v42  ;;  %v1367_v50 = vpop.f32.mrb[61].mxu1  ;;  %v6396_v38 = vld [vmem:[%s7302_s2 + $0x98] sm:$0xff] }
 0x6f2   :  { %v1446_v36 = vmul.f32 %v1367_v50, %v6147_v60  ;;  %5309 = vmatprep.subr.bf16.mxu0 %v5308_v41  ;;  %v6389_v41 = vld [vmem:[%s7302_s2 + $0x90] sm:$0xff]  ;;  %v6410_v50 = vld [vmem:[%s7302_s2 + $0xa8] sm:$0xff] }
 0x6f3   :  { %5311 = vmatpush3.bf16.msra.mxu0 %v5310_v10 }
 0x6f4   :  { %v5312_v40 = vpack.c.bf16 %v1447_v2, %v1446_v36  ;;  %v4871_v0 = vpop.f32.mrb[62].mxu1  ;;  %v6403_v2 = vld [vmem:[%s7302_s2 + $0xa0] sm:$0xff]  ;;  %v6417_v36 = vld [vmem:[%s7302_s2 + $0xb0] sm:$0xff] }
 0x6f5   :  { %v1449_v1 = vmul.f32 %v4871_v0, %v6150_v42  ;;  %v1377_v3 = vpop.f32.mrb[63].mxu1  ;;  %v6431_v0 = vld [vmem:[%s7302_s2 + $0xc0] sm:$0xff] }
 0x6f6   :  { %v1448_v4 = vmul.f32 %v1377_v3, %v6147_v60  ;;  %5313 = vmatprep.subr.bf16.mxu0 %v5312_v40  ;;  %v6424_v40 = vld [vmem:[%s7302_s2 + $0xb8] sm:$0xff]  ;;  %v6445_v3 = vld [vmem:[%s7302_s2 + $0xd0] sm:$0xff] }
 0x6f7   :  { %5315 = vmatpush3.bf16.msra.mxu0 %v5314_v15 }
 0x6f8   :  { %v5316_v6 = vpack.c.bf16 %v1449_v1, %v1448_v4  ;;  %v4874_v5 = vpop.f32.mrb[64].mxu1  ;;  %v6438_v1 = vld [vmem:[%s7302_s2 + $0xc8] sm:$0xff]  ;;  %v6452_v4 = vld [vmem:[%s7302_s2 + $0xd8] sm:$0xff] }
 0x6f9   :  { %v1451_v7 = vmul.f32 %v4874_v5, %v6150_v42  ;;  %v1387_v8 = vpop.f32.mrb[65].mxu1  ;;  %v6466_v5 = vld [vmem:[%s7302_s2 + $0xe8] sm:$0xff] }
 0x6fa   :  { %v1450_v9 = vmul.f32 %v1387_v8, %v6147_v60  ;;  %5317 = vmatprep.subr.bf16.mxu0 %v5316_v6  ;;  %v6459_v6 = vld [vmem:[%s7302_s2 + $0xe0] sm:$0xff]  ;;  %v6480_v8 = vld [vmem:[%s7302_s2 + $0xf8] sm:$0xff] }
 0x6fb   :  { %5319 = vmatpush3.bf16.msra.mxu0 %v5318_v20 }
 0x6fc   :  { %v5320_v11 = vpack.c.bf16 %v1451_v7, %v1450_v9  ;;  %v4877_v10 = vpop.f32.mrb[66].mxu1  ;;  %v6473_v7 = vld [vmem:[%s7302_s2 + $0xf0] sm:$0xff]  ;;  %v6487_v9 = vld [vmem:[%s7303_s3 + $0x8] sm:$0xff] }
 0x6fd   :  { %v1453_v12 = vmul.f32 %v4877_v10, %v6150_v42  ;;  %v1397_v13 = vpop.f32.mrb[67].mxu1 }
 0x6fe   :  { %v1452_v14 = vmul.f32 %v1397_v13, %v6147_v60  ;;  %5321 = vmatprep.subr.bf16.mxu0 %v5320_v11 }
 0x6ff   :  { %5323 = vmatpush3.bf16.msra.mxu0 %v5322_v25  ;;  %v6255_v25 = vld [vmem:[%s7302_s2] sm:$0xff] }
 0x700   :  { %v5324_v16 = vpack.c.bf16 %v1453_v12, %v1452_v14  ;;  %v4880_v15 = vpop.f32.mrb[68].mxu1 }
 0x701   :  { %v1455_v17 = vmul.f32 %v4880_v15, %v6150_v42  ;;  %v1407_v18 = vpop.f32.mrb[69].mxu1 }
 0x702   :  { %v1454_v19 = vmul.f32 %v1407_v18, %v6147_v60  ;;  %5325 = vmatprep.subr.bf16.mxu0 %v5324_v16 }
 0x703   :  { %5327 = vmatpush3.bf16.msra.mxu0 %v5326_v30 }
 0x704   :  { %v5328_v21 = vpack.c.bf16 %v1455_v17, %v1454_v19  ;;  %v4883_v20 = vpop.f32.mrb[70].mxu1 }
 0x705   :  { %v1457_v22 = vmul.f32 %v4883_v20, %v6150_v42  ;;  %v1417_v23 = vpop.f32.mrb[71].mxu1 }
 0x706   :  { %v1456_v24 = vmul.f32 %v1417_v23, %v6147_v60  ;;  %5329 = vmatprep.subr.bf16.mxu0 %v5328_v21 }
 0x707   :  { %5331 = vmatpush3.bf16.msra.mxu0 %v5330_v55  ;;  %v6284_v55 = vld [vmem:[%s7302_s2 + $0x18] sm:$0xff] }
 0x708   :  { %v5332_v26 = vpack.c.bf16 %v1457_v22, %v1456_v24 }
 0x70a   :  { %5333 = vmatprep.subr.bf16.mxu0 %v5332_v26 }
 0x70b   :  { %5335 = vmatpush3.bf16.msra.mxu0 %v5334_v51  ;;  %v6319_v51 = vld [vmem:[%s7302_s2 + $0x40] sm:$0xff] }
 0x70e   :  { %1523 = vmatmul.mubr.f32.vlgmr.msra.gmra.mrb[68].mxu0 %v5915_v58 }
 0x70f   :  { %1527 = vmatprep.mubr.f32.mxu0 %v5920_v61 }
 0x712   :  { %1528 = vmatmul.mubr.f32.gmra.mrb[70].mxu0 %v5927_v63 }
 0x713   :  { %4888 = vmatprep.mubr.msk.f32.mxu0 %vm88_vm0, %v6255_v25 }
 0x7e1   :  { %v4240_v27 = vpop.f32.mrb[68].mxu0 }
 0x7e2   :  { %v4241_v28 = vpop.f32.mrb[69].mxu0 }
 0x7e3   :  { %v4242_v29 = vadd.f32 %v4241_v28, %v4240_v27 }
 0x7e5   :  { %v4243_v30 = vpop.f32.mrb[70].mxu0  ;;  %v6260_v58 = vadd.f32 %v4242_v29, %v6147_v60 }
 0x7e6   :  { %v4244_v31 = vpop.f32.mrb[71].mxu0 }
 0x7e7   :  { %v4245_v32 = vadd.f32 %v4244_v31, %v4243_v30  ;;  %7315 = vst [vmem:[#allocation8_spill] sm:$0xff] %v6260_v58 }
 0x7e9   :  { %v6263_v61 = vadd.f32 %v4245_v32, %v6150_v42 }
 0x7eb   :  { %7316 = vst [vmem:[#allocation9_spill] sm:$0xff] %v6263_v61  ;;  %v5336_v63 = vpack.c.bf16 %v6263_v61, %v6260_v58 }
 0x7ed   :  { %5337 = vmatprep.subr.bf16.mxu0 %v5336_v63 }
 0x7ee   :  { %5339 = vmatpush3.bf16.msra.mxu0 %v5336_v63 }
 0x7f1   :  { %4889 = vmatmul.mubr.msk.f32.vlgmr.msra.gmra.mrb[72].mxu0 %vm88_vm0, %v6270_v33 }
 0x7f2   :  { %4891 = vmatprep.mubr.msk.f32.mxu0 %vm88_vm0, %v6277_v46 }
 0x7f5   :  { %4892 = vmatmul.mubr.msk.f32.gmra.mrb[74].mxu0 %vm88_vm0, %v6284_v55 }
 0x7f6   :  { %4894 = vmatprep.mubr.msk.f32.mxu0 %vm88_vm0, %v6291_v39 }
 0x7f9   :  { %4895 = vmatmul.mubr.msk.f32.gmra.mrb[76].mxu0 %vm88_vm0, %v6298_v47 }
 0x7fa   :  { %4897 = vmatprep.mubr.msk.f32.mxu0 %vm88_vm0, %v6305_v49 }
 0x7fd   :  { %4898 = vmatmul.mubr.msk.f32.gmra.mrb[78].mxu0 %vm88_vm0, %v6312_v52 }
 0x7fe   :  { %4900 = vmatprep.mubr.msk.f32.mxu0 %vm88_vm0, %v6319_v51 }
 0x801   :  { %4901 = vmatmul.mubr.msk.f32.gmra.mrb[80].mxu0 %vm88_vm0, %v6326_v54 }
 0x802   :  { %4903 = vmatprep.mubr.msk.f32.mxu0 %vm88_vm0, %v6333_v48 }
 0x805   :  { %4904 = vmatmul.mubr.msk.f32.gmra.mrb[82].mxu0 %vm88_vm0, %v6340_v34 }
 0x806   :  { %4906 = vmatprep.mubr.msk.f32.mxu0 %vm88_vm0, %v6347_v57 }
 0x809   :  { %4907 = vmatmul.mubr.msk.f32.gmra.mrb[84].mxu0 %vm88_vm0, %v6354_v59 }
 0x80a   :  { %4909 = vmatprep.mubr.msk.f32.mxu0 %vm88_vm0, %v6361_v45 }
 0x80d   :  { %4910 = vmatmul.mubr.msk.f32.gmra.mrb[86].mxu0 %vm88_vm0, %v6368_v53 }
 0x80e   :  { %4912 = vmatprep.mubr.msk.f32.mxu0 %vm88_vm0, %v6375_v37 }
 0x811   :  { %4913 = vmatmul.mubr.msk.f32.gmra.mrb[88].mxu0 %vm88_vm0, %v6382_v44 }
 0x812   :  { %4915 = vmatprep.mubr.msk.f32.mxu0 %vm88_vm0, %v6389_v41 }
 0x815   :  { %4916 = vmatmul.mubr.msk.f32.gmra.mrb[90].mxu0 %vm88_vm0, %v6396_v38 }
 0x816   :  { %4918 = vmatprep.mubr.msk.f32.mxu0 %vm88_vm0, %v6403_v2 }
 0x819   :  { %4919 = vmatmul.mubr.msk.f32.gmra.mrb[92].mxu0 %vm88_vm0, %v6410_v50 }
 0x81a   :  { %4921 = vmatprep.mubr.msk.f32.mxu0 %vm88_vm0, %v6417_v36 }
 0x81d   :  { %4922 = vmatmul.mubr.msk.f32.gmra.mrb[94].mxu0 %vm88_vm0, %v6424_v40 }
 0x81e   :  { %4924 = vmatprep.mubr.msk.f32.mxu0 %vm88_vm0, %v6431_v0 }
 0x821   :  { %4925 = vmatmul.mubr.msk.f32.gmra.mrb[96].mxu0 %vm88_vm0, %v6438_v1 }
 0x822   :  { %4927 = vmatprep.mubr.msk.f32.mxu0 %vm88_vm0, %v6445_v3 }
 0x825   :  { %4928 = vmatmul.mubr.msk.f32.gmra.mrb[98].mxu0 %vm88_vm0, %v6452_v4 }
 0x826   :  { %4930 = vmatprep.mubr.msk.f32.mxu0 %vm88_vm0, %v6459_v6 }
 0x829   :  { %4931 = vmatmul.mubr.msk.f32.gmra.mrb[100].mxu0 %vm88_vm0, %v6466_v5 }
 0x82a   :  { %4933 = vmatprep.mubr.msk.f32.mxu0 %vm88_vm0, %v6473_v7 }
 0x82d   :  { %4934 = vmatmul.mubr.msk.f32.gmra.mrb[102].mxu0 %vm88_vm0, %v6480_v8 }
 0x82e   :  { %2198 = vmatprep.mubr.f32.mxu0 %v6487_v9 }
 0x8c4   :  { %v4890_v11 = vpop.f32.mrb[72].mxu0 }
 0x8c5   :  { %v1765_v10 = vmul.f32 %v4890_v11, %v6263_v61  ;;  %v1605_v12 = vpop.f32.mrb[73].mxu0 }
 0x8c6   :  { %v1764_v13 = vmul.f32 %v1605_v12, %v6260_v58 }
 0x8c8   :  { %v5342_v14 = vpack.c.bf16 %v1765_v10, %v1764_v13  ;;  %v4893_v16 = vpop.f32.mrb[74].mxu0 }
 0x8c9   :  { %v1767_v15 = vmul.f32 %v4893_v16, %v6263_v61  ;;  %v1615_v17 = vpop.f32.mrb[75].mxu0 }
 0x8ca   :  { %v1766_v18 = vmul.f32 %v1615_v17, %v6260_v58 }
 0x8cc   :  { %v5346_v19 = vpack.c.bf16 %v1767_v15, %v1766_v18  ;;  %v4896_v21 = vpop.f32.mrb[76].mxu0 }
 0x8cd   :  { %v1769_v20 = vmul.f32 %v4896_v21, %v6263_v61  ;;  %v1625_v22 = vpop.f32.mrb[77].mxu0 }
 0x8ce   :  { %v1768_v23 = vmul.f32 %v1625_v22, %v6260_v58 }
 0x8d0   :  { %v5350_v24 = vpack.c.bf16 %v1769_v20, %v1768_v23  ;;  %v4899_v26 = vpop.f32.mrb[78].mxu0 }
 0x8d1   :  { %v1771_v27 = vmul.f32 %v4899_v26, %v6263_v61  ;;  %v1635_v28 = vpop.f32.mrb[79].mxu0 }
 0x8d2   :  { %v1770_v29 = vmul.f32 %v1635_v28, %v6260_v58 }
 0x8d4   :  { %v5354_v30 = vpack.c.bf16 %v1771_v27, %v1770_v29  ;;  %v4902_v31 = vpop.f32.mrb[80].mxu0 }
 0x8d5   :  { %v1773_v32 = vmul.f32 %v4902_v31, %v6263_v61  ;;  %v1645_v63 = vpop.f32.mrb[81].mxu0 }
 0x8d6   :  { %v1772_v11 = vmul.f32 %v1645_v63, %v6260_v58 }
 0x8d8   :  { %v5358_v10 = vpack.c.bf16 %v1773_v32, %v1772_v11  ;;  %v4905_v12 = vpop.f32.mrb[82].mxu0 }
 0x8d9   :  { %v1775_v13 = vmul.f32 %v4905_v12, %v6263_v61  ;;  %v1655_v16 = vpop.f32.mrb[83].mxu0 }
 0x8da   :  { %v1774_v15 = vmul.f32 %v1655_v16, %v6260_v58 }
 0x8dc   :  { %v5362_v17 = vpack.c.bf16 %v1775_v13, %v1774_v15  ;;  %v4908_v18 = vpop.f32.mrb[84].mxu0 }
 0x8dd   :  { %v1777_v21 = vmul.f32 %v4908_v18, %v6263_v61  ;;  %v1665_v20 = vpop.f32.mrb[85].mxu0 }
 0x8de   :  { %v1776_v22 = vmul.f32 %v1665_v20, %v6260_v58 }
 0x8e0   :  { %v5366_v23 = vpack.c.bf16 %v1777_v21, %v1776_v22  ;;  %v4911_v26 = vpop.f32.mrb[86].mxu0 }
 0x8e1   :  { %v1779_v27 = vmul.f32 %v4911_v26, %v6263_v61  ;;  %v1675_v28 = vpop.f32.mrb[87].mxu0 }
 0x8e2   :  { %v1778_v29 = vmul.f32 %v1675_v28, %v6260_v58 }
 0x8e4   :  { %v5370_v31 = vpack.c.bf16 %v1779_v27, %v1778_v29  ;;  %v4914_v32 = vpop.f32.mrb[88].mxu0 }
 0x8e5   :  { %v1781_v63 = vmul.f32 %v4914_v32, %v6263_v61  ;;  %v1685_v11 = vpop.f32.mrb[89].mxu0 }
 0x8e6   :  { %v1780_v12 = vmul.f32 %v1685_v11, %v6260_v58 }
 0x8e8   :  { %v5340_v13 = vpack.c.bf16 %v1781_v63, %v1780_v12  ;;  %v4917_v16 = vpop.f32.mrb[90].mxu0 }
 0x8e9   :  { %v1783_v15 = vmul.f32 %v4917_v16, %v6263_v61  ;;  %v1695_v18 = vpop.f32.mrb[91].mxu0 }
 0x8ea   :  { %v1782_v21 = vmul.f32 %v1695_v18, %v6260_v58  ;;  %5341 = vmatprep.subr.bf16.mxu1 %v5340_v13 }
 0x8eb   :  { %5343 = vmatpush3.bf16.msra.mxu1 %v5342_v14 }
 0x8ec   :  { %v5344_v20 = vpack.c.bf16 %v1783_v15, %v1782_v21  ;;  %v4920_v22 = vpop.f32.mrb[92].mxu0 }
 0x8ed   :  { %v1785_v26 = vmul.f32 %v4920_v22, %v6263_v61  ;;  %v1705_v27 = vpop.f32.mrb[93].mxu0 }
 0x8ee   :  { %v1784_v28 = vmul.f32 %v1705_v27, %v6260_v58  ;;  %5345 = vmatprep.subr.bf16.mxu1 %v5344_v20 }
 0x8ef   :  { %5347 = vmatpush3.bf16.msra.mxu1 %v5346_v19 }
 0x8f0   :  { %v5348_v29 = vpack.c.bf16 %v1785_v26, %v1784_v28  ;;  %v4923_v32 = vpop.f32.mrb[94].mxu0 }
 0x8f1   :  { %v1787_v63 = vmul.f32 %v4923_v32, %v6263_v61  ;;  %v1715_v11 = vpop.f32.mrb[95].mxu0 }
 0x8f2   :  { %v1786_v12 = vmul.f32 %v1715_v11, %v6260_v58  ;;  %5349 = vmatprep.subr.bf16.mxu1 %v5348_v29 }
 0x8f3   :  { %5351 = vmatpush3.bf16.msra.mxu1 %v5350_v24 }
 0x8f4   :  { %v5352_v13 = vpack.c.bf16 %v1787_v63, %v1786_v12  ;;  %v4926_v14 = vpop.f32.mrb[96].mxu0 }
 0x8f5   :  { %v1789_v16 = vmul.f32 %v4926_v14, %v6263_v61  ;;  %v1725_v15 = vpop.f32.mrb[97].mxu0 }
 0x8f6   :  { %v1788_v18 = vmul.f32 %v1725_v15, %v6260_v58  ;;  %5353 = vmatprep.subr.bf16.mxu1 %v5352_v13 }
 0x8f7   :  { %5355 = vmatpush3.bf16.msra.mxu1 %v5354_v30 }
 0x8f8   :  { %v5356_v21 = vpack.c.bf16 %v1789_v16, %v1788_v18  ;;  %v4929_v19 = vpop.f32.mrb[98].mxu0 }
 0x8f9   :  { %v1791_v20 = vmul.f32 %v4929_v19, %v6263_v61  ;;  %v1735_v22 = vpop.f32.mrb[99].mxu0 }
 0x8fa   :  { %v1790_v26 = vmul.f32 %v1735_v22, %v6260_v58  ;;  %5357 = vmatprep.subr.bf16.mxu1 %v5356_v21 }
 0x8fb   :  { %5359 = vmatpush3.bf16.msra.mxu1 %v5358_v10  ;;  %v6525_v10 = vld [vmem:[%s7303_s3] sm:$0xff] }
 0x8fc   :  { %v5360_v27 = vpack.c.bf16 %v1791_v20, %v1790_v26  ;;  %v4932_v24 = vpop.f32.mrb[100].mxu0 }
 0x8fd   :  { %v1793_v28 = vmul.f32 %v4932_v24, %v6263_v61  ;;  %v1745_v29 = vpop.f32.mrb[101].mxu0 }
 0x8fe   :  { %v1792_v32 = vmul.f32 %v1745_v29, %v6260_v58  ;;  %5361 = vmatprep.subr.bf16.mxu1 %v5360_v27 }
 0x8ff   :  { %5363 = vmatpush3.bf16.msra.mxu1 %v5362_v17  ;;  %v6531_v17 = vld [vmem:[%s7303_s3 + $0x18] sm:$0xff] }
 0x900   :  { %v5364_v63 = vpack.c.bf16 %v1793_v28, %v1792_v32  ;;  %v4935_v30 = vpop.f32.mrb[102].mxu0 }
 0x901   :  { %v1795_v11 = vmul.f32 %v4935_v30, %v6263_v61  ;;  %v1755_v12 = vpop.f32.mrb[103].mxu0 }
 0x902   :  { %v1794_v13 = vmul.f32 %v1755_v12, %v6260_v58  ;;  %5365 = vmatprep.subr.bf16.mxu1 %v5364_v63 }
 0x903   :  { %5367 = vmatpush3.bf16.msra.mxu1 %v5366_v23  ;;  %v6537_v23 = vld [vmem:[%s7303_s3 + $0x10] sm:$0xff] }
 0x904   :  { %v5368_v14 = vpack.c.bf16 %v1795_v11, %v1794_v13 }
 0x906   :  { %5369 = vmatprep.subr.bf16.mxu1 %v5368_v14 }
 0x907   :  { %5371 = vmatpush3.bf16.msra.mxu1 %v5370_v31 }
 0x90a   :  { %1861 = vmatmul.mubr.f32.vlgmr.msra.gmra.mrb[72].mxu1 %v6525_v10 }
 0x90b   :  { %1865 = vmatprep.mubr.f32.mxu1 %v6531_v17 }
 0x90e   :  { %1866 = vmatmul.mubr.f32.gmra.mrb[74].mxu1 %v6537_v23 }
 0x90f   :  { %4940 = vmatprep.mubr.msk.f32.mxu1 %vm88_vm0, %v6255_v25 }
 0x9dd   :  { %v4312_v31 = vpop.f32.mrb[72].mxu1 }
 0x9de   :  { %v4313_v16 = vpop.f32.mrb[73].mxu1 }
 0x9df   :  { %v4314_v15 = vadd.f32 %v4313_v16, %v4312_v31 }
 0x9e1   :  { %v4315_v18 = vpop.f32.mrb[74].mxu1  ;;  %v6543_v20 = vadd.f32 %v4314_v15, %v6260_v58 }
 0x9e2   :  { %v4316_v21 = vpop.f32.mrb[75].mxu1 }
 0x9e3   :  { %v4317_v19 = vadd.f32 %v4316_v21, %v4315_v18  ;;  %7317 = vst [vmem:[#allocation10_spill] sm:$0xff] %v6543_v20 }
 0x9e5   :  { %v6546_v22 = vadd.f32 %v4317_v19, %v6263_v61 }
 0x9e7   :  { %7318 = vst [vmem:[#allocation11_spill] sm:$0xff] %v6546_v22  ;;  %v5372_v26 = vpack.c.bf16 %v6546_v22, %v6543_v20 }
 0x9e9   :  { %5373 = vmatprep.subr.bf16.mxu1 %v5372_v26 }
 0x9ea   :  { %5375 = vmatpush3.bf16.msra.mxu1 %v5372_v26 }
 0x9ed   :  { %4941 = vmatmul.mubr.msk.f32.vlgmr.msra.gmra.mrb[76].mxu1 %vm88_vm0, %v6270_v33 }
 0x9ee   :  { %4943 = vmatprep.mubr.msk.f32.mxu1 %vm88_vm0, %v6277_v46 }
 0x9f1   :  { %4944 = vmatmul.mubr.msk.f32.gmra.mrb[78].mxu1 %vm88_vm0, %v6284_v55 }
 0x9f2   :  { %4946 = vmatprep.mubr.msk.f32.mxu1 %vm88_vm0, %v6291_v39 }
 0x9f5   :  { %4947 = vmatmul.mubr.msk.f32.gmra.mrb[80].mxu1 %vm88_vm0, %v6298_v47 }
 0x9f6   :  { %4949 = vmatprep.mubr.msk.f32.mxu1 %vm88_vm0, %v6305_v49 }
 0x9f9   :  { %4950 = vmatmul.mubr.msk.f32.gmra.mrb[82].mxu1 %vm88_vm0, %v6312_v52 }
 0x9fa   :  { %4952 = vmatprep.mubr.msk.f32.mxu1 %vm88_vm0, %v6319_v51 }
 0x9fd   :  { %4953 = vmatmul.mubr.msk.f32.gmra.mrb[84].mxu1 %vm88_vm0, %v6326_v54 }
 0x9fe   :  { %4955 = vmatprep.mubr.msk.f32.mxu1 %vm88_vm0, %v6333_v48 }
 0xa01   :  { %4956 = vmatmul.mubr.msk.f32.gmra.mrb[86].mxu1 %vm88_vm0, %v6340_v34 }
 0xa02   :  { %4958 = vmatprep.mubr.msk.f32.mxu1 %vm88_vm0, %v6347_v57 }
 0xa05   :  { %4959 = vmatmul.mubr.msk.f32.gmra.mrb[88].mxu1 %vm88_vm0, %v6354_v59 }
 0xa06   :  { %4961 = vmatprep.mubr.msk.f32.mxu1 %vm88_vm0, %v6361_v45 }
 0xa09   :  { %4962 = vmatmul.mubr.msk.f32.gmra.mrb[90].mxu1 %vm88_vm0, %v6368_v53 }
 0xa0a   :  { %4964 = vmatprep.mubr.msk.f32.mxu1 %vm88_vm0, %v6375_v37 }
 0xa0d   :  { %4965 = vmatmul.mubr.msk.f32.gmra.mrb[92].mxu1 %vm88_vm0, %v6382_v44 }
 0xa0e   :  { %4967 = vmatprep.mubr.msk.f32.mxu1 %vm88_vm0, %v6389_v41 }
 0xa11   :  { %4968 = vmatmul.mubr.msk.f32.gmra.mrb[94].mxu1 %vm88_vm0, %v6396_v38 }
 0xa12   :  { %4970 = vmatprep.mubr.msk.f32.mxu1 %vm88_vm0, %v6403_v2 }
 0xa15   :  { %4971 = vmatmul.mubr.msk.f32.gmra.mrb[96].mxu1 %vm88_vm0, %v6410_v50 }
 0xa16   :  { %4973 = vmatprep.mubr.msk.f32.mxu1 %vm88_vm0, %v6417_v36 }
 0xa19   :  { %4974 = vmatmul.mubr.msk.f32.gmra.mrb[98].mxu1 %vm88_vm0, %v6424_v40 }
 0xa1a   :  { %4976 = vmatprep.mubr.msk.f32.mxu1 %vm88_vm0, %v6431_v0 }
 0xa1d   :  { %4977 = vmatmul.mubr.msk.f32.gmra.mrb[100].mxu1 %vm88_vm0, %v6438_v1 }
 0xa1e   :  { %4979 = vmatprep.mubr.msk.f32.mxu1 %vm88_vm0, %v6445_v3 }
 0xa21   :  { %4980 = vmatmul.mubr.msk.f32.gmra.mrb[102].mxu1 %vm88_vm0, %v6452_v4 }
 0xa22   :  { %4982 = vmatprep.mubr.msk.f32.mxu1 %vm88_vm0, %v6459_v6 }
 0xa25   :  { %4983 = vmatmul.mubr.msk.f32.gmra.mrb[104].mxu1 %vm88_vm0, %v6466_v5 }
 0xa26   :  { %4985 = vmatprep.mubr.msk.f32.mxu1 %vm88_vm0, %v6473_v7 }
 0xa29   :  { %4986 = vmatmul.mubr.msk.f32.gmra.mrb[106].mxu1 %vm88_vm0, %v6480_v8 }
 0xa2a   :  { %2536 = vmatprep.mubr.f32.mxu1 %v6487_v9 }
 0xac0   :  { %v4942_v27 = vpop.f32.mrb[76].mxu1 }
 0xac1   :  { %v2103_v24 = vmul.f32 %v4942_v27, %v6546_v22  ;;  %v1943_v28 = vpop.f32.mrb[77].mxu1 }
 0xac2   :  { %v2102_v29 = vmul.f32 %v1943_v28, %v6543_v20 }
 0xac4   :  { %v5378_v32 = vpack.c.bf16 %v2103_v24, %v2102_v29  ;;  %v4945_v63 = vpop.f32.mrb[78].mxu1 }
 0xac5   :  { %v2105_v30 = vmul.f32 %v4945_v63, %v6546_v22  ;;  %v1953_v11 = vpop.f32.mrb[79].mxu1 }
 0xac6   :  { %v2104_v12 = vmul.f32 %v1953_v11, %v6543_v20 }
 0xac8   :  { %v5382_v13 = vpack.c.bf16 %v2105_v30, %v2104_v12  ;;  %v4948_v14 = vpop.f32.mrb[80].mxu1 }
 0xac9   :  { %v2107_v31 = vmul.f32 %v4948_v14, %v6546_v22  ;;  %v1963_v16 = vpop.f32.mrb[81].mxu1 }
 0xaca   :  { %v2106_v15 = vmul.f32 %v1963_v16, %v6543_v20 }
 0xacc   :  { %v5386_v18 = vpack.c.bf16 %v2107_v31, %v2106_v15  ;;  %v4951_v21 = vpop.f32.mrb[82].mxu1 }
 0xacd   :  { %v2109_v19 = vmul.f32 %v4951_v21, %v6546_v22  ;;  %v1973_v26 = vpop.f32.mrb[83].mxu1 }
 0xace   :  { %v2108_v27 = vmul.f32 %v1973_v26, %v6543_v20 }
 0xad0   :  { %v5390_v24 = vpack.c.bf16 %v2109_v19, %v2108_v27  ;;  %v4954_v28 = vpop.f32.mrb[84].mxu1 }
 0xad1   :  { %v2111_v29 = vmul.f32 %v4954_v28, %v6546_v22  ;;  %v1983_v63 = vpop.f32.mrb[85].mxu1 }
 0xad2   :  { %v2110_v30 = vmul.f32 %v1983_v63, %v6543_v20 }
 0xad4   :  { %v5394_v11 = vpack.c.bf16 %v2111_v29, %v2110_v30  ;;  %v4957_v12 = vpop.f32.mrb[86].mxu1 }
 0xad5   :  { %v2113_v14 = vmul.f32 %v4957_v12, %v6546_v22  ;;  %v1993_v61 = vpop.f32.mrb[87].mxu1 }
 0xad6   :  { %v2112_v31 = vmul.f32 %v1993_v61, %v6543_v20 }
 0xad8   :  { %v5398_v16 = vpack.c.bf16 %v2113_v14, %v2112_v31  ;;  %v4960_v15 = vpop.f32.mrb[88].mxu1 }
 0xad9   :  { %v2115_v21 = vmul.f32 %v4960_v15, %v6546_v22  ;;  %v2003_v42 = vpop.f32.mrb[89].mxu1 }
 0xada   :  { %v2114_v19 = vmul.f32 %v2003_v42, %v6543_v20 }
 0xadc   :  { %v5402_v26 = vpack.c.bf16 %v2115_v21, %v2114_v19  ;;  %v4963_v27 = vpop.f32.mrb[90].mxu1 }
 0xadd   :  { %v2117_v28 = vmul.f32 %v4963_v27, %v6546_v22  ;;  %v2013_v58 = vpop.f32.mrb[91].mxu1 }
 0xade   :  { %v2116_v29 = vmul.f32 %v2013_v58, %v6543_v20 }
 0xae0   :  { %v5406_v63 = vpack.c.bf16 %v2117_v28, %v2116_v29  ;;  %v4966_v30 = vpop.f32.mrb[92].mxu1 }
 0xae1   :  { %v2119_v12 = vmul.f32 %v4966_v30, %v6546_v22  ;;  %v2023_v56 = vpop.f32.mrb[93].mxu1 }
 0xae2   :  { %v2118_v61 = vmul.f32 %v2023_v56, %v6543_v20 }
 0xae4   :  { %v5376_v14 = vpack.c.bf16 %v2119_v12, %v2118_v61  ;;  %v4969_v31 = vpop.f32.mrb[94].mxu1 }
 0xae5   :  { %v2121_v15 = vmul.f32 %v4969_v31, %v6546_v22  ;;  %v2033_v60 = vpop.f32.mrb[95].mxu1 }
 0xae6   :  { %v2120_v42 = vmul.f32 %v2033_v60, %v6543_v20  ;;  %5377 = vmatprep.subr.bf16.mxu0 %v5376_v14 }
 0xae7   :  { %5379 = vmatpush3.bf16.msra.mxu0 %v5378_v32 }
 0xae8   :  { %v5380_v21 = vpack.c.bf16 %v2121_v15, %v2120_v42  ;;  %v4972_v19 = vpop.f32.mrb[96].mxu1 }
 0xae9   :  { %v2123_v58 = vmul.f32 %v4972_v19, %v6546_v22  ;;  %v2043_v27 = vpop.f32.mrb[97].mxu1 }
 0xaea   :  { %v2122_v28 = vmul.f32 %v2043_v27, %v6543_v20  ;;  %5381 = vmatprep.subr.bf16.mxu0 %v5380_v21 }
 0xaeb   :  { %5383 = vmatpush3.bf16.msra.mxu0 %v5382_v13 }
 0xaec   :  { %v5384_v29 = vpack.c.bf16 %v2123_v58, %v2122_v28  ;;  %v4975_v56 = vpop.f32.mrb[98].mxu1 }
 0xaed   :  { %v2125_v30 = vmul.f32 %v4975_v56, %v6546_v22  ;;  %v2053_v12 = vpop.f32.mrb[99].mxu1 }
 0xaee   :  { %v2124_v61 = vmul.f32 %v2053_v12, %v6543_v20  ;;  %5385 = vmatprep.subr.bf16.mxu0 %v5384_v29 }
 0xaef   :  { %5387 = vmatpush3.bf16.msra.mxu0 %v5386_v18 }
 0xaf0   :  { %v5388_v60 = vpack.c.bf16 %v2125_v30, %v2124_v61  ;;  %v4978_v32 = vpop.f32.mrb[100].mxu1 }
 0xaf1   :  { %v2127_v14 = vmul.f32 %v4978_v32, %v6546_v22  ;;  %v2063_v31 = vpop.f32.mrb[101].mxu1 }
 0xaf2   :  { %v2126_v15 = vmul.f32 %v2063_v31, %v6543_v20  ;;  %5389 = vmatprep.subr.bf16.mxu0 %v5388_v60 }
 0xaf3   :  { %5391 = vmatpush3.bf16.msra.mxu0 %v5390_v24 }
 0xaf4   :  { %v5392_v42 = vpack.c.bf16 %v2127_v14, %v2126_v15  ;;  %v4981_v13 = vpop.f32.mrb[102].mxu1 }
 0xaf5   :  { %v2129_v21 = vmul.f32 %v4981_v13, %v6546_v22  ;;  %v2073_v19 = vpop.f32.mrb[103].mxu1 }
 0xaf6   :  { %v2128_v58 = vmul.f32 %v2073_v19, %v6543_v20  ;;  %5393 = vmatprep.subr.bf16.mxu0 %v5392_v42 }
 0xaf7   :  { %5395 = vmatpush3.bf16.msra.mxu0 %v5394_v11 }
 0xaf8   :  { %v5396_v27 = vpack.c.bf16 %v2129_v21, %v2128_v58  ;;  %v4984_v18 = vpop.f32.mrb[104].mxu1 }
 0xaf9   :  { %v2131_v28 = vmul.f32 %v4984_v18, %v6546_v22  ;;  %v2083_v29 = vpop.f32.mrb[105].mxu1 }
 0xafa   :  { %v2130_v56 = vmul.f32 %v2083_v29, %v6543_v20  ;;  %5397 = vmatprep.subr.bf16.mxu0 %v5396_v27 }
 0xafb   :  { %5399 = vmatpush3.bf16.msra.mxu0 %v5398_v16 }
 0xafc   :  { %v5400_v30 = vpack.c.bf16 %v2131_v28, %v2130_v56  ;;  %v4987_v24 = vpop.f32.mrb[106].mxu1 }
 0xafd   :  { %v2133_v12 = vmul.f32 %v4987_v24, %v6546_v22  ;;  %v2093_v61 = vpop.f32.mrb[107].mxu1 }
 0xafe   :  { %v2132_v60 = vmul.f32 %v2093_v61, %v6543_v20  ;;  %5401 = vmatprep.subr.bf16.mxu0 %v5400_v30 }
 0xaff   :  { %5403 = vmatpush3.bf16.msra.mxu0 %v5402_v26 }
 0xb00   :  { %v5404_v32 = vpack.c.bf16 %v2133_v12, %v2132_v60 }
 0xb02   :  { %5405 = vmatprep.subr.bf16.mxu0 %v5404_v32 }
 0xb03   :  { %5407 = vmatpush3.bf16.msra.mxu0 %v5406_v63 }
 0xb06   :  { %2199 = vmatmul.mubr.f32.vlgmr.msra.gmra.mrb[104].mxu0 %v6525_v10 }
 0xb07   :  { %2203 = vmatprep.mubr.f32.mxu0 %v6531_v17 }
 0xb0a   :  { %2204 = vmatmul.mubr.f32.gmra.mrb[106].mxu0 %v6537_v23 }
 0xb0b   :  { %4992 = vmatprep.mubr.msk.f32.mxu0 %vm88_vm0, %v6255_v25 }
 0xbd9   :  { %v4384_v11 = vpop.f32.mrb[104].mxu0 }
 0xbda   :  { %v4385_v16 = vpop.f32.mrb[105].mxu0 }
 0xbdb   :  { %v4386_v14 = vadd.f32 %v4385_v16, %v4384_v11 }
 0xbdd   :  { %v4387_v31 = vpop.f32.mrb[106].mxu0  ;;  %v6651_v26 = vadd.f32 %v4386_v14, %v6543_v20 }
 0xbde   :  { %v4388_v15 = vpop.f32.mrb[107].mxu0 }
 0xbdf   :  { %v4389_v42 = vadd.f32 %v4388_v15, %v4387_v31 }
 0xbe1   :  { %v6654_v63 = vadd.f32 %v4389_v42, %v6546_v22 }
 0xbe3   :  { %v5408_v13 = vpack.c.bf16 %v6654_v63, %v6651_v26 }
 0xbe5   :  { %5409 = vmatprep.subr.bf16.mxu0 %v5408_v13 }
 0xbe6   :  { %5411 = vmatpush3.bf16.msra.mxu0 %v5408_v13 }
 0xbe9   :  { %4993 = vmatmul.mubr.msk.f32.vlgmr.msra.gmra.mrb[108].mxu0 %vm88_vm0, %v6270_v33 }
 0xbea   :  { %4995 = vmatprep.mubr.msk.f32.mxu0 %vm88_vm0, %v6277_v46 }
 0xbed   :  { %4996 = vmatmul.mubr.msk.f32.gmra.mrb[110].mxu0 %vm88_vm0, %v6284_v55 }
 0xbee   :  { %4998 = vmatprep.mubr.msk.f32.mxu0 %vm88_vm0, %v6291_v39 }
 0xbf1   :  { %4999 = vmatmul.mubr.msk.f32.gmra.mrb[112].mxu0 %vm88_vm0, %v6298_v47 }
 0xbf2   :  { %5001 = vmatprep.mubr.msk.f32.mxu0 %vm88_vm0, %v6305_v49 }
 0xbf5   :  { %5002 = vmatmul.mubr.msk.f32.gmra.mrb[114].mxu0 %vm88_vm0, %v6312_v52 }
 0xbf6   :  { %5004 = vmatprep.mubr.msk.f32.mxu0 %vm88_vm0, %v6319_v51 }
 0xbf9   :  { %5005 = vmatmul.mubr.msk.f32.gmra.mrb[116].mxu0 %vm88_vm0, %v6326_v54 }
 0xbfa   :  { %5007 = vmatprep.mubr.msk.f32.mxu0 %vm88_vm0, %v6333_v48 }
 0xbfd   :  { %5008 = vmatmul.mubr.msk.f32.gmra.mrb[118].mxu0 %vm88_vm0, %v6340_v34 }
 0xbfe   :  { %5010 = vmatprep.mubr.msk.f32.mxu0 %vm88_vm0, %v6347_v57 }
 0xc01   :  { %5011 = vmatmul.mubr.msk.f32.gmra.mrb[120].mxu0 %vm88_vm0, %v6354_v59 }
 0xc02   :  { %5013 = vmatprep.mubr.msk.f32.mxu0 %vm88_vm0, %v6361_v45 }
 0xc05   :  { %5014 = vmatmul.mubr.msk.f32.gmra.mrb[122].mxu0 %vm88_vm0, %v6368_v53 }
 0xc06   :  { %5016 = vmatprep.mubr.msk.f32.mxu0 %vm88_vm0, %v6375_v37 }
 0xc09   :  { %5017 = vmatmul.mubr.msk.f32.gmra.mrb[124].mxu0 %vm88_vm0, %v6382_v44 }
 0xc0a   :  { %5019 = vmatprep.mubr.msk.f32.mxu0 %vm88_vm0, %v6389_v41 }
 0xc0d   :  { %5020 = vmatmul.mubr.msk.f32.gmra.mrb[126].mxu0 %vm88_vm0, %v6396_v38 }
 0xc0e   :  { %5022 = vmatprep.mubr.msk.f32.mxu0 %vm88_vm0, %v6403_v2 }
 0xc11   :  { %5023 = vmatmul.mubr.msk.f32.gmra.mrb[128].mxu0 %vm88_vm0, %v6410_v50 }
 0xc12   :  { %5025 = vmatprep.mubr.msk.f32.mxu0 %vm88_vm0, %v6417_v36 }
 0xc15   :  { %5026 = vmatmul.mubr.msk.f32.gmra.mrb[130].mxu0 %vm88_vm0, %v6424_v40 }
 0xc16   :  { %5028 = vmatprep.mubr.msk.f32.mxu0 %vm88_vm0, %v6431_v0 }
 0xc19   :  { %5029 = vmatmul.mubr.msk.f32.gmra.mrb[132].mxu0 %vm88_vm0, %v6438_v1 }
 0xc1a   :  { %5031 = vmatprep.mubr.msk.f32.mxu0 %vm88_vm0, %v6445_v3 }
 0xc1d   :  { %5032 = vmatmul.mubr.msk.f32.gmra.mrb[134].mxu0 %vm88_vm0, %v6452_v4 }
 0xc1e   :  { %5034 = vmatprep.mubr.msk.f32.mxu0 %vm88_vm0, %v6459_v6 }
 0xc21   :  { %5035 = vmatmul.mubr.msk.f32.gmra.mrb[136].mxu0 %vm88_vm0, %v6466_v5 }
 0xc22   :  { %5037 = vmatprep.mubr.msk.f32.mxu0 %vm88_vm0, %v6473_v7 }
 0xc25   :  { %5038 = vmatmul.mubr.msk.f32.gmra.mrb[138].mxu0 %vm88_vm0, %v6480_v8 }
 0xc26   :  { %2874 = vmatprep.mubr.f32.mxu0 %v6487_v9 }
 0xcbc   :  { %v4994_v21 = vpop.f32.mrb[108].mxu0 }
 0xcbd   :  { %v2441_v19 = vmul.f32 %v4994_v21, %v6654_v63  ;;  %v2281_v58 = vpop.f32.mrb[109].mxu0 }
 0xcbe   :  { %v2440_v27 = vmul.f32 %v2281_v58, %v6651_v26 }
 0xcc0   :  { %v5414_v18 = vpack.c.bf16 %v2441_v19, %v2440_v27  ;;  %v4997_v28 = vpop.f32.mrb[110].mxu0 }
 0xcc1   :  { %v2443_v29 = vmul.f32 %v4997_v28, %v6654_v63  ;;  %v2291_v56 = vpop.f32.mrb[111].mxu0 }
 0xcc2   :  { %v2442_v30 = vmul.f32 %v2291_v56, %v6651_v26 }
 0xcc4   :  { %v5418_v24 = vpack.c.bf16 %v2443_v29, %v2442_v30  ;;  %v5000_v12 = vpop.f32.mrb[112].mxu0 }
 0xcc5   :  { %v2445_v61 = vmul.f32 %v5000_v12, %v6654_v63  ;;  %v2301_v60 = vpop.f32.mrb[113].mxu0 }
 0xcc6   :  { %v2444_v32 = vmul.f32 %v2301_v60, %v6651_v26 }
 0xcc8   :  { %v5422_v11 = vpack.c.bf16 %v2445_v61, %v2444_v32  ;;  %v5003_v16 = vpop.f32.mrb[114].mxu0 }
 0xcc9   :  { %v2447_v14 = vmul.f32 %v5003_v16, %v6654_v63  ;;  %v2311_v31 = vpop.f32.mrb[115].mxu0 }
 0xcca   :  { %v2446_v15 = vmul.f32 %v2311_v31, %v6651_v26 }
 0xccc   :  { %v5426_v42 = vpack.c.bf16 %v2447_v14, %v2446_v15  ;;  %v5006_v13 = vpop.f32.mrb[116].mxu0 }
 0xccd   :  { %v2449_v21 = vmul.f32 %v5006_v13, %v6654_v63  ;;  %v2321_v19 = vpop.f32.mrb[117].mxu0 }
 0xcce   :  { %v2448_v58 = vmul.f32 %v2321_v19, %v6651_v26 }
 0xcd0   :  { %v5430_v27 = vpack.c.bf16 %v2449_v21, %v2448_v58  ;;  %v5009_v28 = vpop.f32.mrb[118].mxu0 }
 0xcd1   :  { %v2451_v29 = vmul.f32 %v5009_v28, %v6654_v63  ;;  %v2331_v56 = vpop.f32.mrb[119].mxu0 }
 0xcd2   :  { %v2450_v30 = vmul.f32 %v2331_v56, %v6651_v26 }
 0xcd4   :  { %v5434_v12 = vpack.c.bf16 %v2451_v29, %v2450_v30  ;;  %v5012_v61 = vpop.f32.mrb[120].mxu0 }
 0xcd5   :  { %v2453_v60 = vmul.f32 %v5012_v61, %v6654_v63  ;;  %v2341_v32 = vpop.f32.mrb[121].mxu0 }
 0xcd6   :  { %v2452_v16 = vmul.f32 %v2341_v32, %v6651_v26 }
 0xcd8   :  { %v5438_v14 = vpack.c.bf16 %v2453_v60, %v2452_v16  ;;  %v5015_v31 = vpop.f32.mrb[122].mxu0 }
 0xcd9   :  { %v2455_v15 = vmul.f32 %v5015_v31, %v6654_v63  ;;  %v2351_v13 = vpop.f32.mrb[123].mxu0 }
 0xcda   :  { %v2454_v21 = vmul.f32 %v2351_v13, %v6651_v26 }
 0xcdc   :  { %v5442_v19 = vpack.c.bf16 %v2455_v15, %v2454_v21  ;;  %v5018_v58 = vpop.f32.mrb[124].mxu0 }
 0xcdd   :  { %v2457_v28 = vmul.f32 %v5018_v58, %v6654_v63  ;;  %v2361_v22 = vpop.f32.mrb[125].mxu0 }
 0xcde   :  { %v2456_v29 = vmul.f32 %v2361_v22, %v6651_v26 }
 0xce0   :  { %v5412_v56 = vpack.c.bf16 %v2457_v28, %v2456_v29  ;;  %v5021_v30 = vpop.f32.mrb[126].mxu0 }
 0xce1   :  { %v2459_v61 = vmul.f32 %v5021_v30, %v6654_v63  ;;  %v2371_v20 = vpop.f32.mrb[127].mxu0 }
 0xce2   :  { %v2458_v60 = vmul.f32 %v2371_v20, %v6651_v26  ;;  %5413 = vmatprep.subr.bf16.mxu1 %v5412_v56 }
 0xce3   :  { %5415 = vmatpush3.bf16.msra.mxu1 %v5414_v18 }
 0xce4   :  { %v5416_v32 = vpack.c.bf16 %v2459_v61, %v2458_v60  ;;  %v5024_v16 = vpop.f32.mrb[128].mxu0 }
 0xce5   :  { %v2461_v31 = vmul.f32 %v5024_v16, %v6654_v63  ;;  %v2381_v15 = vpop.f32.mrb[129].mxu0 }
 0xce6   :  { %v2460_v13 = vmul.f32 %v2381_v15, %v6651_v26  ;;  %5417 = vmatprep.subr.bf16.mxu1 %v5416_v32 }
 0xce7   :  { %5419 = vmatpush3.bf16.msra.mxu1 %v5418_v24 }
 0xce8   :  { %v5420_v21 = vpack.c.bf16 %v2461_v31, %v2460_v13  ;;  %v5027_v22 = vpop.f32.mrb[130].mxu0 }
 0xce9   :  { %v2463_v58 = vmul.f32 %v5027_v22, %v6654_v63  ;;  %v2391_v28 = vpop.f32.mrb[131].mxu0 }
 0xcea   :  { %v2462_v29 = vmul.f32 %v2391_v28, %v6651_v26  ;;  %5421 = vmatprep.subr.bf16.mxu1 %v5420_v21 }
 0xceb   :  { %5423 = vmatpush3.bf16.msra.mxu1 %v5422_v11 }
 0xcec   :  { %v5424_v20 = vpack.c.bf16 %v2463_v58, %v2462_v29  ;;  %v5030_v18 = vpop.f32.mrb[132].mxu0 }
 0xced   :  { %v2465_v56 = vmul.f32 %v5030_v18, %v6654_v63  ;;  %v2401_v30 = vpop.f32.mrb[133].mxu0 }
 0xcee   :  { %v2464_v61 = vmul.f32 %v2401_v30, %v6651_v26  ;;  %5425 = vmatprep.subr.bf16.mxu1 %v5424_v20 }
 0xcef   :  { %5427 = vmatpush3.bf16.msra.mxu1 %v5426_v42 }
 0xcf0   :  { %v5428_v60 = vpack.c.bf16 %v2465_v56, %v2464_v61  ;;  %v5033_v24 = vpop.f32.mrb[134].mxu0 }
 0xcf1   :  { %v2467_v32 = vmul.f32 %v5033_v24, %v6654_v63  ;;  %v2411_v16 = vpop.f32.mrb[135].mxu0 }
 0xcf2   :  { %v2466_v31 = vmul.f32 %v2411_v16, %v6651_v26  ;;  %5429 = vmatprep.subr.bf16.mxu1 %v5428_v60 }
 0xcf3   :  { %5431 = vmatpush3.bf16.msra.mxu1 %v5430_v27 }
 0xcf4   :  { %v5432_v15 = vpack.c.bf16 %v2467_v32, %v2466_v31  ;;  %v5036_v11 = vpop.f32.mrb[136].mxu0 }
 0xcf5   :  { %v2469_v13 = vmul.f32 %v5036_v11, %v6654_v63  ;;  %v2421_v21 = vpop.f32.mrb[137].mxu0 }
 0xcf6   :  { %v2468_v22 = vmul.f32 %v2421_v21, %v6651_v26  ;;  %5433 = vmatprep.subr.bf16.mxu1 %v5432_v15 }
 0xcf7   :  { %5435 = vmatpush3.bf16.msra.mxu1 %v5434_v12 }
 0xcf8   :  { %v5436_v58 = vpack.c.bf16 %v2469_v13, %v2468_v22  ;;  %v5039_v42 = vpop.f32.mrb[138].mxu0 }
 0xcf9   :  { %v2471_v28 = vmul.f32 %v5039_v42, %v6654_v63  ;;  %v2431_v29 = vpop.f32.mrb[139].mxu0 }
 0xcfa   :  { %v2470_v20 = vmul.f32 %v2431_v29, %v6651_v26  ;;  %5437 = vmatprep.subr.bf16.mxu1 %v5436_v58 }
 0xcfb   :  { %5439 = vmatpush3.bf16.msra.mxu1 %v5438_v14 }
 0xcfc   :  { %v5440_v18 = vpack.c.bf16 %v2471_v28, %v2470_v20 }
 0xcfe   :  { %5441 = vmatprep.subr.bf16.mxu1 %v5440_v18 }
 0xcff   :  { %5443 = vmatpush3.bf16.msra.mxu1 %v5442_v19 }
 0xd02   :  { %2537 = vmatmul.mubr.f32.vlgmr.msra.gmra.mrb[108].mxu1 %v6525_v10 }
 0xd03   :  { %2541 = vmatprep.mubr.f32.mxu1 %v6531_v17 }
 0xd06   :  { %2542 = vmatmul.mubr.f32.gmra.mrb[110].mxu1 %v6537_v23 }
 0xd07   :  { %5044 = vmatprep.mubr.msk.f32.mxu1 %vm88_vm0, %v6255_v25 }
 0xdd5   :  { %v4456_v27 = vpop.f32.mrb[108].mxu1 }
 0xdd6   :  { %v4457_v12 = vpop.f32.mrb[109].mxu1 }
 0xdd7   :  { %v4458_v56 = vadd.f32 %v4457_v12, %v4456_v27 }
 0xdd9   :  { %v4459_v30 = vpop.f32.mrb[110].mxu1  ;;  %v6759_v14 = vadd.f32 %v4458_v56, %v6651_v26 }
 0xdda   :  { %v4460_v61 = vpop.f32.mrb[111].mxu1 }
 0xddb   :  { %v4461_v60 = vadd.f32 %v4460_v61, %v4459_v30 }
 0xddd   :  { %v6762_v19 = vadd.f32 %v4461_v60, %v6654_v63 }
 0xddf   :  { %v5444_v24 = vpack.c.bf16 %v6762_v19, %v6759_v14 }
 0xde1   :  { %5445 = vmatprep.subr.bf16.mxu1 %v5444_v24 }
 0xde2   :  { %5447 = vmatpush3.bf16.msra.mxu1 %v5444_v24 }
 0xde5   :  { %5045 = vmatmul.mubr.msk.f32.vlgmr.msra.gmra.mrb[112].mxu1 %vm88_vm0, %v6270_v33 }
 0xde6   :  { %5047 = vmatprep.mubr.msk.f32.mxu1 %vm88_vm0, %v6277_v46 }
 0xde9   :  { %5048 = vmatmul.mubr.msk.f32.gmra.mrb[114].mxu1 %vm88_vm0, %v6284_v55 }
 0xdea   :  { %5050 = vmatprep.mubr.msk.f32.mxu1 %vm88_vm0, %v6291_v39 }
 0xded   :  { %5051 = vmatmul.mubr.msk.f32.gmra.mrb[116].mxu1 %vm88_vm0, %v6298_v47 }
 0xdee   :  { %5053 = vmatprep.mubr.msk.f32.mxu1 %vm88_vm0, %v6305_v49 }
 0xdf1   :  { %5054 = vmatmul.mubr.msk.f32.gmra.mrb[118].mxu1 %vm88_vm0, %v6312_v52 }
 0xdf2   :  { %5056 = vmatprep.mubr.msk.f32.mxu1 %vm88_vm0, %v6319_v51 }
 0xdf5   :  { %5057 = vmatmul.mubr.msk.f32.gmra.mrb[120].mxu1 %vm88_vm0, %v6326_v54 }
 0xdf6   :  { %5059 = vmatprep.mubr.msk.f32.mxu1 %vm88_vm0, %v6333_v48 }
 0xdf9   :  { %5060 = vmatmul.mubr.msk.f32.gmra.mrb[122].mxu1 %vm88_vm0, %v6340_v34 }
 0xdfa   :  { %5062 = vmatprep.mubr.msk.f32.mxu1 %vm88_vm0, %v6347_v57 }
 0xdfd   :  { %5063 = vmatmul.mubr.msk.f32.gmra.mrb[124].mxu1 %vm88_vm0, %v6354_v59 }
 0xdfe   :  { %5065 = vmatprep.mubr.msk.f32.mxu1 %vm88_vm0, %v6361_v45 }
 0xe01   :  { %5066 = vmatmul.mubr.msk.f32.gmra.mrb[126].mxu1 %vm88_vm0, %v6368_v53 }
 0xe02   :  { %5068 = vmatprep.mubr.msk.f32.mxu1 %vm88_vm0, %v6375_v37 }
 0xe05   :  { %5069 = vmatmul.mubr.msk.f32.gmra.mrb[128].mxu1 %vm88_vm0, %v6382_v44 }
 0xe06   :  { %5071 = vmatprep.mubr.msk.f32.mxu1 %vm88_vm0, %v6389_v41 }
 0xe09   :  { %5072 = vmatmul.mubr.msk.f32.gmra.mrb[130].mxu1 %vm88_vm0, %v6396_v38 }
 0xe0a   :  { %5074 = vmatprep.mubr.msk.f32.mxu1 %vm88_vm0, %v6403_v2 }
 0xe0d   :  { %5075 = vmatmul.mubr.msk.f32.gmra.mrb[132].mxu1 %vm88_vm0, %v6410_v50 }
 0xe0e   :  { %5077 = vmatprep.mubr.msk.f32.mxu1 %vm88_vm0, %v6417_v36 }
 0xe11   :  { %5078 = vmatmul.mubr.msk.f32.gmra.mrb[134].mxu1 %vm88_vm0, %v6424_v40 }
 0xe12   :  { %5080 = vmatprep.mubr.msk.f32.mxu1 %vm88_vm0, %v6431_v0 }
 0xe15   :  { %5081 = vmatmul.mubr.msk.f32.gmra.mrb[136].mxu1 %vm88_vm0, %v6438_v1 }
 0xe16   :  { %5083 = vmatprep.mubr.msk.f32.mxu1 %vm88_vm0, %v6445_v3 }
 0xe19   :  { %5084 = vmatmul.mubr.msk.f32.gmra.mrb[138].mxu1 %vm88_vm0, %v6452_v4 }
 0xe1a   :  { %5086 = vmatprep.mubr.msk.f32.mxu1 %vm88_vm0, %v6459_v6 }
 0xe1d   :  { %5087 = vmatmul.mubr.msk.f32.gmra.mrb[140].mxu1 %vm88_vm0, %v6466_v5 }
 0xe1e   :  { %5089 = vmatprep.mubr.msk.f32.mxu1 %vm88_vm0, %v6473_v7 }
 0xe21   :  { %5090 = vmatmul.mubr.msk.f32.gmra.mrb[142].mxu1 %vm88_vm0, %v6480_v8 }
 0xe22   :  { %3212 = vmatprep.mubr.f32.mxu1 %v6487_v9 }
 0xeb8   :  { %v5046_v25 = vpop.f32.mrb[112].mxu1 }
 0xeb9   :  { %v2779_v33 = vmul.f32 %v5046_v25, %v6762_v19  ;;  %v2619_v46 = vpop.f32.mrb[113].mxu1 }
 0xeba   :  { %v2778_v55 = vmul.f32 %v2619_v46, %v6759_v14 }
 0xebc   :  { %v5450_v39 = vpack.c.bf16 %v2779_v33, %v2778_v55  ;;  %v5049_v47 = vpop.f32.mrb[114].mxu1 }
 0xebd   :  { %v2781_v49 = vmul.f32 %v5049_v47, %v6762_v19  ;;  %v2629_v52 = vpop.f32.mrb[115].mxu1 }
 0xebe   :  { %v2780_v51 = vmul.f32 %v2629_v52, %v6759_v14 }
 0xec0   :  { %v5454_v54 = vpack.c.bf16 %v2781_v49, %v2780_v51  ;;  %v5052_v48 = vpop.f32.mrb[116].mxu1 }
 0xec1   :  { %v2783_v34 = vmul.f32 %v5052_v48, %v6762_v19  ;;  %v2639_v57 = vpop.f32.mrb[117].mxu1 }
 0xec2   :  { %v2782_v59 = vmul.f32 %v2639_v57, %v6759_v14 }
 0xec4   :  { %v5458_v45 = vpack.c.bf16 %v2783_v34, %v2782_v59  ;;  %v5055_v53 = vpop.f32.mrb[118].mxu1 }
 0xec5   :  { %v2785_v37 = vmul.f32 %v5055_v53, %v6762_v19  ;;  %v2649_v44 = vpop.f32.mrb[119].mxu1 }
 0xec6   :  { %v2784_v41 = vmul.f32 %v2649_v44, %v6759_v14 }
 0xec8   :  { %v5462_v38 = vpack.c.bf16 %v2785_v37, %v2784_v41  ;;  %v5058_v2 = vpop.f32.mrb[120].mxu1 }
 0xec9   :  { %v2787_v50 = vmul.f32 %v5058_v2, %v6762_v19  ;;  %v2659_v36 = vpop.f32.mrb[121].mxu1 }
 0xeca   :  { %v2786_v40 = vmul.f32 %v2659_v36, %v6759_v14 }
 0xecc   :  { %v5466_v0 = vpack.c.bf16 %v2787_v50, %v2786_v40  ;;  %v5061_v1 = vpop.f32.mrb[122].mxu1 }
 0xecd   :  { %v2789_v3 = vmul.f32 %v5061_v1, %v6762_v19  ;;  %v2669_v4 = vpop.f32.mrb[123].mxu1 }
 0xece   :  { %v2788_v6 = vmul.f32 %v2669_v4, %v6759_v14 }
 0xed0   :  { %v5470_v5 = vpack.c.bf16 %v2789_v3, %v2788_v6  ;;  %v5064_v7 = vpop.f32.mrb[124].mxu1 }
 0xed1   :  { %v2791_v8 = vmul.f32 %v5064_v7, %v6762_v19  ;;  %v2679_v9 = vpop.f32.mrb[125].mxu1 }
 0xed2   :  { %v2790_v32 = vmul.f32 %v2679_v9, %v6759_v14 }
 0xed4   :  { %v5474_v16 = vpack.c.bf16 %v2791_v8, %v2790_v32  ;;  %v5067_v31 = vpop.f32.mrb[126].mxu1  ;;  %v6882_v32 = vld [vmem:[%s7302_s2 + $0x8] sm:$0xff] }
 0xed5   :  { %v2793_v15 = vmul.f32 %v5067_v31, %v6762_v19  ;;  %v2689_v11 = vpop.f32.mrb[127].mxu1  ;;  %v6896_v31 = vld [vmem:[%s7302_s2 + $0x18] sm:$0xff] }
 0xed6   :  { %v2792_v13 = vmul.f32 %v2689_v11, %v6759_v14  ;;  %v6910_v11 = vld [vmem:[%s7302_s2 + $0x28] sm:$0xff] }
 0xed8   :  { %v5478_v21 = vpack.c.bf16 %v2793_v15, %v2792_v13  ;;  %v5070_v22 = vpop.f32.mrb[128].mxu1  ;;  %v6903_v15 = vld [vmem:[%s7302_s2 + $0x20] sm:$0xff]  ;;  %v6917_v13 = vld [vmem:[%s7302_s2 + $0x30] sm:$0xff] }
 0xed9   :  { %v2795_v58 = vmul.f32 %v5070_v22, %v6762_v19  ;;  %v2699_v42 = vpop.f32.mrb[129].mxu1  ;;  %v6931_v22 = vld [vmem:[%s7302_s2 + $0x40] sm:$0xff] }
 0xeda   :  { %v2794_v28 = vmul.f32 %v2699_v42, %v6759_v14  ;;  %v6945_v42 = vld [vmem:[%s7302_s2 + $0x50] sm:$0xff] }
 0xedc   :  { %v5448_v29 = vpack.c.bf16 %v2795_v58, %v2794_v28  ;;  %v5073_v20 = vpop.f32.mrb[130].mxu1  ;;  %v6938_v58 = vld [vmem:[%s7302_s2 + $0x48] sm:$0xff]  ;;  %v6952_v28 = vld [vmem:[%s7302_s2 + $0x58] sm:$0xff] }
 0xedd   :  { %v2797_v18 = vmul.f32 %v5073_v20, %v6762_v19  ;;  %v2709_v27 = vpop.f32.mrb[131].mxu1  ;;  %v6966_v20 = vld [vmem:[%s7302_s2 + $0x68] sm:$0xff] }
 0xede   :  { %v2796_v12 = vmul.f32 %v2709_v27, %v6759_v14  ;;  %5449 = vmatprep.subr.bf16.mxu0 %v5448_v29  ;;  %v6959_v29 = vld [vmem:[%s7302_s2 + $0x60] sm:$0xff]  ;;  %v6980_v27 = vld [vmem:[%s7302_s2 + $0x78] sm:$0xff] }
 0xedf   :  { %5451 = vmatpush3.bf16.msra.mxu0 %v5450_v39 }
 0xee0   :  { %v5452_v56 = vpack.c.bf16 %v2797_v18, %v2796_v12  ;;  %v5076_v30 = vpop.f32.mrb[132].mxu1  ;;  %v6973_v18 = vld [vmem:[%s7302_s2 + $0x70] sm:$0xff]  ;;  %v6987_v12 = vld [vmem:[%s7302_s2 + $0x80] sm:$0xff] }
 0xee1   :  { %v2799_v61 = vmul.f32 %v5076_v30, %v6762_v19  ;;  %v2719_v60 = vpop.f32.mrb[133].mxu1  ;;  %v7001_v30 = vld [vmem:[%s7302_s2 + $0x90] sm:$0xff] }
 0xee2   :  { %v2798_v24 = vmul.f32 %v2719_v60, %v6759_v14  ;;  %5453 = vmatprep.subr.bf16.mxu0 %v5452_v56  ;;  %v6994_v56 = vld [vmem:[%s7302_s2 + $0x88] sm:$0xff]  ;;  %v7015_v60 = vld [vmem:[%s7302_s2 + $0xa0] sm:$0xff] }
 0xee3   :  { %5455 = vmatpush3.bf16.msra.mxu0 %v5454_v54 }
 0xee4   :  { %v5456_v25 = vpack.c.bf16 %v2799_v61, %v2798_v24  ;;  %v5079_v33 = vpop.f32.mrb[134].mxu1  ;;  %v7008_v61 = vld [vmem:[%s7302_s2 + $0x98] sm:$0xff]  ;;  %v7022_v24 = vld [vmem:[%s7302_s2 + $0xa8] sm:$0xff] }
 0xee5   :  { %v2801_v46 = vmul.f32 %v5079_v33, %v6762_v19  ;;  %v2729_v55 = vpop.f32.mrb[135].mxu1  ;;  %v7036_v33 = vld [vmem:[%s7302_s2 + $0xb8] sm:$0xff] }
 0xee6   :  { %v2800_v47 = vmul.f32 %v2729_v55, %v6759_v14  ;;  %5457 = vmatprep.subr.bf16.mxu0 %v5456_v25  ;;  %v7029_v25 = vld [vmem:[%s7302_s2 + $0xb0] sm:$0xff]  ;;  %v7050_v55 = vld [vmem:[%s7302_s2 + $0xc8] sm:$0xff] }
 0xee7   :  { %5459 = vmatpush3.bf16.msra.mxu0 %v5458_v45 }
 0xee8   :  { %v5460_v49 = vpack.c.bf16 %v2801_v46, %v2800_v47  ;;  %v5082_v39 = vpop.f32.mrb[136].mxu1  ;;  %v7043_v46 = vld [vmem:[%s7302_s2 + $0xc0] sm:$0xff]  ;;  %v7057_v47 = vld [vmem:[%s7302_s2 + $0xd0] sm:$0xff] }
 0xee9   :  { %v2803_v52 = vmul.f32 %v5082_v39, %v6762_v19  ;;  %v2739_v51 = vpop.f32.mrb[137].mxu1  ;;  %v7071_v39 = vld [vmem:[%s7302_s2 + $0xe0] sm:$0xff] }
 0xeea   :  { %v2802_v48 = vmul.f32 %v2739_v51, %v6759_v14  ;;  %5461 = vmatprep.subr.bf16.mxu0 %v5460_v49  ;;  %v7064_v49 = vld [vmem:[%s7302_s2 + $0xd8] sm:$0xff]  ;;  %v7085_v51 = vld [vmem:[%s7302_s2 + $0xf0] sm:$0xff] }
 0xeeb   :  { %5463 = vmatpush3.bf16.msra.mxu0 %v5462_v38 }
 0xeec   :  { %v5464_v34 = vpack.c.bf16 %v2803_v52, %v2802_v48  ;;  %v5085_v54 = vpop.f32.mrb[138].mxu1  ;;  %v7078_v52 = vld [vmem:[%s7302_s2 + $0xe8] sm:$0xff]  ;;  %v7092_v48 = vld [vmem:[%s7302_s2 + $0xf8] sm:$0xff] }
 0xeed   :  { %v2805_v57 = vmul.f32 %v5085_v54, %v6762_v19  ;;  %v2749_v59 = vpop.f32.mrb[139].mxu1 }
 0xeee   :  { %v2804_v53 = vmul.f32 %v2749_v59, %v6759_v14  ;;  %5465 = vmatprep.subr.bf16.mxu0 %v5464_v34  ;;  %v5626_v34 = vld [vmem:[%s7303_s3 + $0x8] sm:$0xff] }
 0xeef   :  { %5467 = vmatpush3.bf16.msra.mxu0 %v5466_v0  ;;  %v6867_v0 = vld [vmem:[%s7302_s2] sm:$0xff] }
 0xef0   :  { %v5468_v37 = vpack.c.bf16 %v2805_v57, %v2804_v53  ;;  %v5088_v45 = vpop.f32.mrb[140].mxu1 }
 0xef1   :  { %v2807_v44 = vmul.f32 %v5088_v45, %v6762_v19  ;;  %v2759_v41 = vpop.f32.mrb[141].mxu1 }
 0xef2   :  { %v2806_v2 = vmul.f32 %v2759_v41, %v6759_v14  ;;  %5469 = vmatprep.subr.bf16.mxu0 %v5468_v37 }
 0xef3   :  { %5471 = vmatpush3.bf16.msra.mxu0 %v5470_v5 }
 0xef4   :  { %v5472_v50 = vpack.c.bf16 %v2807_v44, %v2806_v2  ;;  %v5091_v38 = vpop.f32.mrb[142].mxu1 }
 0xef5   :  { %v2809_v36 = vmul.f32 %v5091_v38, %v6762_v19  ;;  %v2769_v40 = vpop.f32.mrb[143].mxu1 }
 0xef6   :  { %v2808_v1 = vmul.f32 %v2769_v40, %v6759_v14  ;;  %5473 = vmatprep.subr.bf16.mxu0 %v5472_v50 }
 0xef7   :  { %5475 = vmatpush3.bf16.msra.mxu0 %v5474_v16  ;;  %v6889_v16 = vld [vmem:[%s7302_s2 + $0x10] sm:$0xff] }
 0xef8   :  { %v5476_v3 = vpack.c.bf16 %v2809_v36, %v2808_v1 }
 0xefa   :  { %5477 = vmatprep.subr.bf16.mxu0 %v5476_v3 }
 0xefb   :  { %5479 = vmatpush3.bf16.msra.mxu0 %v5478_v21  ;;  %v6924_v21 = vld [vmem:[%s7302_s2 + $0x38] sm:$0xff] }
 0xefe   :  { %2875 = vmatmul.mubr.f32.vlgmr.msra.gmra.mrb[140].mxu0 %v6525_v10 }
 0xeff   :  { %2879 = vmatprep.mubr.f32.mxu0 %v6531_v17 }
 0xf02   :  { %2880 = vmatmul.mubr.f32.gmra.mrb[142].mxu0 %v6537_v23 }
 0xf03   :  { %5096 = vmatprep.mubr.msk.f32.mxu0 %vm88_vm0, %v6867_v0 }
 0xfd1   :  { %v4528_v4 = vpop.f32.mrb[140].mxu0 }
 0xfd2   :  { %v4529_v6 = vpop.f32.mrb[141].mxu0 }
 0xfd3   :  { %v4530_v5 = vadd.f32 %v4529_v6, %v4528_v4 }
 0xfd5   :  { %v4531_v7 = vpop.f32.mrb[142].mxu0  ;;  %v6872_v10 = vadd.f32 %v4530_v5, %v6759_v14 }
 0xfd6   :  { %v4532_v8 = vpop.f32.mrb[143].mxu0 }
 0xfd7   :  { %v4533_v9 = vadd.f32 %v4532_v8, %v4531_v7 }
 0xfd9   :  { %v6875_v17 = vadd.f32 %v4533_v9, %v6762_v19 }
 0xfdb   :  { %v5480_v23 = vpack.c.bf16 %v6875_v17, %v6872_v10 }
 0xfdd   :  { %5481 = vmatprep.subr.bf16.mxu0 %v5480_v23 }
 0xfde   :  { %5483 = vmatpush3.bf16.msra.mxu0 %v5480_v23 }
 0xfe1   :  { %5097 = vmatmul.mubr.msk.f32.vlgmr.msra.gmra.mrb[144].mxu0 %vm88_vm0, %v6882_v32 }
 0xfe2   :  { %5099 = vmatprep.mubr.msk.f32.mxu0 %vm88_vm0, %v6889_v16 }
 0xfe5   :  { %5100 = vmatmul.mubr.msk.f32.gmra.mrb[146].mxu0 %vm88_vm0, %v6896_v31 }
 0xfe6   :  { %5102 = vmatprep.mubr.msk.f32.mxu0 %vm88_vm0, %v6903_v15 }
 0xfe9   :  { %5103 = vmatmul.mubr.msk.f32.gmra.mrb[148].mxu0 %vm88_vm0, %v6910_v11 }
 0xfea   :  { %5105 = vmatprep.mubr.msk.f32.mxu0 %vm88_vm0, %v6917_v13 }
 0xfed   :  { %5106 = vmatmul.mubr.msk.f32.gmra.mrb[150].mxu0 %vm88_vm0, %v6924_v21 }
 0xfee   :  { %5108 = vmatprep.mubr.msk.f32.mxu0 %vm88_vm0, %v6931_v22 }
 0xff1   :  { %5109 = vmatmul.mubr.msk.f32.gmra.mrb[152].mxu0 %vm88_vm0, %v6938_v58 }
 0xff2   :  { %5111 = vmatprep.mubr.msk.f32.mxu0 %vm88_vm0, %v6945_v42 }
 0xff5   :  { %5112 = vmatmul.mubr.msk.f32.gmra.mrb[154].mxu0 %vm88_vm0, %v6952_v28 }
 0xff6   :  { %5114 = vmatprep.mubr.msk.f32.mxu0 %vm88_vm0, %v6959_v29 }
 0xff9   :  { %5115 = vmatmul.mubr.msk.f32.gmra.mrb[156].mxu0 %vm88_vm0, %v6966_v20 }
 0xffa   :  { %5117 = vmatprep.mubr.msk.f32.mxu0 %vm88_vm0, %v6973_v18 }
 0xffd   :  { %5118 = vmatmul.mubr.msk.f32.gmra.mrb[158].mxu0 %vm88_vm0, %v6980_v27 }
 0xffe   :  { %5120 = vmatprep.mubr.msk.f32.mxu0 %vm88_vm0, %v6987_v12 }
0x1001   :  { %5121 = vmatmul.mubr.msk.f32.gmra.mrb[160].mxu0 %vm88_vm0, %v6994_v56 }
0x1002   :  { %5123 = vmatprep.mubr.msk.f32.mxu0 %vm88_vm0, %v7001_v30 }
0x1005   :  { %5124 = vmatmul.mubr.msk.f32.gmra.mrb[162].mxu0 %vm88_vm0, %v7008_v61 }
0x1006   :  { %5126 = vmatprep.mubr.msk.f32.mxu0 %vm88_vm0, %v7015_v60 }
0x1009   :  { %5127 = vmatmul.mubr.msk.f32.gmra.mrb[164].mxu0 %vm88_vm0, %v7022_v24 }
0x100a   :  { %5129 = vmatprep.mubr.msk.f32.mxu0 %vm88_vm0, %v7029_v25 }
0x100d   :  { %5130 = vmatmul.mubr.msk.f32.gmra.mrb[166].mxu0 %vm88_vm0, %v7036_v33 }
0x100e   :  { %5132 = vmatprep.mubr.msk.f32.mxu0 %vm88_vm0, %v7043_v46 }
0x1011   :  { %5133 = vmatmul.mubr.msk.f32.gmra.mrb[168].mxu0 %vm88_vm0, %v7050_v55 }
0x1012   :  { %5135 = vmatprep.mubr.msk.f32.mxu0 %vm88_vm0, %v7057_v47 }
0x1015   :  { %5136 = vmatmul.mubr.msk.f32.gmra.mrb[170].mxu0 %vm88_vm0, %v7064_v49 }
0x1016   :  { %5138 = vmatprep.mubr.msk.f32.mxu0 %vm88_vm0, %v7071_v39 }
0x1019   :  { %5139 = vmatmul.mubr.msk.f32.gmra.mrb[172].mxu0 %vm88_vm0, %v7078_v52 }
0x101a   :  { %5141 = vmatprep.mubr.msk.f32.mxu0 %vm88_vm0, %v7085_v51 }
0x101d   :  { %5142 = vmatmul.mubr.msk.f32.gmra.mrb[174].mxu0 %vm88_vm0, %v7092_v48 }
0x101e   :  { %3550 = vmatprep.mubr.f32.mxu0 %v5626_v34 }
0x10b4   :  { %v5098_v54 = vpop.f32.mrb[144].mxu0 }
0x10b5   :  { %v3117_v57 = vmul.f32 %v5098_v54, %v6875_v17  ;;  %v2957_v59 = vpop.f32.mrb[145].mxu0 }
0x10b6   :  { %v3116_v53 = vmul.f32 %v2957_v59, %v6872_v10 }
0x10b8   :  { %v5486_v37 = vpack.c.bf16 %v3117_v57, %v3116_v53  ;;  %v5101_v45 = vpop.f32.mrb[146].mxu0 }
0x10b9   :  { %v3119_v44 = vmul.f32 %v5101_v45, %v6875_v17  ;;  %v2967_v41 = vpop.f32.mrb[147].mxu0 }
0x10ba   :  { %v3118_v2 = vmul.f32 %v2967_v41, %v6872_v10 }
0x10bc   :  { %v5490_v50 = vpack.c.bf16 %v3119_v44, %v3118_v2  ;;  %v5104_v38 = vpop.f32.mrb[148].mxu0 }
0x10bd   :  { %v3121_v36 = vmul.f32 %v5104_v38, %v6875_v17  ;;  %v2977_v40 = vpop.f32.mrb[149].mxu0 }
0x10be   :  { %v3120_v1 = vmul.f32 %v2977_v40, %v6872_v10 }
0x10c0   :  { %v5494_v3 = vpack.c.bf16 %v3121_v36, %v3120_v1  ;;  %v5107_v4 = vpop.f32.mrb[150].mxu0 }
0x10c1   :  { %v3123_v6 = vmul.f32 %v5107_v4, %v6875_v17  ;;  %v2987_v5 = vpop.f32.mrb[151].mxu0 }
0x10c2   :  { %v3122_v7 = vmul.f32 %v2987_v5, %v6872_v10 }
0x10c4   :  { %v5498_v8 = vpack.c.bf16 %v3123_v6, %v3122_v7  ;;  %v5110_v9 = vpop.f32.mrb[152].mxu0 }
0x10c5   :  { %v3125_v23 = vmul.f32 %v5110_v9, %v6875_v17  ;;  %v2997_v34 = vpop.f32.mrb[153].mxu0 }
0x10c6   :  { %v3124_v54 = vmul.f32 %v2997_v34, %v6872_v10 }
0x10c8   :  { %v5502_v57 = vpack.c.bf16 %v3125_v23, %v3124_v54  ;;  %v5113_v59 = vpop.f32.mrb[154].mxu0 }
0x10c9   :  { %v3127_v53 = vmul.f32 %v5113_v59, %v6875_v17  ;;  %v3007_v45 = vpop.f32.mrb[155].mxu0 }
0x10ca   :  { %v3126_v44 = vmul.f32 %v3007_v45, %v6872_v10 }
0x10cc   :  { %v5506_v41 = vpack.c.bf16 %v3127_v53, %v3126_v44  ;;  %v5116_v2 = vpop.f32.mrb[156].mxu0 }
0x10cd   :  { %v3129_v38 = vmul.f32 %v5116_v2, %v6875_v17  ;;  %v3017_v36 = vpop.f32.mrb[157].mxu0 }
0x10ce   :  { %v3128_v40 = vmul.f32 %v3017_v36, %v6872_v10 }
0x10d0   :  { %v5510_v1 = vpack.c.bf16 %v3129_v38, %v3128_v40  ;;  %v5119_v4 = vpop.f32.mrb[158].mxu0 }
0x10d1   :  { %v3131_v6 = vmul.f32 %v5119_v4, %v6875_v17  ;;  %v3027_v5 = vpop.f32.mrb[159].mxu0 }
0x10d2   :  { %v3130_v7 = vmul.f32 %v3027_v5, %v6872_v10 }
0x10d4   :  { %v5514_v9 = vpack.c.bf16 %v3131_v6, %v3130_v7  ;;  %v5122_v23 = vpop.f32.mrb[160].mxu0 }
0x10d5   :  { %v3133_v34 = vmul.f32 %v5122_v23, %v6875_v17  ;;  %v3037_v54 = vpop.f32.mrb[161].mxu0 }
0x10d6   :  { %v3132_v59 = vmul.f32 %v3037_v54, %v6872_v10 }
0x10d8   :  { %v5484_v53 = vpack.c.bf16 %v3133_v34, %v3132_v59  ;;  %v5125_v45 = vpop.f32.mrb[162].mxu0 }
0x10d9   :  { %v3135_v44 = vmul.f32 %v5125_v45, %v6875_v17  ;;  %v3047_v2 = vpop.f32.mrb[163].mxu0 }
0x10da   :  { %v3134_v38 = vmul.f32 %v3047_v2, %v6872_v10  ;;  %5485 = vmatprep.subr.bf16.mxu1 %v5484_v53 }
0x10db   :  { %5487 = vmatpush3.bf16.msra.mxu1 %v5486_v37 }
0x10dc   :  { %v5488_v36 = vpack.c.bf16 %v3135_v44, %v3134_v38  ;;  %v5128_v40 = vpop.f32.mrb[164].mxu0 }
0x10dd   :  { %v3137_v4 = vmul.f32 %v5128_v40, %v6875_v17  ;;  %v3057_v6 = vpop.f32.mrb[165].mxu0 }
0x10de   :  { %v3136_v5 = vmul.f32 %v3057_v6, %v6872_v10  ;;  %5489 = vmatprep.subr.bf16.mxu1 %v5488_v36 }
0x10df   :  { %5491 = vmatpush3.bf16.msra.mxu1 %v5490_v50 }
0x10e0   :  { %v5492_v7 = vpack.c.bf16 %v3137_v4, %v3136_v5  ;;  %v5131_v23 = vpop.f32.mrb[166].mxu0 }
0x10e1   :  { %v3139_v34 = vmul.f32 %v5131_v23, %v6875_v17  ;;  %v3067_v54 = vpop.f32.mrb[167].mxu0 }
0x10e2   :  { %v3138_v59 = vmul.f32 %v3067_v54, %v6872_v10  ;;  %5493 = vmatprep.subr.bf16.mxu1 %v5492_v7 }
0x10e3   :  { %5495 = vmatpush3.bf16.msra.mxu1 %v5494_v3 }
0x10e4   :  { %v5496_v53 = vpack.c.bf16 %v3139_v34, %v3138_v59  ;;  %v5134_v37 = vpop.f32.mrb[168].mxu0 }
0x10e5   :  { %v3141_v45 = vmul.f32 %v5134_v37, %v6875_v17  ;;  %v3077_v44 = vpop.f32.mrb[169].mxu0 }
0x10e6   :  { %v3140_v2 = vmul.f32 %v3077_v44, %v6872_v10  ;;  %5497 = vmatprep.subr.bf16.mxu1 %v5496_v53 }
0x10e7   :  { %5499 = vmatpush3.bf16.msra.mxu1 %v5498_v8 }
0x10e8   :  { %v5500_v38 = vpack.c.bf16 %v3141_v45, %v3140_v2  ;;  %v5137_v50 = vpop.f32.mrb[170].mxu0 }
0x10e9   :  { %v3143_v36 = vmul.f32 %v5137_v50, %v6875_v17  ;;  %v3087_v40 = vpop.f32.mrb[171].mxu0 }
0x10ea   :  { %v3142_v4 = vmul.f32 %v3087_v40, %v6872_v10  ;;  %5501 = vmatprep.subr.bf16.mxu1 %v5500_v38 }
0x10eb   :  { %5503 = vmatpush3.bf16.msra.mxu1 %v5502_v57  ;;  %v7134_v57 = vld [vmem:[%s7303_s3] sm:$0xff] }
0x10ec   :  { %v5504_v6 = vpack.c.bf16 %v3143_v36, %v3142_v4  ;;  %v5140_v3 = vpop.f32.mrb[172].mxu0 }
0x10ed   :  { %v3145_v5 = vmul.f32 %v5140_v3, %v6875_v17  ;;  %v3097_v7 = vpop.f32.mrb[173].mxu0 }
0x10ee   :  { %v3144_v23 = vmul.f32 %v3097_v7, %v6872_v10  ;;  %5505 = vmatprep.subr.bf16.mxu1 %v5504_v6 }
0x10ef   :  { %5507 = vmatpush3.bf16.msra.mxu1 %v5506_v41  ;;  %v7140_v41 = vld [vmem:[%s7303_s3 + $0x18] sm:$0xff] }
0x10f0   :  { %v5508_v34 = vpack.c.bf16 %v3145_v5, %v3144_v23  ;;  %v5143_v8 = vpop.f32.mrb[174].mxu0 }
0x10f1   :  { %v3147_v54 = vmul.f32 %v5143_v8, %v6875_v17  ;;  %v3107_v59 = vpop.f32.mrb[175].mxu0 }
0x10f2   :  { %v3146_v53 = vmul.f32 %v3107_v59, %v6872_v10  ;;  %5509 = vmatprep.subr.bf16.mxu1 %v5508_v34 }
0x10f3   :  { %5511 = vmatpush3.bf16.msra.mxu1 %v5510_v1  ;;  %v7146_v1 = vld [vmem:[%s7303_s3 + $0x10] sm:$0xff] }
0x10f4   :  { %v5512_v37 = vpack.c.bf16 %v3147_v54, %v3146_v53 }
0x10f6   :  { %5513 = vmatprep.subr.bf16.mxu1 %v5512_v37 }
0x10f7   :  { %5515 = vmatpush3.bf16.msra.mxu1 %v5514_v9 }
0x10fa   :  { %3213 = vmatmul.mubr.f32.vlgmr.msra.gmra.mrb[144].mxu1 %v7134_v57 }
0x10fb   :  { %3217 = vmatprep.mubr.f32.mxu1 %v7140_v41 }
0x10fe   :  { %3218 = vmatmul.mubr.f32.gmra.mrb[146].mxu1 %v7146_v1 }
0x10ff   :  { %5148 = vmatprep.mubr.msk.f32.mxu1 %vm88_vm0, %v6867_v0 }
0x11cd   :  { %v4600_v9 = vpop.f32.mrb[144].mxu1 }
0x11ce   :  { %v4601_v45 = vpop.f32.mrb[145].mxu1 }
0x11cf   :  { %v4602_v44 = vadd.f32 %v4601_v45, %v4600_v9 }
0x11d1   :  { %v4603_v2 = vpop.f32.mrb[146].mxu1  ;;  %v7152_v36 = vadd.f32 %v4602_v44, %v6872_v10 }
0x11d2   :  { %v4604_v38 = vpop.f32.mrb[147].mxu1 }
0x11d3   :  { %v4605_v50 = vadd.f32 %v4604_v38, %v4603_v2 }
0x11d5   :  { %v7155_v40 = vadd.f32 %v4605_v50, %v6875_v17 }
0x11d7   :  { %v5516_v4 = vpack.c.bf16 %v7155_v40, %v7152_v36 }
0x11d9   :  { %5517 = vmatprep.subr.bf16.mxu1 %v5516_v4 }
0x11da   :  { %5519 = vmatpush3.bf16.msra.mxu1 %v5516_v4 }
0x11dd   :  { %5149 = vmatmul.mubr.msk.f32.vlgmr.msra.gmra.mrb[148].mxu1 %vm88_vm0, %v6882_v32 }
0x11de   :  { %5151 = vmatprep.mubr.msk.f32.mxu1 %vm88_vm0, %v6889_v16 }
0x11e1   :  { %5152 = vmatmul.mubr.msk.f32.gmra.mrb[150].mxu1 %vm88_vm0, %v6896_v31 }
0x11e2   :  { %5154 = vmatprep.mubr.msk.f32.mxu1 %vm88_vm0, %v6903_v15 }
0x11e5   :  { %5155 = vmatmul.mubr.msk.f32.gmra.mrb[152].mxu1 %vm88_vm0, %v6910_v11 }
0x11e6   :  { %5157 = vmatprep.mubr.msk.f32.mxu1 %vm88_vm0, %v6917_v13 }
0x11e9   :  { %5158 = vmatmul.mubr.msk.f32.gmra.mrb[154].mxu1 %vm88_vm0, %v6924_v21 }
0x11ea   :  { %5160 = vmatprep.mubr.msk.f32.mxu1 %vm88_vm0, %v6931_v22 }
0x11ed   :  { %5161 = vmatmul.mubr.msk.f32.gmra.mrb[156].mxu1 %vm88_vm0, %v6938_v58 }
0x11ee   :  { %5163 = vmatprep.mubr.msk.f32.mxu1 %vm88_vm0, %v6945_v42 }
0x11f1   :  { %5164 = vmatmul.mubr.msk.f32.gmra.mrb[158].mxu1 %vm88_vm0, %v6952_v28 }
0x11f2   :  { %5166 = vmatprep.mubr.msk.f32.mxu1 %vm88_vm0, %v6959_v29 }
0x11f5   :  { %5167 = vmatmul.mubr.msk.f32.gmra.mrb[160].mxu1 %vm88_vm0, %v6966_v20 }
0x11f6   :  { %5169 = vmatprep.mubr.msk.f32.mxu1 %vm88_vm0, %v6973_v18 }
0x11f9   :  { %5170 = vmatmul.mubr.msk.f32.gmra.mrb[162].mxu1 %vm88_vm0, %v6980_v27 }
0x11fa   :  { %5172 = vmatprep.mubr.msk.f32.mxu1 %vm88_vm0, %v6987_v12 }
0x11fd   :  { %5173 = vmatmul.mubr.msk.f32.gmra.mrb[164].mxu1 %vm88_vm0, %v6994_v56 }
0x11fe   :  { %5175 = vmatprep.mubr.msk.f32.mxu1 %vm88_vm0, %v7001_v30 }
0x1201   :  { %5176 = vmatmul.mubr.msk.f32.gmra.mrb[166].mxu1 %vm88_vm0, %v7008_v61 }
0x1202   :  { %5178 = vmatprep.mubr.msk.f32.mxu1 %vm88_vm0, %v7015_v60 }
0x1205   :  { %5179 = vmatmul.mubr.msk.f32.gmra.mrb[168].mxu1 %vm88_vm0, %v7022_v24 }
0x1206   :  { %5181 = vmatprep.mubr.msk.f32.mxu1 %vm88_vm0, %v7029_v25 }
0x1209   :  { %5182 = vmatmul.mubr.msk.f32.gmra.mrb[170].mxu1 %vm88_vm0, %v7036_v33 }
0x120a   :  { %5184 = vmatprep.mubr.msk.f32.mxu1 %vm88_vm0, %v7043_v46 }
0x120d   :  { %5185 = vmatmul.mubr.msk.f32.gmra.mrb[172].mxu1 %vm88_vm0, %v7050_v55 }
0x120e   :  { %5187 = vmatprep.mubr.msk.f32.mxu1 %vm88_vm0, %v7057_v47 }
0x1211   :  { %5188 = vmatmul.mubr.msk.f32.gmra.mrb[174].mxu1 %vm88_vm0, %v7064_v49 }
0x1212   :  { %5190 = vmatprep.mubr.msk.f32.mxu1 %vm88_vm0, %v7071_v39 }
0x1215   :  { %5191 = vmatmul.mubr.msk.f32.gmra.mrb[176].mxu1 %vm88_vm0, %v7078_v52 }
0x1216   :  { %5193 = vmatprep.mubr.msk.f32.mxu1 %vm88_vm0, %v7085_v51 }
0x1219   :  { %5194 = vmatmul.mubr.msk.f32.gmra.mrb[178].mxu1 %vm88_vm0, %v7092_v48 }
0x12b0   :  { %v5150_v0 = vpop.f32.mrb[148].mxu1 }
0x12b1   :  { %v3455_v32 = vmul.f32 %v5150_v0, %v7155_v40  ;;  %v3295_v16 = vpop.f32.mrb[149].mxu1 }
0x12b2   :  { %v3454_v31 = vmul.f32 %v3295_v16, %v7152_v36 }
0x12b4   :  { %v5522_v15 = vpack.c.bf16 %v3455_v32, %v3454_v31  ;;  %v5153_v11 = vpop.f32.mrb[150].mxu1 }
0x12b5   :  { %v3457_v13 = vmul.f32 %v5153_v11, %v7155_v40  ;;  %v3305_v21 = vpop.f32.mrb[151].mxu1 }
0x12b6   :  { %v3456_v22 = vmul.f32 %v3305_v21, %v7152_v36 }
0x12b8   :  { %v5526_v58 = vpack.c.bf16 %v3457_v13, %v3456_v22  ;;  %v5156_v42 = vpop.f32.mrb[152].mxu1 }
0x12b9   :  { %v3459_v28 = vmul.f32 %v5156_v42, %v7155_v40  ;;  %v3315_v29 = vpop.f32.mrb[153].mxu1 }
0x12ba   :  { %v3458_v20 = vmul.f32 %v3315_v29, %v7152_v36 }
0x12bc   :  { %v5530_v18 = vpack.c.bf16 %v3459_v28, %v3458_v20  ;;  %v5159_v27 = vpop.f32.mrb[154].mxu1 }
0x12bd   :  { %v3461_v12 = vmul.f32 %v5159_v27, %v7155_v40  ;;  %v3325_v56 = vpop.f32.mrb[155].mxu1 }
0x12be   :  { %v3460_v30 = vmul.f32 %v3325_v56, %v7152_v36 }
0x12c0   :  { %v5534_v61 = vpack.c.bf16 %v3461_v12, %v3460_v30  ;;  %v5162_v60 = vpop.f32.mrb[156].mxu1 }
0x12c1   :  { %v3463_v24 = vmul.f32 %v5162_v60, %v7155_v40  ;;  %v3335_v25 = vpop.f32.mrb[157].mxu1 }
0x12c2   :  { %v3462_v33 = vmul.f32 %v3335_v25, %v7152_v36 }
0x12c4   :  { %v5538_v46 = vpack.c.bf16 %v3463_v24, %v3462_v33  ;;  %v5165_v55 = vpop.f32.mrb[158].mxu1 }
0x12c5   :  { %v3465_v47 = vmul.f32 %v5165_v55, %v7155_v40  ;;  %v3345_v49 = vpop.f32.mrb[159].mxu1 }
0x12c6   :  { %v3464_v39 = vmul.f32 %v3345_v49, %v7152_v36 }
0x12c8   :  { %v5542_v52 = vpack.c.bf16 %v3465_v47, %v3464_v39  ;;  %v5168_v51 = vpop.f32.mrb[160].mxu1 }
0x12c9   :  { %v3467_v48 = vmul.f32 %v5168_v51, %v7155_v40  ;;  %v3355_v6 = vpop.f32.mrb[161].mxu1 }
0x12ca   :  { %v3466_v3 = vmul.f32 %v3355_v6, %v7152_v36  ;;  %v859_v6 = vmul.f32 0.1, %v6039_v43 }
0x12cc   :  { %v5546_v5 = vpack.c.bf16 %v3467_v48, %v3466_v3  ;;  %v5171_v7 = vpop.f32.mrb[162].mxu1  ;;  %v522_v3 = vmul.f32 0.1, %v5934_v35  ;;  %v7324_v35 = vld [vmem:[#allocation9_spill] sm:$0xff] }
0x12cd   :  { %v3469_v23 = vmul.f32 %v5171_v7, %v7155_v40  ;;  %v3365_v34 = vpop.f32.mrb[163].mxu1  ;;  %v7319_v7 = vld [vmem:[#allocation6_spill] sm:$0xff] }
0x12ce   :  { %v3468_v8 = vmul.f32 %v3365_v34, %v7152_v36 }
0x12d0   :  { %v5550_v54 = vpack.c.bf16 %v3469_v23, %v3468_v8  ;;  %v5174_v59 = vpop.f32.mrb[164].mxu1  ;;  %v1197_v23 = vmul.f32 0.1, %v7319_v7  ;;  %v7321_v8 = vld [vmem:[#allocation8_spill] sm:$0xff] }
0x12d1   :  { %v3471_v53 = vmul.f32 %v5174_v59, %v7155_v40  ;;  %v3375_v37 = vpop.f32.mrb[165].mxu1  ;;  %v7322_v59 = vld [vmem:[#allocation7_spill] sm:$0xff] }
0x12d2   :  { %v3470_v9 = vmul.f32 %v3375_v37, %v7152_v36 }
0x12d4   :  { %v5520_v45 = vpack.c.bf16 %v3471_v53, %v3470_v9  ;;  %v5177_v44 = vpop.f32.mrb[166].mxu1  ;;  %v1198_v53 = vmul.f32 0.1, %v7322_v59  ;;  %v7323_v9 = vld [vmem:[#allocation10_spill] sm:$0xff] }
0x12d5   :  { %v3473_v2 = vmul.f32 %v5177_v44, %v7155_v40  ;;  %v3385_v38 = vpop.f32.mrb[167].mxu1  ;;  %v1873_v43 = vmul.f32 0.1, %v7323_v9  ;;  %v1536_v44 = vmul.f32 0.1, %v7324_v35 }
0x12d6   :  { %v3472_v50 = vmul.f32 %v3385_v38, %v7152_v36  ;;  %5521 = vmatprep.subr.bf16.mxu0 %v5520_v45  ;;  %v2211_v38 = vmul.f32 0.1, %v6651_v26  ;;  %v3225_v26 = vmul.f32 0.1, %v7152_v36 }
0x12d7   :  { %5523 = vmatpush3.bf16.msra.mxu0 %v5522_v15 }
0x12d8   :  { %v5524_v4 = vpack.c.bf16 %v3473_v2, %v3472_v50  ;;  %v5180_v0 = vpop.f32.mrb[168].mxu1 }
0x12d9   :  { %v3475_v32 = vmul.f32 %v5180_v0, %v7155_v40  ;;  %v3395_v16 = vpop.f32.mrb[169].mxu1 }
0x12da   :  { %v3474_v31 = vmul.f32 %v3395_v16, %v7152_v36  ;;  %5525 = vmatprep.subr.bf16.mxu0 %v5524_v4  ;;  %v7325_v4 = vld [vmem:[#allocation11_spill] sm:$0xff]  ;;  %v2549_v16 = vmul.f32 0.1, %v6759_v14 }
0x12db   :  { %5527 = vmatpush3.bf16.msra.mxu0 %v5526_v58  ;;  %v1874_v0 = vmul.f32 0.1, %v7325_v4 }
0x12dc   :  { %v5528_v11 = vpack.c.bf16 %v3475_v32, %v3474_v31  ;;  %v5183_v13 = vpop.f32.mrb[170].mxu1 }
0x12dd   :  { %v3477_v21 = vmul.f32 %v5183_v13, %v7155_v40  ;;  %v3405_v22 = vpop.f32.mrb[171].mxu1 }
0x12de   :  { %v3476_v42 = vmul.f32 %v3405_v22, %v7152_v36  ;;  %5529 = vmatprep.subr.bf16.mxu0 %v5528_v11  ;;  %v2212_v11 = vmul.f32 0.1, %v6654_v63  ;;  %v2887_v22 = vmul.f32 0.1, %v6872_v10  ;;  %v3226_v10 = vmul.f32 0.1, %v7155_v40 }
0x12df   :  { %5531 = vmatpush3.bf16.msra.mxu0 %v5530_v18 }
0x12e0   :  { %v5532_v28 = vpack.c.bf16 %v3477_v21, %v3476_v42  ;;  %v5186_v15 = vpop.f32.mrb[172].mxu1 }
0x12e1   :  { %v3479_v29 = vmul.f32 %v5186_v15, %v7155_v40  ;;  %v3415_v20 = vpop.f32.mrb[173].mxu1  ;;  %v2550_v15 = vmul.f32 0.1, %v6762_v19 }
0x12e2   :  { %v3478_v27 = vmul.f32 %v3415_v20, %v7152_v36  ;;  %5533 = vmatprep.subr.bf16.mxu0 %v5532_v28 }
0x12e3   :  { %5535 = vmatpush3.bf16.msra.mxu0 %v5534_v61 }
0x12e4   :  { %v5536_v12 = vpack.c.bf16 %v3479_v29, %v3478_v27  ;;  %v5189_v58 = vpop.f32.mrb[174].mxu1 }
0x12e5   :  { %v3481_v56 = vmul.f32 %v5189_v58, %v7155_v40  ;;  %v3425_v30 = vpop.f32.mrb[175].mxu1 }
0x12e6   :  { %v3480_v60 = vmul.f32 %v3425_v30, %v7152_v36  ;;  %5537 = vmatprep.subr.bf16.mxu0 %v5536_v12 }
0x12e7   :  { %5539 = vmatpush3.bf16.msra.mxu0 %v5538_v46  ;;  %v521_v46 = vmul.f32 0.1, %v5932_v62  ;;  %v1535_v62 = vmul.f32 0.1, %v7321_v8 }
0x12e8   :  { %v5540_v24 = vpack.c.bf16 %v3481_v56, %v3480_v60  ;;  %v5192_v18 = vpop.f32.mrb[176].mxu1  ;;  %v2888_v56 = vmul.f32 0.1, %v6875_v17  ;;  %v55_v17 = vld [vmem:[%s7301_s1 + $0x8] sm:$0xff] }
0x12e9   :  { %v3483_v25 = vmul.f32 %v5192_v18, %v7155_v40  ;;  %v3435_v33 = vpop.f32.mrb[177].mxu1 }
0x12ea   :  { %v3482_v55 = vmul.f32 %v3435_v33, %v7152_v36  ;;  %5541 = vmatprep.subr.bf16.mxu0 %v5540_v24 }
0x12eb   :  { %5543 = vmatpush3.bf16.msra.mxu0 %v5542_v52  ;;  %v52_v52 = vld [vmem:[%s7300_s0] sm:$0xff] }
0x12ec   :  { %v5544_v47 = vpack.c.bf16 %v3483_v25, %v3482_v55  ;;  %v5195_v61 = vpop.f32.mrb[178].mxu1  ;;  %v54_v55 = vld [vmem:[%s7301_s1] sm:$0xff] }
0x12ed   :  { %v3485_v49 = vmul.f32 %v5195_v61, %v7155_v40  ;;  %v3445_v39 = vpop.f32.mrb[179].mxu1 }
0x12ee   :  { %v3484_v51 = vmul.f32 %v3445_v39, %v7152_v36  ;;  %5545 = vmatprep.subr.bf16.mxu0 %v5544_v47 }
0x12ef   :  { %5547 = vmatpush3.bf16.msra.mxu0 %v5546_v5  ;;  %v523_v5 = vadd.f32 %v521_v46, %v52_v52 }
0x12f0   :  { %v5548_v48 = vpack.c.bf16 %v3485_v49, %v3484_v51 }
0x12f2   :  { %5549 = vmatprep.subr.bf16.mxu0 %v5548_v48 }
0x12f3   :  { %5551 = vmatpush3.bf16.msra.mxu0 %v5550_v54 }
0x12f6   :  { %3551 = vmatmul.mubr.f32.vlgmr.msra.gmra.mrb[176].mxu0 %v7134_v57  ;;  %v53_v57 = vld [vmem:[%s7300_s0 + $0x8] sm:$0xff] }
0x12f7   :  { %3555 = vmatprep.mubr.f32.mxu0 %v7140_v41  ;;  %v7320_v41 = vld [vmem:[#allocation5_spill] sm:$0xff]  ;;  %v524_v54 = vadd.f32 %v522_v3, %v53_v57 }
0x12f8   :  { %v860_v34 = vmul.f32 0.1, %v7320_v41 }
0x12fa   :  { %3556 = vmatmul.mubr.f32.gmra.mrb[178].mxu0 %v7146_v1  ;;  %v861_v1 = vadd.f32 %v859_v6, %v523_v5  ;;  %v862_v45 = vadd.f32 %v860_v34, %v524_v54 }
0x12fc   :  { %v1199_v37 = vadd.f32 %v1197_v23, %v861_v1  ;;  %v1200_v50 = vadd.f32 %v1198_v53, %v862_v45  ;;  %v3601_v45 = vlaneseq }
0x12fe   :  { %v1537_v2 = vadd.f32 %v1535_v62, %v1199_v37  ;;  %v1538_v31 = vadd.f32 %v1536_v44, %v1200_v50  ;;  %v3602_v35 = vshrl.u32 %v3601_v45, 7  ;;  %v3604_v44 = vand.u32 127, %v3601_v45 }
0x1300   :  { %v1875_v32 = vadd.f32 %v1873_v43, %v1537_v2  ;;  %v1876_v28 = vadd.f32 %v1874_v0, %v1538_v31  ;;  %vm3606_vm4 = vcmp.eq.s32.totalorder %v3602_v35, 0  ;;  %vm3607_vm5 = vcmp.eq.s32.totalorder %v3604_v44, 0 }
0x1301   :  { %vm3608_vm6 = vmand %vm3606_vm4, %vm3607_vm5 }
0x1302   :  { %v2213_v21 = vadd.f32 %v2211_v38, %v1875_v32  ;;  %v2214_v27 = vadd.f32 %v2212_v11, %v1876_v28 }
0x1304   :  { %v2551_v29 = vadd.f32 %v2549_v16, %v2213_v21  ;;  %v2552_v63 = vadd.f32 %v2550_v15, %v2214_v27 }
0x1306   :  { %v2889_v12 = vadd.f32 %v2887_v22, %v2551_v29  ;;  %v2890_v19 = vadd.f32 %v2888_v56, %v2552_v63 }
0x1308   :  { %v3227_v60 = vadd.f32 %v3225_v26, %v2889_v12  ;;  %v3228_v47 = vadd.f32 %v3226_v10, %v2890_v19 }
0x13c9   :  { %v4672_v13 = vpop.f32.mrb[176].mxu0 }
0x13ca   :  { %v4673_v42 = vpop.f32.mrb[177].mxu0 }
0x13cb   :  { %v4674_v20 = vadd.f32 %v4673_v42, %v4672_v13 }
0x13cd   :  { %v3561_v58 = vadd.f32 %v4674_v20, %v7152_v36  ;;  %v4675_v14 = vpop.f32.mrb[178].mxu0 }
0x13ce   :  { %v4676_v30 = vpop.f32.mrb[179].mxu0 }
0x13cf   :  { %v3563_v24 = vmul.f32 0.1, %v3561_v58  ;;  %v4677_v18 = vadd.f32 %v4676_v30, %v4675_v14 }
0x13d1   :  { %v3565_v25 = vadd.f32 %v3563_v24, %v3227_v60  ;;  %v3562_v33 = vadd.f32 %v4677_v18, %v7155_v40 }
0x13d3   :  { %v3564_v36 = vmul.f32 0.1, %v3562_v33  ;;  %v3567_v61 = vsub.f32 %v3565_v25, %v54_v55 }
0x13d5   :  { %v3566_v49 = vadd.f32 %v3564_v36, %v3228_v47  ;;  %v3569_v51 = vmul.f32 %v3567_v61, %v3567_v61 }
0x13d7   :  { %v3568_v39 = vsub.f32 %v3566_v49, %v55_v17 }
0x13d9   :  { %v3570_v48 = vmul.f32 %v3568_v39, %v3568_v39 }
0x13db   :  { %v3571_v46 = vadd.f32 %v3570_v48, %v3569_v51 }
0x13dd   :  { %v3572_v52 = vrot.slane %v3571_v46, 4 }
0x13df   :  { %v3573_v6 = vadd.f32 %v3572_v52, %v3571_v46 }
0x13e1   :  { %v3574_v3 = vrot.slane %v3573_v6, 2 }
0x13e3   :  { %v3575_v40 = vadd.f32 %v3574_v3, %v3573_v6 }
0x13e5   :  { %v3576_v5 = vrot.slane %v3575_v40, 1 }
0x13e7   :  { %v3577_v7 = vadd.f32 %v3576_v5, %v3575_v40 }
0x13e9   :  { %5556 = vrsqrt.f32 %v3577_v7  ;;  %vm3580_vm1 = vcmp.eq.f32.partialorder %v3577_v7, inf  ;;  %v3583_v41 = vand.u32 2147483648, %v3577_v7  ;;  %vm3582_vm3 = vcmp.eq.f32.partialorder %v3577_v7, 0.0 }
0x13f3   :  { %v5557_v23 = vpop.eup %5556 }
0x13f4   :  { %v3579_v57 = vmul.f32 %v5557_v23, %v3577_v7 }
0x13f6   :  { %v3581_v34 = vsel %vm3580_vm1, %v3577_v7, %v3579_v57 }
0x13f7   :  { %v3584_v1 = vsel %vm3582_vm3, %v3583_v41, %v3581_v34 }
0x13f8   :  { %v3586_v8 = vsel %vm3585_vm2, %v3584_v1, 0.0 }
0x13f9   :  { %3587 = vadd.xlane.f32.xlu0 %v3586_v8 }
0x1486   :  { %v3588_v62 = vpop.xlane.xlu0 %3587 }
0x1487   :  { %v3589_v54 = vrot.slane %v3588_v62, 4 }
0x1489   :  { %v3590_v59 = vadd.f32 %v3589_v54, %v3588_v62 }
0x148b   :  { %v3591_v53 = vrot.slane %v3590_v59, 2 }
0x148d   :  { %v3592_v37 = vadd.f32 %v3591_v53, %v3590_v59 }
0x148f   :  { %v3593_v9 = vrot.slane %v3592_v37, 1 }
0x1491   :  { %v3594_v43 = vadd.f32 %v3593_v9, %v3592_v37 }
0x1493   :  { %5552 = vpush %v3594_v43 }
0x14c4   :  { %s5553_s1 = spop %5552 }
0x14c5   :  { %v3609_v2 = vstv %s5553_s1 }
0x14c6   :  { %v3610_v38 = vsel %vm3608_vm6, %v3609_v2, 0.0 }
0x14c7   :  { %3612 = vst [vmem:[#allocation2] sm:$0xff] %v3610_v38 }
0x14c8   :  { %5641 = shalt.err (!%p5638_p4)
}
0x14c9   :  { %s5642_s7 = scalar_lea.hbm %s7304_s4, 128 }
0x14ca   :  { %p5643_p5 = scmp.ne.s32.totalorder %s7304_s4, %s5642_s7  ;;  %p5646_p6 = scmp.lt.u32.totalorder %s5642_s7, %s7304_s4 }
0x14cc   :  { %p5648_p7 = pnand %p5646_p6, %p5643_p5 }
0x14ce   :  { %5651 = shalt.err (!%p5648_p7)
}
0x14cf   :  { %3622 = dma.vmem_to_hbm [thread:$0]  %s3620_s29, 128, %s7304_s4, [#allocation3]  }
0x14d0   :  { %5652 = dma.done.wait [#allocation3], 128  }
0x14d1   :  { %5653 = vsyncadd [#allocation3], 4294967168 }
0x14d2   :  { %3626 = vsyncpa [#allocation3], 1 }

</bundles_post_ra>
